<compile_context>
chip_gen: v6e
topology: v6e:2x2x1
jax: 0.10.0
libtpu: 0.0.40
codegen_flags: <defaults>
</compile_context>

<pallas_src>
import functools
import math

import numpy as np
import jax
import jax.numpy as jnp
from jax.experimental import pallas as pl
from jax.experimental.pallas import tpu as pltpu


# ----------------------------------------------------------------------------
# helpers
# ----------------------------------------------------------------------------
def _round_up(x: int, m: int) -> int:
    return ((x + m - 1) // m) * m


def _row_tile(m: int, *, block_rows: int = 256, min_steps: int = 2):
    """Pick a row-tile size: multiples of 8, minimal padding, and (when
    possible) at least `min_steps` grid steps so the grid can be split across
    TensorCores on v7x."""
    mp = _round_up(m, 8)
    tm = min(block_rows, mp)
    if mp // tm < min_steps and mp >= 8 * min_steps:
        tm = _round_up((mp + min_steps - 1) // min_steps, 8)
    mp = _round_up(mp, tm)
    return tm, mp


def _pad_last(x, k):
    d = x.shape[-1]
    if d == k:
        return x
    return jnp.pad(x, ((0, 0),) * (x.ndim - 1) + ((0, k - d),))


_VMEM_LIMIT = 32 * 1024 * 1024
_PAR = pltpu.CompilerParams(dimension_semantics=("parallel",),
                            vmem_limit_bytes=_VMEM_LIMIT)


# ----------------------------------------------------------------------------
# Kernel: embedding linear + fused sinusoidal positional-encoding epilogue
#   out[b, l, :] = x[b, l, :] @ W + bias + concat(sin(l*freqs), cos(l*freqs))
# ----------------------------------------------------------------------------
def _embed_pos_kernel(x_ref, w_ref, b_ref, o_ref, *, half: int, scale: float):
    x = x_ref[0]                                                        # (L, Kp)
    y = jnp.dot(x, w_ref[...], preferred_element_type=jnp.float32) + b_ref[...]
    L = y.shape[0]
    pos = jax.lax.broadcasted_iota(jnp.int32, (L, 1), 0).astype(jnp.float32)
    idx = jax.lax.broadcasted_iota(jnp.int32, (1, half), 1).astype(jnp.float32)
    arg = pos * jnp.exp(idx * (-scale))                                 # (L, half)
    o_ref[0] = y + jnp.concatenate([jnp.sin(arg), jnp.cos(arg)], axis=-1)


def embed_with_pos(x, w, b):
    """x: (B, L, Kp) (feature dim already padded to match w), w: (Kp, H),
    b: (1, H) -> (B, L, H) with positional encoding added."""
    B, L, Kp = x.shape
    H = w.shape[1]
    assert H % 2 == 0 and H >= 4, "hidden size must be even and >= 4"
    half = H // 2
    scale = float(np.log(10000.0) / (half - 1))
    return pl.pallas_call(
        functools.partial(_embed_pos_kernel, half=half, scale=scale),
        out_shape=jax.ShapeDtypeStruct((B, L, H), jnp.float32),
        grid_spec=pl.GridSpec(
            grid=(B,),
            in_specs=[
                pl.BlockSpec((1, L, Kp), lambda i: (i, 0, 0)),
                pl.BlockSpec((Kp, H), lambda i: (0, 0)),
                pl.BlockSpec((1, H), lambda i: (0, 0)),
            ],
            out_specs=pl.BlockSpec((1, L, H), lambda i: (i, 0, 0)),
        ),
        compiler_params=_PAR,
    )(x, w, b)


# ----------------------------------------------------------------------------
# Kernel: fused multi-head attention block
#   q = xq @ Wq + bq ; [k|v] = xkv @ Wkv + bkv
#   per-head softmax(q k^T / sqrt(Dh)) v  (optional causal mask)
#   out = LayerNorm( (attn @ Wo + bo) + xq ) * gamma + beta
# ----------------------------------------------------------------------------
def _mha_ln_kernel(xq_ref, xkv_ref, wq_ref, bq_ref, wkv_ref, bkv_ref,
                   wo_ref, bo_ref, g_ref, be_ref, o_ref,
                   *, num_heads: int, causal: bool, eps: float):
    xq = xq_ref[0]                                                      # (Lq, H)
    xkv = xkv_ref[0]                                                    # (Lk, H)
    H = xq.shape[-1]
    Dh = H // num_heads
    scale = 1.0 / math.sqrt(Dh)

    q = jnp.dot(xq, wq_ref[...], preferred_element_type=jnp.float32) + bq_ref[...]
    kv = jnp.dot(xkv, wkv_ref[...], preferred_element_type=jnp.float32) + bkv_ref[...]
    k = kv[:, :H]
    v = kv[:, H:]

    heads = []
    for h in range(num_heads):
        sl = slice(h * Dh, (h + 1) * Dh)
        qh, kh, vh = q[:, sl], k[:, sl], v[:, sl]
        s = jax.lax.dot_general(qh, kh, (((1,), (1,)), ((), ())),
                                preferred_element_type=jnp.float32) * scale
        if causal:
            row = jax.lax.broadcasted_iota(jnp.int32, s.shape, 0)
            col = jax.lax.broadcasted_iota(jnp.int32, s.shape, 1)
            s = jnp.where(col > row, jnp.float32(-1e30), s)
        m = jnp.max(s, axis=-1, keepdims=True)
        p = jnp.exp(s - m)
        denom = jnp.sum(p, axis=-1, keepdims=True)
        r = pl.reciprocal(denom, approx=True)          # EUP slot
        r = r * (2.0 - denom * r)                      # one Newton step -> ~f32 exact
        p = p * r
        heads.append(jnp.dot(p, vh, preferred_element_type=jnp.float32))
    attn = jnp.concatenate(heads, axis=-1)                              # (Lq, H)

    o = jnp.dot(attn, wo_ref[...], preferred_element_type=jnp.float32) + bo_ref[...]
    x = o + xq                                                          # residual
    mean = jnp.mean(x, axis=-1, keepdims=True)
    xc = x - mean
    var = jnp.mean(xc * xc, axis=-1, keepdims=True)
    o_ref[0] = xc * jax.lax.rsqrt(var + eps) * g_ref[...] + be_ref[...]


def mha_block(x_q, x_kv, p, gamma, beta, *, num_heads: int, causal: bool,
              eps: float = 1e-5):
    """x_q: (B, Lq, H), x_kv: (B, Lk, H) -> LN(MHA(x_q, x_kv) + x_q)."""
    B, Lq, H = x_q.shape
    Lk = x_kv.shape[1]
    assert H % num_heads == 0
    kern = functools.partial(_mha_ln_kernel, num_heads=num_heads,
                             causal=causal, eps=eps)
    return pl.pallas_call(
        kern,
        out_shape=jax.ShapeDtypeStruct((B, Lq, H), jnp.float32),
        grid_spec=pl.GridSpec(
            grid=(B,),
            in_specs=[
                pl.BlockSpec((1, Lq, H), lambda i: (i, 0, 0)),   # x_q
                pl.BlockSpec((1, Lk, H), lambda i: (i, 0, 0)),   # x_kv
                pl.BlockSpec((H, H), lambda i: (0, 0)),          # wq
                pl.BlockSpec((1, H), lambda i: (0, 0)),          # bq
                pl.BlockSpec((H, 2 * H), lambda i: (0, 0)),      # wkv (fused)
                pl.BlockSpec((1, 2 * H), lambda i: (0, 0)),      # bkv
                pl.BlockSpec((H, H), lambda i: (0, 0)),          # wo
                pl.BlockSpec((1, H), lambda i: (0, 0)),          # bo
                pl.BlockSpec((1, H), lambda i: (0, 0)),          # gamma
                pl.BlockSpec((1, H), lambda i: (0, 0)),          # beta
            ],
            out_specs=pl.BlockSpec((1, Lq, H), lambda i: (i, 0, 0)),
        ),
        compiler_params=_PAR,
    )(x_q, x_kv, p["wq"], p["bq"], p["wkv"], p["bkv"], p["wo"], p["bo"],
      gamma, beta)


# ----------------------------------------------------------------------------
# Kernel: fused MLP block   out = LN(ELU(x @ W1 + b1) @ W2 + b2 + x)
# ----------------------------------------------------------------------------
def _mlp_ln_kernel(x_ref, w1_ref, b1_ref, w2_ref, b2_ref, g_ref, be_ref, o_ref,
                   *, eps: float):
    x = x_ref[...]
    h = jnp.dot(x, w1_ref[...], preferred_element_type=jnp.float32) + b1_ref[...]
    h = jnp.where(h > 0, h, jnp.exp(jnp.minimum(h, 0.0)) - 1.0)        # ELU(alpha=1)
    m = jnp.dot(h, w2_ref[...], preferred_element_type=jnp.float32) + b2_ref[...]
    y = m + x                                                          # residual
    mean = jnp.mean(y, axis=-1, keepdims=True)
    yc = y - mean
    var = jnp.mean(yc * yc, axis=-1, keepdims=True)
    o_ref[...] = yc * jax.lax.rsqrt(var + eps) * g_ref[...] + be_ref[...]


def mlp_ln_block(x, p, gamma, beta, *, eps: float = 1e-5, block_rows: int = 256):
    """x: (M, H) -> LN(MLP(x) + x)."""
    M, H = x.shape
    Hi = p["w1"].shape[1]
    tm, Mp = _row_tile(M, block_rows=block_rows)
    xp = jnp.pad(x, ((0, Mp - M), (0, 0))) if Mp != M else x
    out = pl.pallas_call(
        functools.partial(_mlp_ln_kernel, eps=eps),
        out_shape=jax.ShapeDtypeStruct((Mp, H), jnp.float32),
        grid_spec=pl.GridSpec(
            grid=(Mp // tm,),
            in_specs=[
                pl.BlockSpec((tm, H), lambda i: (i, 0)),
                pl.BlockSpec((H, Hi), lambda i: (0, 0)),
                pl.BlockSpec((1, Hi), lambda i: (0, 0)),
                pl.BlockSpec((Hi, H), lambda i: (0, 0)),
                pl.BlockSpec((1, H), lambda i: (0, 0)),
                pl.BlockSpec((1, H), lambda i: (0, 0)),
                pl.BlockSpec((1, H), lambda i: (0, 0)),
            ],
            out_specs=pl.BlockSpec((tm, H), lambda i: (i, 0)),
        ),
        compiler_params=_PAR,
    )(xp, p["w1"], p["b1"], p["w2"], p["b2"], gamma, beta)
    return out[:M] if Mp != M else out


# ----------------------------------------------------------------------------
# Kernel: plain linear  y = x @ W + b    (only used for fc_out; W pre-padded)
# ----------------------------------------------------------------------------
def _linear_kernel(x_ref, w_ref, b_ref, o_ref):
    o_ref[...] = (jnp.dot(x_ref[...], w_ref[...],
                          preferred_element_type=jnp.float32) + b_ref[...])


def linear(x, w, b, *, block_rows: int = 256):
    """x: (M, K), w: (K, Np) pre-padded lane-dense, b: (1, Np) -> (M, Np)."""
    M, K = x.shape
    Np = w.shape[1]
    tm, Mp = _row_tile(M, block_rows=block_rows)
    xp = jnp.pad(x, ((0, Mp - M), (0, 0))) if Mp != M else x
    out = pl.pallas_call(
        _linear_kernel,
        out_shape=jax.ShapeDtypeStruct((Mp, Np), jnp.float32),
        grid_spec=pl.GridSpec(
            grid=(Mp // tm,),
            in_specs=[
                pl.BlockSpec((tm, K), lambda i: (i, 0)),
                pl.BlockSpec((K, Np), lambda i: (0, 0)),
                pl.BlockSpec((1, Np), lambda i: (0, 0)),
            ],
            out_specs=pl.BlockSpec((tm, Np), lambda i: (i, 0)),
        ),
        compiler_params=_PAR,
    )(xp, w, b)
    return out[:M]


# ----------------------------------------------------------------------------
# Model assembly
# ----------------------------------------------------------------------------
def core_layer(x, p, *, num_heads, decoder, kv_cross=None):
    B, L, H = x.shape
    x = mha_block(x, x, p["attn1"], p["ln1"]["g"], p["ln1"]["b"],
                  num_heads=num_heads, causal=decoder)
    if decoder:
        x = mha_block(x, kv_cross, p["attn2"], p["ln2"]["g"], p["ln2"]["b"],
                      num_heads=num_heads, causal=False)
    y = mlp_ln_block(x.reshape(B * L, H), p["mlp"],
                     p["ln_mlp"]["g"], p["ln_mlp"]["b"])
    return y.reshape(B, L, H)


def encoder_forward(p, src, *, num_heads):
    x = embed_with_pos(src, p["embed"]["w"], p["embed"]["b"])
    for lp in p["layers"]:
        x = core_layer(x, lp, num_heads=num_heads, decoder=False)
    return x


def decoder_forward(p, tgt, enc_out, *, num_heads, dim_o):
    x = embed_with_pos(tgt, p["embed"]["w"], p["embed"]["b"])
    for lp in p["layers"]:
        x = core_layer(x, lp, num_heads=num_heads, decoder=True, kv_cross=enc_out)
    B, Lt, H = x.shape
    out = linear(x.reshape(B * Lt, H), p["fc_out"]["w"], p["fc_out"]["b"])
    return out[:, :dim_o].reshape(B, Lt, dim_o)


def transformer_forward(params, src, tgt, *, num_heads):
    dim_o = tgt.shape[-1]
    # pad raw input feature dims once to match pre-padded embedding weights
    src_p = _pad_last(src.astype(jnp.float32),
                      params["encoder"]["embed"]["w"].shape[0])
    tgt_p = _pad_last(tgt.astype(jnp.float32),
                      params["decoder"]["embed"]["w"].shape[0])
    enc = encoder_forward(params["encoder"], src_p, num_heads=num_heads)
    return decoder_forward(params["decoder"], tgt_p, enc,
                           num_heads=num_heads, dim_o=dim_o)


# ----------------------------------------------------------------------------
# Parameter init (raw, matches the reference) + one-time kernel-ready prep
# ----------------------------------------------------------------------------
def _dense_init(key, fan_in, fan_out):
    kw, kb = jax.random.split(key)
    w = jax.random.normal(kw, (fan_in, fan_out), jnp.float32) / np.sqrt(fan_in)
    b = 0.02 * jax.random.normal(kb, (fan_out,), jnp.float32)
    return {"w": w, "b": b}


def _ln_init(key, hidden):
    kg, kb = jax.random.split(key)
    return {"g": 1.0 + 0.1 * jax.random.normal(kg, (hidden,), jnp.float32),
            "b": 0.1 * jax.random.normal(kb, (hidden,), jnp.float32)}


def _attn_init(key, hidden):
    ks = jax.random.split(key, 4)
    return {"q": _dense_init(ks[0], hidden, hidden),
            "k": _dense_init(ks[1], hidden, hidden),
            "v": _dense_init(ks[2], hidden, hidden),
            "o": _dense_init(ks[3], hidden, hidden)}


def _layer_init(key, hidden, decoder):
    ks = jax.random.split(key, 8)
    p = {"attn1": _attn_init(ks[0], hidden),
         "ln1": _ln_init(ks[1], hidden),
         "mlp": {"fc1": _dense_init(ks[2], hidden, 4 * hidden),
                 "fc2": _dense_init(ks[3], 4 * hidden, hidden)},
         "ln_mlp": _ln_init(ks[4], hidden)}
    if decoder:
        p["attn2"] = _attn_init(ks[5], hidden)
        p["ln2"] = _ln_init(ks[6], hidden)
    return p


def init_params(key, *, hidden, dim_i, dim_o, enc_layers, dec_layers):
    ks = jax.random.split(key, 3 + enc_layers + dec_layers)
    it = iter(ks)
    enc = {"embed": _dense_init(next(it), dim_i, hidden),
           "layers": [_layer_init(next(it), hidden, decoder=False)
                      for _ in range(enc_layers)]}
    dec = {"embed": _dense_init(next(it), dim_o, hidden),
           "layers": [_layer_init(next(it), hidden, decoder=True)
                      for _ in range(dec_layers)],
           "fc_out": _dense_init(next(it), hidden, dim_o)}
    return {"encoder": enc, "decoder": dec}


def prepare_params(raw):
    """One-time conversion to kernel-ready layout: fused KV weights, (1,N)
    biases / LN params, K-padded embedding weights, lane-dense fc_out."""
    def attn(p):
        return {"wq": p["q"]["w"], "bq": p["q"]["b"].reshape(1, -1),
                "wkv": jnp.concatenate([p["k"]["w"], p["v"]["w"]], axis=1),
                "bkv": jnp.concatenate([p["k"]["b"], p["v"]["b"]]).reshape(1, -1),
                "wo": p["o"]["w"], "bo": p["o"]["b"].reshape(1, -1)}

    def ln(p):
        return {"g": p["g"].reshape(1, -1), "b": p["b"].reshape(1, -1)}

    def embed(p):
        K, H = p["w"].shape
        Kp = _round_up(K, 8)
        return {"w": jnp.pad(p["w"], ((0, Kp - K), (0, 0))),
                "b": p["b"].reshape(1, -1)}

    def layer(p, decoder):
        out = {"attn1": attn(p["attn1"]), "ln1": ln(p["ln1"]),
               "mlp": {"w1": p["mlp"]["fc1"]["w"],
                       "b1": p["mlp"]["fc1"]["b"].reshape(1, -1),
                       "w2": p["mlp"]["fc2"]["w"],
                       "b2": p["mlp"]["fc2"]["b"].reshape(1, -1)},
               "ln_mlp": ln(p["ln_mlp"])}
        if decoder:
            out["attn2"] = attn(p["attn2"])
            out["ln2"] = ln(p["ln2"])
        return out

    H, No = raw["decoder"]["fc_out"]["w"].shape
    Np = _round_up(No, 128)
    enc = {"embed": embed(raw["encoder"]["embed"]),
           "layers": [layer(lp, False) for lp in raw["encoder"]["layers"]]}
    dec = {"embed": embed(raw["decoder"]["embed"]),
           "layers": [layer(lp, True) for lp in raw["decoder"]["layers"]],
           "fc_out": {"w": jnp.pad(raw["decoder"]["fc_out"]["w"],
                                   ((0, 0), (0, Np - No))),
                      "b": jnp.pad(raw["decoder"]["fc_out"]["b"],
                                   (0, Np - No)).reshape(1, -1)}}
    return {"encoder": enc, "decoder": dec}


# ----------------------------------------------------------------------------
# Pure-JAX reference (same math, raw params) for validation
# ----------------------------------------------------------------------------
def _ref_forward(params, src, tgt, num_heads):
    def lin(x, w, b):
        return x @ w + b

    def sinpos(pos, emb_dim):
        half = emb_dim // 2
        scale = np.log(10000.0) / (half - 1)
        freqs = jnp.exp(jnp.arange(half, dtype=jnp.float32) * -scale)
        arg = pos[:, None] * freqs[None, :]
        return jnp.concatenate([jnp.sin(arg), jnp.cos(arg)], axis=-1)

    def layer_norm(x, g, b, eps=1e-5):
        m = jnp.mean(x, axis=-1, keepdims=True)
        v = jnp.mean((x - m) ** 2, axis=-1, keepdims=True)
        return (x - m) * jax.lax.rsqrt(v + eps) * g + b

    def mha(xq, xkv, p, causal):
        B, Lq, H = xq.shape
        Lk = xkv.shape[1]
        Dh = H // num_heads
        q = lin(xq, p["q"]["w"], p["q"]["b"]).reshape(B, Lq, num_heads, Dh).transpose(0, 2, 1, 3)
        k = lin(xkv, p["k"]["w"], p["k"]["b"]).reshape(B, Lk, num_heads, Dh).transpose(0, 2, 1, 3)
        v = lin(xkv, p["v"]["w"], p["v"]["b"]).reshape(B, Lk, num_heads, Dh).transpose(0, 2, 1, 3)
        s = jnp.einsum("bhqd,bhkd->bhqk", q, k) / np.sqrt(Dh)
        if causal:
            col = jnp.arange(Lk)[None, :]
            row = jnp.arange(Lq)[:, None]
            s = jnp.where(col > row, -1e30, s)
        s = s - jnp.max(s, axis=-1, keepdims=True)
        w = jnp.exp(s)
        w = w / jnp.sum(w, axis=-1, keepdims=True)
        o = jnp.einsum("bhqk,bhkd->bhqd", w, v).transpose(0, 2, 1, 3).reshape(B, Lq, H)
        return lin(o, p["o"]["w"], p["o"]["b"])

    def core(x, p, decoder, kv_cross=None):
        a = mha(x, x, p["attn1"], causal=decoder)
        x = layer_norm(a + x, p["ln1"]["g"], p["ln1"]["b"])
        if decoder:
            c = mha(x, kv_cross, p["attn2"], causal=False)
            x = layer_norm(c + x, p["ln2"]["g"], p["ln2"]["b"])
        h = lin(x, p["mlp"]["fc1"]["w"], p["mlp"]["fc1"]["b"])
        h = jnp.where(h > 0, h, jnp.exp(jnp.minimum(h, 0.0)) - 1.0)
        m = lin(h, p["mlp"]["fc2"]["w"], p["mlp"]["fc2"]["b"])
        return layer_norm(m + x, p["ln_mlp"]["g"], p["ln_mlp"]["b"])

    enc_p, dec_p = params["encoder"], params["decoder"]
    B, Ls, _ = src.shape
    H = enc_p["embed"]["w"].shape[1]
    x = lin(src, enc_p["embed"]["w"], enc_p["embed"]["b"])
    x = x + sinpos(jnp.arange(Ls, dtype=jnp.float32), H)[None]
    for lp in enc_p["layers"]:
        x = core(x, lp, decoder=False)
    enc_out = x

    Lt = tgt.shape[1]
    y = lin(tgt, dec_p["embed"]["w"], dec_p["embed"]["b"])
    y = y + sinpos(jnp.arange(Lt, dtype=jnp.float32), H)[None]
    for lp in dec_p["layers"]:
        y = core(y, lp, decoder=True, kv_cross=enc_out)
    return lin(y, dec_p["fc_out"]["w"], dec_p["fc_out"]["b"])


# ----------------------------------------------------------------------------
# main
# ----------------------------------------------------------------------------
if __name__ == "__main__":
    B, Ls, Lt = 2, 16, 8
    hidden, num_heads = 64, 4
    dim_i, dim_o = 14, 1

    key = jax.random.PRNGKey(0)
    k_src, k_tgt, k_par = jax.random.split(key, 3)
    src = jax.random.normal(k_src, (B, Ls, dim_i), jnp.float32)
    tgt = jax.random.normal(k_tgt, (B, Lt, dim_o), jnp.float32)
    raw_params = init_params(k_par, hidden=hidden, dim_i=dim_i, dim_o=dim_o,
                             enc_layers=2, dec_layers=2)
    params = prepare_params(raw_params)   # one-time pad / fuse / reshape

    fwd = jax.jit(functools.partial(transformer_forward, num_heads=num_heads))
    out = jax.block_until_ready(fwd(params, src, tgt))

    ref = _ref_forward(raw_params, src, tgt, num_heads)
    np.testing.assert_allclose(np.asarray(out), np.asarray(ref),
                               rtol=2e-3, atol=2e-3)

    print("KERNEL_OK")
</pallas_src>

<mosaic_0001>
module attributes {stable_mosaic.version = 11 : i64} {
  func.func @_embed_pos_kernel(%arg0: i32, %arg1: memref<1x16x16xf32, #tpu.memory_space<vmem>>, %arg2: memref<16x64xf32, #tpu.memory_space<vmem>>, %arg3: memref<1x64xf32, #tpu.memory_space<vmem>>, %arg4: memref<1x16x64xf32, #tpu.memory_space<vmem>>) attributes {dimension_semantics = [#tpu.dimension_semantics<parallel>], iteration_bounds = array<i64: 2>, scalar_prefetch = 0 : i64, scratch_operands = 0 : i64, tpu.core_type = #tpu.core_type<tc>, window_params = [{transform_indices = @transform_0, window_bounds = array<i64: 1, 16, 16>}, {pipeline_mode = #tpu.pipeline_mode<synchronous>, transform_indices = @transform_1, window_bounds = array<i64: 16, 64>}, {pipeline_mode = #tpu.pipeline_mode<synchronous>, transform_indices = @transform_2, window_bounds = array<i64: 1, 64>}, {transform_indices = @transform_3, window_bounds = array<i64: 1, 16, 64>}]} {
    %c0 = arith.constant 0 : index
    %c0_0 = arith.constant 0 : index
    %c0_1 = arith.constant 0 : index
    %0 = vector.load %arg1[%c0, %c0_0, %c0_1] : memref<1x16x16xf32, #tpu.memory_space<vmem>>, vector<1x16x16xf32>
    %1 = vector.shape_cast %0 : vector<1x16x16xf32> to vector<16x16xf32>
    %c0_2 = arith.constant 0 : index
    %c0_3 = arith.constant 0 : index
    %2 = vector.load %arg2[%c0_2, %c0_3] : memref<16x64xf32, #tpu.memory_space<vmem>>, vector<16x64xf32>
    %cst = arith.constant dense<0.000000e+00> : vector<16x64xf32>
    %3 = tpu.matmul %1, %2, %cst {dimension_numbers = #tpu.dot_dimension_numbers<[1], [0], [0], [1], [0, 0, 1, 1], [], []>} : vector<16x16xf32>, vector<16x64xf32>, vector<16x64xf32> -> vector<16x64xf32>
    %c0_4 = arith.constant 0 : index
    %c0_5 = arith.constant 0 : index
    %4 = vector.load %arg3[%c0_4, %c0_5] : memref<1x64xf32, #tpu.memory_space<vmem>>, vector<1x64xf32>
    %5 = vector.broadcast %4 : vector<1x64xf32> to vector<16x64xf32>
    %6 = arith.addf %3, %5 : vector<16x64xf32>
    %7 = tpu.iota {dimensions = array<i32: 0>} : vector<16x1xi32>
    %8 = arith.sitofp %7 : vector<16x1xi32> to vector<16x1xf32>
    %9 = tpu.iota {dimensions = array<i32: 1>} : vector<1x32xi32>
    %10 = arith.sitofp %9 : vector<1x32xi32> to vector<1x32xf32>
    %cst_6 = arith.constant -0.297107756 : f32
    %11 = vector.broadcast %cst_6 : f32 to vector<1x32xf32>
    %12 = arith.mulf %10, %11 : vector<1x32xf32>
    %13 = math.exp %12 : vector<1x32xf32>
    %14 = vector.broadcast %8 : vector<16x1xf32> to vector<16x32xf32>
    %15 = vector.broadcast %13 : vector<1x32xf32> to vector<16x32xf32>
    %16 = arith.mulf %14, %15 : vector<16x32xf32>
    %17 = math.sin %16 : vector<16x32xf32>
    %18 = math.cos %16 : vector<16x32xf32>
    %19 = tpu.concatenate %17, %18 in 1 : vector<16x32xf32>, vector<16x32xf32> -> vector<16x64xf32>
    %20 = arith.addf %6, %19 : vector<16x64xf32>
    %c0_7 = arith.constant 0 : index
    %c0_8 = arith.constant 0 : index
    %c0_9 = arith.constant 0 : index
    %21 = vector.load %arg4[%c0_7, %c0_8, %c0_9] : memref<1x16x64xf32, #tpu.memory_space<vmem>>, vector<1x16x64xf32>
    %22 = vector.shape_cast %21 : vector<1x16x64xf32> to vector<16x64xf32>
    %23 = vector.shape_cast %20 : vector<16x64xf32> to vector<1x16x64xf32>
    tpu.vector_store %arg4[%c0_7, %c0_8, %c0_9], %23 {strides = array<i32>} : memref<1x16x64xf32, #tpu.memory_space<vmem>>, vector<1x16x64xf32>,
    return
  }
  func.func @transform_0(%arg0: i32) -> (i32, i32, i32) {
    %c0_i32 = arith.constant 0 : i32
    %c0_i32_0 = arith.constant 0 : i32
    %c0_i32_1 = arith.constant 0 : i32
    return %arg0, %c0_i32, %c0_i32_0 : i32, i32, i32
  }
  func.func @transform_1(%arg0: i32) -> (i32, i32) {
    %c0_i32 = arith.constant 0 : i32
    %c0_i32_0 = arith.constant 0 : i32
    %c0_i32_1 = arith.constant 0 : i32
    return %c0_i32, %c0_i32_0 : i32, i32
  }
  func.func @transform_2(%arg0: i32) -> (i32, i32) {
    %c0_i32 = arith.constant 0 : i32
    %c0_i32_0 = arith.constant 0 : i32
    %c0_i32_1 = arith.constant 0 : i32
    return %c0_i32, %c0_i32_0 : i32, i32
  }
  func.func @transform_3(%arg0: i32) -> (i32, i32, i32) {
    %c0_i32 = arith.constant 0 : i32
    %c0_i32_0 = arith.constant 0 : i32
    %c0_i32_1 = arith.constant 0 : i32
    return %arg0, %c0_i32, %c0_i32_0 : i32, i32, i32
  }
}

module attributes {stable_mosaic.version = 11 : i64} {
  func.func @_mha_ln_kernel(%arg0: i32, %arg1: memref<1x16x64xf32, #tpu.memory_space<vmem>>, %arg2: memref<1x16x64xf32, #tpu.memory_space<vmem>>, %arg3: memref<64x64xf32, #tpu.memory_space<vmem>>, %arg4: memref<1x64xf32, #tpu.memory_space<vmem>>, %arg5: memref<64x128xf32, #tpu.memory_space<vmem>>, %arg6: memref<1x128xf32, #tpu.memory_space<vmem>>, %arg7: memref<64x64xf32, #tpu.memory_space<vmem>>, %arg8: memref<1x64xf32, #tpu.memory_space<vmem>>, %arg9: memref<1x64xf32, #tpu.memory_space<vmem>>, %arg10: memref<1x64xf32, #tpu.memory_space<vmem>>, %arg11: memref<1x16x64xf32, #tpu.memory_space<vmem>>) attributes {dimension_semantics = [#tpu.dimension_semantics<parallel>], iteration_bounds = array<i64: 2>, scalar_prefetch = 0 : i64, scratch_operands = 0 : i64, tpu.core_type = #tpu.core_type<tc>, window_params = [{transform_indices = @transform_0, window_bounds = array<i64: 1, 16, 64>}, {transform_indices = @transform_1, window_bounds = array<i64: 1, 16, 64>}, {pipeline_mode = #tpu.pipeline_mode<synchronous>, transform_indices = @transform_2, window_bounds = array<i64: 64, 64>}, {pipeline_mode = #tpu.pipeline_mode<synchronous>, transform_indices = @transform_3, window_bounds = array<i64: 1, 64>}, {pipeline_mode = #tpu.pipeline_mode<synchronous>, transform_indices = @transform_4, window_bounds = array<i64: 64, 128>}, {pipeline_mode = #tpu.pipeline_mode<synchronous>, transform_indices = @transform_5, window_bounds = array<i64: 1, 128>}, {pipeline_mode = #tpu.pipeline_mode<synchronous>, transform_indices = @transform_6, window_bounds = array<i64: 64, 64>}, {pipeline_mode = #tpu.pipeline_mode<synchronous>, transform_indices = @transform_7, window_bounds = array<i64: 1, 64>}, {pipeline_mode = #tpu.pipeline_mode<synchronous>, transform_indices = @transform_8, window_bounds = array<i64: 1, 64>}, {pipeline_mode = #tpu.pipeline_mode<synchronous>, transform_indices = @transform_9, window_bounds = array<i64: 1, 64>}, {transform_indices = @transform_10, window_bounds = array<i64: 1, 16, 64>}]} {
    %c0 = arith.constant 0 : index
    %c0_0 = arith.constant 0 : index
    %c0_1 = arith.constant 0 : index
    %0 = vector.load %arg1[%c0, %c0_0, %c0_1] : memref<1x16x64xf32, #tpu.memory_space<vmem>>, vector<1x16x64xf32>
    %1 = vector.shape_cast %0 : vector<1x16x64xf32> to vector<16x64xf32>
    %c0_2 = arith.constant 0 : index
    %c0_3 = arith.constant 0 : index
    %c0_4 = arith.constant 0 : index
    %2 = vector.load %arg2[%c0_2, %c0_3, %c0_4] : memref<1x16x64xf32, #tpu.memory_space<vmem>>, vector<1x16x64xf32>
    %3 = vector.shape_cast %2 : vector<1x16x64xf32> to vector<16x64xf32>
    %c0_5 = arith.constant 0 : index
    %c0_6 = arith.constant 0 : index
    %4 = vector.load %arg3[%c0_5, %c0_6] : memref<64x64xf32, #tpu.memory_space<vmem>>, vector<64x64xf32>
    %cst = arith.constant dense<0.000000e+00> : vector<16x64xf32>
    %5 = tpu.matmul %1, %4, %cst {dimension_numbers = #tpu.dot_dimension_numbers<[1], [0], [0], [1], [0, 0, 1, 1], [], []>} : vector<16x64xf32>, vector<64x64xf32>, vector<16x64xf32> -> vector<16x64xf32>
    %c0_7 = arith.constant 0 : index
    %c0_8 = arith.constant 0 : index
    %6 = vector.load %arg4[%c0_7, %c0_8] : memref<1x64xf32, #tpu.memory_space<vmem>>, vector<1x64xf32>
    %7 = vector.broadcast %6 : vector<1x64xf32> to vector<16x64xf32>
    %8 = arith.addf %5, %7 : vector<16x64xf32>
    %c0_9 = arith.constant 0 : index
    %c0_10 = arith.constant 0 : index
    %9 = vector.load %arg5[%c0_9, %c0_10] : memref<64x128xf32, #tpu.memory_space<vmem>>, vector<64x128xf32>
    %cst_11 = arith.constant dense<0.000000e+00> : vector<16x128xf32>
    %10 = tpu.matmul %3, %9, %cst_11 {dimension_numbers = #tpu.dot_dimension_numbers<[1], [0], [0], [1], [0, 0, 1, 1], [], []>} : vector<16x64xf32>, vector<64x128xf32>, vector<16x128xf32> -> vector<16x128xf32>
    %c0_12 = arith.constant 0 : index
    %c0_13 = arith.constant 0 : index
    %11 = vector.load %arg6[%c0_12, %c0_13] : memref<1x128xf32, #tpu.memory_space<vmem>>, vector<1x128xf32>
    %12 = vector.broadcast %11 : vector<1x128xf32> to vector<16x128xf32>
    %13 = arith.addf %10, %12 : vector<16x128xf32>
    %14 = vector.extract_strided_slice %13 {offsets = [0, 0], sizes = [16, 64], strides = [1, 1]} : vector<16x128xf32> to vector<16x64xf32>
    %15 = vector.extract_strided_slice %13 {offsets = [0, 64], sizes = [16, 64], strides = [1, 1]} : vector<16x128xf32> to vector<16x64xf32>
    %16 = vector.extract_strided_slice %8 {offsets = [0, 0], sizes = [16, 16], strides = [1, 1]} : vector<16x64xf32> to vector<16x16xf32>
    %17 = vector.extract_strided_slice %14 {offsets = [0, 0], sizes = [16, 16], strides = [1, 1]} : vector<16x64xf32> to vector<16x16xf32>
    %18 = vector.extract_strided_slice %15 {offsets = [0, 0], sizes = [16, 16], strides = [1, 1]} : vector<16x64xf32> to vector<16x16xf32>
    %cst_14 = arith.constant dense<0.000000e+00> : vector<16x16xf32>
    %19 = tpu.matmul %16, %17, %cst_14 {dimension_numbers = #tpu.dot_dimension_numbers<[1], [1], [0], [0], [0, 0, 1, 0], [], []>} : vector<16x16xf32>, vector<16x16xf32>, vector<16x16xf32> -> vector<16x16xf32>
    %cst_15 = arith.constant 2.500000e-01 : f32
    %20 = vector.broadcast %cst_15 : f32 to vector<16x16xf32>
    %21 = arith.mulf %19, %20 : vector<16x16xf32>
    %cst_16 = arith.constant dense<0xFF800000> : vector<16xf32>
    %22 = vector.multi_reduction <maximumf>, %21, %cst_16 [1] : vector<16x16xf32> to vector<16xf32>
    %23 = vector.shape_cast %22 : vector<16xf32> to vector<16x1xf32>
    %24 = vector.broadcast %23 : vector<16x1xf32> to vector<16x16xf32>
    %25 = arith.subf %21, %24 : vector<16x16xf32>
    %26 = math.exp %25 : vector<16x16xf32>
    %cst_17 = arith.constant dense<0.000000e+00> : vector<16xf32>
    %27 = vector.multi_reduction <add>, %26, %cst_17 [1] : vector<16x16xf32> to vector<16xf32>
    %28 = vector.shape_cast %27 : vector<16xf32> to vector<16x1xf32>
    %29 = tpu.reciprocal %28 {approx = true} : vector<16x1xf32> -> vector<16x1xf32>
    %30 = arith.mulf %28, %29 : vector<16x1xf32>
    %cst_18 = arith.constant 2.000000e+00 : f32
    %31 = vector.broadcast %cst_18 : f32 to vector<16x1xf32>
    %32 = arith.subf %31, %30 : vector<16x1xf32>
    %33 = arith.mulf %29, %32 : vector<16x1xf32>
    %34 = vector.broadcast %33 : vector<16x1xf32> to vector<16x16xf32>
    %35 = arith.mulf %26, %34 : vector<16x16xf32>
    %cst_19 = arith.constant dense<0.000000e+00> : vector<16x16xf32>
    %36 = tpu.matmul %35, %18, %cst_19 {dimension_numbers = #tpu.dot_dimension_numbers<[1], [0], [0], [1], [0, 0, 1, 1], [], []>} : vector<16x16xf32>, vector<16x16xf32>, vector<16x16xf32> -> vector<16x16xf32>
    %37 = vector.extract_strided_slice %8 {offsets = [0, 16], sizes = [16, 16], strides = [1, 1]} : vector<16x64xf32> to vector<16x16xf32>
    %38 = vector.extract_strided_slice %14 {offsets = [0, 16], sizes = [16, 16], strides = [1, 1]} : vector<16x64xf32> to vector<16x16xf32>
    %39 = vector.extract_strided_slice %15 {offsets = [0, 16], sizes = [16, 16], strides = [1, 1]} : vector<16x64xf32> to vector<16x16xf32>
    %cst_20 = arith.constant dense<0.000000e+00> : vector<16x16xf32>
    %40 = tpu.matmul %37, %38, %cst_20 {dimension_numbers = #tpu.dot_dimension_numbers<[1], [1], [0], [0], [0, 0, 1, 0], [], []>} : vector<16x16xf32>, vector<16x16xf32>, vector<16x16xf32> -> vector<16x16xf32>
    %cst_21 = arith.constant 2.500000e-01 : f32
    %41 = vector.broadcast %cst_21 : f32 to vector<16x16xf32>
    %42 = arith.mulf %40, %41 : vector<16x16xf32>
    %cst_22 = arith.constant dense<0xFF800000> : vector<16xf32>
    %43 = vector.multi_reduction <maximumf>, %42, %cst_22 [1] : vector<16x16xf32> to vector<16xf32>
    %44 = vector.shape_cast %43 : vector<16xf32> to vector<16x1xf32>
    %45 = vector.broadcast %44 : vector<16x1xf32> to vector<16x16xf32>
    %46 = arith.subf %42, %45 : vector<16x16xf32>
    %47 = math.exp %46 : vector<16x16xf32>
    %cst_23 = arith.constant dense<0.000000e+00> : vector<16xf32>
    %48 = vector.multi_reduction <add>, %47, %cst_23 [1] : vector<16x16xf32> to vector<16xf32>
    %49 = vector.shape_cast %48 : vector<16xf32> to vector<16x1xf32>
    %50 = tpu.reciprocal %49 {approx = true} : vector<16x1xf32> -> vector<16x1xf32>
    %51 = arith.mulf %49, %50 : vector<16x1xf32>
    %cst_24 = arith.constant 2.000000e+00 : f32
    %52 = vector.broadcast %cst_24 : f32 to vector<16x1xf32>
    %53 = arith.subf %52, %51 : vector<16x1xf32>
    %54 = arith.mulf %50, %53 : vector<16x1xf32>
    %55 = vector.broadcast %54 : vector<16x1xf32> to vector<16x16xf32>
    %56 = arith.mulf %47, %55 : vector<16x16xf32>
    %cst_25 = arith.constant dense<0.000000e+00> : vector<16x16xf32>
    %57 = tpu.matmul %56, %39, %cst_25 {dimension_numbers = #tpu.dot_dimension_numbers<[1], [0], [0], [1], [0, 0, 1, 1], [], []>} : vector<16x16xf32>, vector<16x16xf32>, vector<16x16xf32> -> vector<16x16xf32>
    %58 = vector.extract_strided_slice %8 {offsets = [0, 32], sizes = [16, 16], strides = [1, 1]} : vector<16x64xf32> to vector<16x16xf32>
    %59 = vector.extract_strided_slice %14 {offsets = [0, 32], sizes = [16, 16], strides = [1, 1]} : vector<16x64xf32> to vector<16x16xf32>
    %60 = vector.extract_strided_slice %15 {offsets = [0, 32], sizes = [16, 16], strides = [1, 1]} : vector<16x64xf32> to vector<16x16xf32>
    %cst_26 = arith.constant dense<0.000000e+00> : vector<16x16xf32>
    %61 = tpu.matmul %58, %59, %cst_26 {dimension_numbers = #tpu.dot_dimension_numbers<[1], [1], [0], [0], [0, 0, 1, 0], [], []>} : vector<16x16xf32>, vector<16x16xf32>, vector<16x16xf32> -> vector<16x16xf32>
    %cst_27 = arith.constant 2.500000e-01 : f32
    %62 = vector.broadcast %cst_27 : f32 to vector<16x16xf32>
    %63 = arith.mulf %61, %62 : vector<16x16xf32>
    %cst_28 = arith.constant dense<0xFF800000> : vector<16xf32>
    %64 = vector.multi_reduction <maximumf>, %63, %cst_28 [1] : vector<16x16xf32> to vector<16xf32>
    %65 = vector.shape_cast %64 : vector<16xf32> to vector<16x1xf32>
    %66 = vector.broadcast %65 : vector<16x1xf32> to vector<16x16xf32>
    %67 = arith.subf %63, %66 : vector<16x16xf32>
    %68 = math.exp %67 : vector<16x16xf32>
    %cst_29 = arith.constant dense<0.000000e+00> : vector<16xf32>
    %69 = vector.multi_reduction <add>, %68, %cst_29 [1] : vector<16x16xf32> to vector<16xf32>
    %70 = vector.shape_cast %69 : vector<16xf32> to vector<16x1xf32>
    %71 = tpu.reciprocal %70 {approx = true} : vector<16x1xf32> -> vector<16x1xf32>
    %72 = arith.mulf %70, %71 : vector<16x1xf32>
    %cst_30 = arith.constant 2.000000e+00 : f32
    %73 = vector.broadcast %cst_30 : f32 to vector<16x1xf32>
    %74 = arith.subf %73, %72 : vector<16x1xf32>
    %75 = arith.mulf %71, %74 : vector<16x1xf32>
    %76 = vector.broadcast %75 : vector<16x1xf32> to vector<16x16xf32>
    %77 = arith.mulf %68, %76 : vector<16x16xf32>
    %cst_31 = arith.constant dense<0.000000e+00> : vector<16x16xf32>
    %78 = tpu.matmul %77, %60, %cst_31 {dimension_numbers = #tpu.dot_dimension_numbers<[1], [0], [0], [1], [0, 0, 1, 1], [], []>} : vector<16x16xf32>, vector<16x16xf32>, vector<16x16xf32> -> vector<16x16xf32>
    %79 = vector.extract_strided_slice %8 {offsets = [0, 48], sizes = [16, 16], strides = [1, 1]} : vector<16x64xf32> to vector<16x16xf32>
    %80 = vector.extract_strided_slice %14 {offsets = [0, 48], sizes = [16, 16], strides = [1, 1]} : vector<16x64xf32> to vector<16x16xf32>
    %81 = vector.extract_strided_slice %15 {offsets = [0, 48], sizes = [16, 16], strides = [1, 1]} : vector<16x64xf32> to vector<16x16xf32>
    %cst_32 = arith.constant dense<0.000000e+00> : vector<16x16xf32>
    %82 = tpu.matmul %79, %80, %cst_32 {dimension_numbers = #tpu.dot_dimension_numbers<[1], [1], [0], [0], [0, 0, 1, 0], [], []>} : vector<16x16xf32>, vector<16x16xf32>, vector<16x16xf32> -> vector<16x16xf32>
    %cst_33 = arith.constant 2.500000e-01 : f32
    %83 = vector.broadcast %cst_33 : f32 to vector<16x16xf32>
    %84 = arith.mulf %82, %83 : vector<16x16xf32>
    %cst_34 = arith.constant dense<0xFF800000> : vector<16xf32>
    %85 = vector.multi_reduction <maximumf>, %84, %cst_34 [1] : vector<16x16xf32> to vector<16xf32>
    %86 = vector.shape_cast %85 : vector<16xf32> to vector<16x1xf32>
    %87 = vector.broadcast %86 : vector<16x1xf32> to vector<16x16xf32>
    %88 = arith.subf %84, %87 : vector<16x16xf32>
    %89 = math.exp %88 : vector<16x16xf32>
    %cst_35 = arith.constant dense<0.000000e+00> : vector<16xf32>
    %90 = vector.multi_reduction <add>, %89, %cst_35 [1] : vector<16x16xf32> to vector<16xf32>
    %91 = vector.shape_cast %90 : vector<16xf32> to vector<16x1xf32>
    %92 = tpu.reciprocal %91 {approx = true} : vector<16x1xf32> -> vector<16x1xf32>
    %93 = arith.mulf %91, %92 : vector<16x1xf32>
    %cst_36 = arith.constant 2.000000e+00 : f32
    %94 = vector.broadcast %cst_36 : f32 to vector<16x1xf32>
    %95 = arith.subf %94, %93 : vector<16x1xf32>
    %96 = arith.mulf %92, %95 : vector<16x1xf32>
    %97 = vector.broadcast %96 : vector<16x1xf32> to vector<16x16xf32>
    %98 = arith.mulf %89, %97 : vector<16x16xf32>
    %cst_37 = arith.constant dense<0.000000e+00> : vector<16x16xf32>
    %99 = tpu.matmul %98, %81, %cst_37 {dimension_numbers = #tpu.dot_dimension_numbers<[1], [0], [0], [1], [0, 0, 1, 1], [], []>} : vector<16x16xf32>, vector<16x16xf32>, vector<16x16xf32> -> vector<16x16xf32>
    %100 = tpu.concatenate %36, %57, %78, %99 in 1 : vector<16x16xf32>, vector<16x16xf32>, vector<16x16xf32>, vector<16x16xf32> -> vector<16x64xf32>
    %c0_38 = arith.constant 0 : index
    %c0_39 = arith.constant 0 : index
    %101 = vector.load %arg7[%c0_38, %c0_39] : memref<64x64xf32, #tpu.memory_space<vmem>>, vector<64x64xf32>
    %cst_40 = arith.constant dense<0.000000e+00> : vector<16x64xf32>
    %102 = tpu.matmul %100, %101, %cst_40 {dimension_numbers = #tpu.dot_dimension_numbers<[1], [0], [0], [1], [0, 0, 1, 1], [], []>} : vector<16x64xf32>, vector<64x64xf32>, vector<16x64xf32> -> vector<16x64xf32>
    %c0_41 = arith.constant 0 : index
    %c0_42 = arith.constant 0 : index
    %103 = vector.load %arg8[%c0_41, %c0_42] : memref<1x64xf32, #tpu.memory_space<vmem>>, vector<1x64xf32>
    %104 = vector.broadcast %103 : vector<1x64xf32> to vector<16x64xf32>
    %105 = arith.addf %102, %104 : vector<16x64xf32>
    %106 = arith.addf %105, %1 : vector<16x64xf32>
    %cst_43 = arith.constant dense<0.000000e+00> : vector<16xf32>
    %107 = vector.multi_reduction <add>, %106, %cst_43 [1] : vector<16x64xf32> to vector<16xf32>
    %108 = vector.shape_cast %107 : vector<16xf32> to vector<16x1xf32>
    %cst_44 = arith.constant 6.400000e+01 : f32
    %109 = vector.broadcast %cst_44 : f32 to vector<16x1xf32>
    %110 = arith.divf %108, %109 : vector<16x1xf32>
    %111 = vector.broadcast %110 : vector<16x1xf32> to vector<16x64xf32>
    %112 = arith.subf %106, %111 : vector<16x64xf32>
    %113 = arith.mulf %112, %112 : vector<16x64xf32>
    %cst_45 = arith.constant dense<0.000000e+00> : vector<16xf32>
    %114 = vector.multi_reduction <add>, %113, %cst_45 [1] : vector<16x64xf32> to vector<16xf32>
    %115 = vector.shape_cast %114 : vector<16xf32> to vector<16x1xf32>
    %cst_46 = arith.constant 6.400000e+01 : f32
    %116 = vector.broadcast %cst_46 : f32 to vector<16x1xf32>
    %117 = arith.divf %115, %116 : vector<16x1xf32>
    %cst_47 = arith.constant 9.99999974E-6 : f32
    %118 = vector.broadcast %cst_47 : f32 to vector<16x1xf32>
    %119 = arith.addf %117, %118 : vector<16x1xf32>
    %120 = math.rsqrt %119 : vector<16x1xf32>
    %121 = vector.broadcast %120 : vector<16x1xf32> to vector<16x64xf32>
    %122 = arith.mulf %112, %121 : vector<16x64xf32>
    %c0_48 = arith.constant 0 : index
    %c0_49 = arith.constant 0 : index
    %123 = vector.load %arg9[%c0_48, %c0_49] : memref<1x64xf32, #tpu.memory_space<vmem>>, vector<1x64xf32>
    %124 = vector.broadcast %123 : vector<1x64xf32> to vector<16x64xf32>
    %125 = arith.mulf %122, %124 : vector<16x64xf32>
    %c0_50 = arith.constant 0 : index
    %c0_51 = arith.constant 0 : index
    %126 = vector.load %arg10[%c0_50, %c0_51] : memref<1x64xf32, #tpu.memory_space<vmem>>, vector<1x64xf32>
    %127 = vector.broadcast %126 : vector<1x64xf32> to vector<16x64xf32>
    %128 = arith.addf %125, %127 : vector<16x64xf32>
    %c0_52 = arith.constant 0 : index
    %c0_53 = arith.constant 0 : index
    %c0_54 = arith.constant 0 : index
    %129 = vector.load %arg11[%c0_52, %c0_53, %c0_54] : memref<1x16x64xf32, #tpu.memory_space<vmem>>, vector<1x16x64xf32>
    %130 = vector.shape_cast %129 : vector<1x16x64xf32> to vector<16x64xf32>
    %131 = vector.shape_cast %128 : vector<16x64xf32> to vector<1x16x64xf32>
    tpu.vector_store %arg11[%c0_52, %c0_53, %c0_54], %131 {strides = array<i32>} : memref<1x16x64xf32, #tpu.memory_space<vmem>>, vector<1x16x64xf32>,
    return
  }
  func.func @transform_0(%arg0: i32) -> (i32, i32, i32) {
    %c0_i32 = arith.constant 0 : i32
    %c0_i32_0 = arith.constant 0 : i32
    %c0_i32_1 = arith.constant 0 : i32
    return %arg0, %c0_i32, %c0_i32_0 : i32, i32, i32
  }
  func.func @transform_1(%arg0: i32) -> (i32, i32, i32) {
    %c0_i32 = arith.constant 0 : i32
    %c0_i32_0 = arith.constant 0 : i32
    %c0_i32_1 = arith.constant 0 : i32
    return %arg0, %c0_i32, %c0_i32_0 : i32, i32, i32
  }
  func.func @transform_2(%arg0: i32) -> (i32, i32) {
    %c0_i32 = arith.constant 0 : i32
    %c0_i32_0 = arith.constant 0 : i32
    %c0_i32_1 = arith.constant 0 : i32
    return %c0_i32, %c0_i32_0 : i32, i32
  }
  func.func @transform_3(%arg0: i32) -> (i32, i32) {
    %c0_i32 = arith.constant 0 : i32
    %c0_i32_0 = arith.constant 0 : i32
    %c0_i32_1 = arith.constant 0 : i32
    return %c0_i32, %c0_i32_0 : i32, i32
  }
  func.func @transform_4(%arg0: i32) -> (i32, i32) {
    %c0_i32 = arith.constant 0 : i32
    %c0_i32_0 = arith.constant 0 : i32
    %c0_i32_1 = arith.constant 0 : i32
    return %c0_i32, %c0_i32_0 : i32, i32
  }
  func.func @transform_5(%arg0: i32) -> (i32, i32) {
    %c0_i32 = arith.constant 0 : i32
    %c0_i32_0 = arith.constant 0 : i32
    %c0_i32_1 = arith.constant 0 : i32
    return %c0_i32, %c0_i32_0 : i32, i32
  }
  func.func @transform_6(%arg0: i32) -> (i32, i32) {
    %c0_i32 = arith.constant 0 : i32
    %c0_i32_0 = arith.constant 0 : i32
    %c0_i32_1 = arith.constant 0 : i32
    return %c0_i32, %c0_i32_0 : i32, i32
  }
  func.func @transform_7(%arg0: i32) -> (i32, i32) {
    %c0_i32 = arith.constant 0 : i32
    %c0_i32_0 = arith.constant 0 : i32
    %c0_i32_1 = arith.constant 0 : i32
    return %c0_i32, %c0_i32_0 : i32, i32
  }
  func.func @transform_8(%arg0: i32) -> (i32, i32) {
    %c0_i32 = arith.constant 0 : i32
    %c0_i32_0 = arith.constant 0 : i32
    %c0_i32_1 = arith.constant 0 : i32
    return %c0_i32, %c0_i32_0 : i32, i32
  }
  func.func @transform_9(%arg0: i32) -> (i32, i32) {
    %c0_i32 = arith.constant 0 : i32
    %c0_i32_0 = arith.constant 0 : i32
    %c0_i32_1 = arith.constant 0 : i32
    return %c0_i32, %c0_i32_0 : i32, i32
  }
  func.func @transform_10(%arg0: i32) -> (i32, i32, i32) {
    %c0_i32 = arith.constant 0 : i32
    %c0_i32_0 = arith.constant 0 : i32
    %c0_i32_1 = arith.constant 0 : i32
    return %arg0, %c0_i32, %c0_i32_0 : i32, i32, i32
  }
}

module attributes {stable_mosaic.version = 11 : i64} {
  func.func @_mlp_ln_kernel(%arg0: i32, %arg1: memref<16x64xf32, #tpu.memory_space<vmem>>, %arg2: memref<64x256xf32, #tpu.memory_space<vmem>>, %arg3: memref<1x256xf32, #tpu.memory_space<vmem>>, %arg4: memref<256x64xf32, #tpu.memory_space<vmem>>, %arg5: memref<1x64xf32, #tpu.memory_space<vmem>>, %arg6: memref<1x64xf32, #tpu.memory_space<vmem>>, %arg7: memref<1x64xf32, #tpu.memory_space<vmem>>, %arg8: memref<16x64xf32, #tpu.memory_space<vmem>>) attributes {dimension_semantics = [#tpu.dimension_semantics<parallel>], iteration_bounds = array<i64: 2>, scalar_prefetch = 0 : i64, scratch_operands = 0 : i64, tpu.core_type = #tpu.core_type<tc>, window_params = [{transform_indices = @transform_0, window_bounds = array<i64: 16, 64>}, {pipeline_mode = #tpu.pipeline_mode<synchronous>, transform_indices = @transform_1, window_bounds = array<i64: 64, 256>}, {pipeline_mode = #tpu.pipeline_mode<synchronous>, transform_indices = @transform_2, window_bounds = array<i64: 1, 256>}, {pipeline_mode = #tpu.pipeline_mode<synchronous>, transform_indices = @transform_3, window_bounds = array<i64: 256, 64>}, {pipeline_mode = #tpu.pipeline_mode<synchronous>, transform_indices = @transform_4, window_bounds = array<i64: 1, 64>}, {pipeline_mode = #tpu.pipeline_mode<synchronous>, transform_indices = @transform_5, window_bounds = array<i64: 1, 64>}, {pipeline_mode = #tpu.pipeline_mode<synchronous>, transform_indices = @transform_6, window_bounds = array<i64: 1, 64>}, {transform_indices = @transform_7, window_bounds = array<i64: 16, 64>}]} {
    %c0 = arith.constant 0 : index
    %c0_0 = arith.constant 0 : index
    %0 = vector.load %arg1[%c0, %c0_0] : memref<16x64xf32, #tpu.memory_space<vmem>>, vector<16x64xf32>
    %c0_1 = arith.constant 0 : index
    %c0_2 = arith.constant 0 : index
    %1 = vector.load %arg2[%c0_1, %c0_2] : memref<64x256xf32, #tpu.memory_space<vmem>>, vector<64x256xf32>
    %cst = arith.constant dense<0.000000e+00> : vector<16x256xf32>
    %2 = tpu.matmul %0, %1, %cst {dimension_numbers = #tpu.dot_dimension_numbers<[1], [0], [0], [1], [0, 0, 1, 1], [], []>} : vector<16x64xf32>, vector<64x256xf32>, vector<16x256xf32> -> vector<16x256xf32>
    %c0_3 = arith.constant 0 : index
    %c0_4 = arith.constant 0 : index
    %3 = vector.load %arg3[%c0_3, %c0_4] : memref<1x256xf32, #tpu.memory_space<vmem>>, vector<1x256xf32>
    %4 = vector.broadcast %3 : vector<1x256xf32> to vector<16x256xf32>
    %5 = arith.addf %2, %4 : vector<16x256xf32>
    %cst_5 = arith.constant 0.000000e+00 : f32
    %6 = vector.broadcast %cst_5 : f32 to vector<16x256xf32>
    %7 = arith.cmpf ogt, %5, %6 : vector<16x256xf32>
    %cst_6 = arith.constant 0.000000e+00 : f32
    %8 = vector.broadcast %cst_6 : f32 to vector<16x256xf32>
    %9 = arith.minimumf %5, %8 : vector<16x256xf32>
    %10 = math.exp %9 : vector<16x256xf32>
    %cst_7 = arith.constant 1.000000e+00 : f32
    %11 = vector.broadcast %cst_7 : f32 to vector<16x256xf32>
    %12 = arith.subf %10, %11 : vector<16x256xf32>
    %13 = arith.select %7, %5, %12 : vector<16x256xi1>, vector<16x256xf32>
    %c0_8 = arith.constant 0 : index
    %c0_9 = arith.constant 0 : index
    %14 = vector.load %arg4[%c0_8, %c0_9] : memref<256x64xf32, #tpu.memory_space<vmem>>, vector<256x64xf32>
    %cst_10 = arith.constant dense<0.000000e+00> : vector<16x64xf32>
    %15 = tpu.matmul %13, %14, %cst_10 {dimension_numbers = #tpu.dot_dimension_numbers<[1], [0], [0], [1], [0, 0, 1, 1], [], []>} : vector<16x256xf32>, vector<256x64xf32>, vector<16x64xf32> -> vector<16x64xf32>
    %c0_11 = arith.constant 0 : index
    %c0_12 = arith.constant 0 : index
    %16 = vector.load %arg5[%c0_11, %c0_12] : memref<1x64xf32, #tpu.memory_space<vmem>>, vector<1x64xf32>
    %17 = vector.broadcast %16 : vector<1x64xf32> to vector<16x64xf32>
    %18 = arith.addf %15, %17 : vector<16x64xf32>
    %19 = arith.addf %18, %0 : vector<16x64xf32>
    %cst_13 = arith.constant dense<0.000000e+00> : vector<16xf32>
    %20 = vector.multi_reduction <add>, %19, %cst_13 [1] : vector<16x64xf32> to vector<16xf32>
    %21 = vector.shape_cast %20 : vector<16xf32> to vector<16x1xf32>
    %cst_14 = arith.constant 6.400000e+01 : f32
    %22 = vector.broadcast %cst_14 : f32 to vector<16x1xf32>
    %23 = arith.divf %21, %22 : vector<16x1xf32>
    %24 = vector.broadcast %23 : vector<16x1xf32> to vector<16x64xf32>
    %25 = arith.subf %19, %24 : vector<16x64xf32>
    %26 = arith.mulf %25, %25 : vector<16x64xf32>
    %cst_15 = arith.constant dense<0.000000e+00> : vector<16xf32>
    %27 = vector.multi_reduction <add>, %26, %cst_15 [1] : vector<16x64xf32> to vector<16xf32>
    %28 = vector.shape_cast %27 : vector<16xf32> to vector<16x1xf32>
    %cst_16 = arith.constant 6.400000e+01 : f32
    %29 = vector.broadcast %cst_16 : f32 to vector<16x1xf32>
    %30 = arith.divf %28, %29 : vector<16x1xf32>
    %cst_17 = arith.constant 9.99999974E-6 : f32
    %31 = vector.broadcast %cst_17 : f32 to vector<16x1xf32>
    %32 = arith.addf %30, %31 : vector<16x1xf32>
    %33 = math.rsqrt %32 : vector<16x1xf32>
    %34 = vector.broadcast %33 : vector<16x1xf32> to vector<16x64xf32>
    %35 = arith.mulf %25, %34 : vector<16x64xf32>
    %c0_18 = arith.constant 0 : index
    %c0_19 = arith.constant 0 : index
    %36 = vector.load %arg6[%c0_18, %c0_19] : memref<1x64xf32, #tpu.memory_space<vmem>>, vector<1x64xf32>
    %37 = vector.broadcast %36 : vector<1x64xf32> to vector<16x64xf32>
    %38 = arith.mulf %35, %37 : vector<16x64xf32>
    %c0_20 = arith.constant 0 : index
    %c0_21 = arith.constant 0 : index
    %39 = vector.load %arg7[%c0_20, %c0_21] : memref<1x64xf32, #tpu.memory_space<vmem>>, vector<1x64xf32>
    %40 = vector.broadcast %39 : vector<1x64xf32> to vector<16x64xf32>
    %41 = arith.addf %38, %40 : vector<16x64xf32>
    %c0_22 = arith.constant 0 : index
    %c0_23 = arith.constant 0 : index
    %42 = vector.load %arg8[%c0_22, %c0_23] : memref<16x64xf32, #tpu.memory_space<vmem>>, vector<16x64xf32>
    tpu.vector_store %arg8[%c0_22, %c0_23], %41 {strides = array<i32>} : memref<16x64xf32, #tpu.memory_space<vmem>>, vector<16x64xf32>,
    return
  }
  func.func @transform_0(%arg0: i32) -> (i32, i32) {
    %c0_i32 = arith.constant 0 : i32
    %c0_i32_0 = arith.constant 0 : i32
    return %arg0, %c0_i32 : i32, i32
  }
  func.func @transform_1(%arg0: i32) -> (i32, i32) {
    %c0_i32 = arith.constant 0 : i32
    %c0_i32_0 = arith.constant 0 : i32
    %c0_i32_1 = arith.constant 0 : i32
    return %c0_i32, %c0_i32_0 : i32, i32
  }
  func.func @transform_2(%arg0: i32) -> (i32, i32) {
    %c0_i32 = arith.constant 0 : i32
    %c0_i32_0 = arith.constant 0 : i32
    %c0_i32_1 = arith.constant 0 : i32
    return %c0_i32, %c0_i32_0 : i32, i32
  }
  func.func @transform_3(%arg0: i32) -> (i32, i32) {
    %c0_i32 = arith.constant 0 : i32
    %c0_i32_0 = arith.constant 0 : i32
    %c0_i32_1 = arith.constant 0 : i32
    return %c0_i32, %c0_i32_0 : i32, i32
  }
  func.func @transform_4(%arg0: i32) -> (i32, i32) {
    %c0_i32 = arith.constant 0 : i32
    %c0_i32_0 = arith.constant 0 : i32
    %c0_i32_1 = arith.constant 0 : i32
    return %c0_i32, %c0_i32_0 : i32, i32
  }
  func.func @transform_5(%arg0: i32) -> (i32, i32) {
    %c0_i32 = arith.constant 0 : i32
    %c0_i32_0 = arith.constant 0 : i32
    %c0_i32_1 = arith.constant 0 : i32
    return %c0_i32, %c0_i32_0 : i32, i32
  }
  func.func @transform_6(%arg0: i32) -> (i32, i32) {
    %c0_i32 = arith.constant 0 : i32
    %c0_i32_0 = arith.constant 0 : i32
    %c0_i32_1 = arith.constant 0 : i32
    return %c0_i32, %c0_i32_0 : i32, i32
  }
  func.func @transform_7(%arg0: i32) -> (i32, i32) {
    %c0_i32 = arith.constant 0 : i32
    %c0_i32_0 = arith.constant 0 : i32
    return %arg0, %c0_i32 : i32, i32
  }
}

module attributes {stable_mosaic.version = 11 : i64} {
  func.func @_embed_pos_kernel(%arg0: i32, %arg1: memref<1x8x8xf32, #tpu.memory_space<vmem>>, %arg2: memref<8x64xf32, #tpu.memory_space<vmem>>, %arg3: memref<1x64xf32, #tpu.memory_space<vmem>>, %arg4: memref<1x8x64xf32, #tpu.memory_space<vmem>>) attributes {dimension_semantics = [#tpu.dimension_semantics<parallel>], iteration_bounds = array<i64: 2>, scalar_prefetch = 0 : i64, scratch_operands = 0 : i64, tpu.core_type = #tpu.core_type<tc>, window_params = [{transform_indices = @transform_0, window_bounds = array<i64: 1, 8, 8>}, {pipeline_mode = #tpu.pipeline_mode<synchronous>, transform_indices = @transform_1, window_bounds = array<i64: 8, 64>}, {pipeline_mode = #tpu.pipeline_mode<synchronous>, transform_indices = @transform_2, window_bounds = array<i64: 1, 64>}, {transform_indices = @transform_3, window_bounds = array<i64: 1, 8, 64>}]} {
    %c0 = arith.constant 0 : index
    %c0_0 = arith.constant 0 : index
    %c0_1 = arith.constant 0 : index
    %0 = vector.load %arg1[%c0, %c0_0, %c0_1] : memref<1x8x8xf32, #tpu.memory_space<vmem>>, vector<1x8x8xf32>
    %1 = vector.shape_cast %0 : vector<1x8x8xf32> to vector<8x8xf32>
    %c0_2 = arith.constant 0 : index
    %c0_3 = arith.constant 0 : index
    %2 = vector.load %arg2[%c0_2, %c0_3] : memref<8x64xf32, #tpu.memory_space<vmem>>, vector<8x64xf32>
    %cst = arith.constant dense<0.000000e+00> : vector<8x64xf32>
    %3 = tpu.matmul %1, %2, %cst {dimension_numbers = #tpu.dot_dimension_numbers<[1], [0], [0], [1], [0, 0, 1, 1], [], []>} : vector<8x8xf32>, vector<8x64xf32>, vector<8x64xf32> -> vector<8x64xf32>
    %c0_4 = arith.constant 0 : index
    %c0_5 = arith.constant 0 : index
    %4 = vector.load %arg3[%c0_4, %c0_5] : memref<1x64xf32, #tpu.memory_space<vmem>>, vector<1x64xf32>
    %5 = vector.broadcast %4 : vector<1x64xf32> to vector<8x64xf32>
    %6 = arith.addf %3, %5 : vector<8x64xf32>
    %7 = tpu.iota {dimensions = array<i32: 0>} : vector<8x1xi32>
    %8 = arith.sitofp %7 : vector<8x1xi32> to vector<8x1xf32>
    %9 = tpu.iota {dimensions = array<i32: 1>} : vector<1x32xi32>
    %10 = arith.sitofp %9 : vector<1x32xi32> to vector<1x32xf32>
    %cst_6 = arith.constant -0.297107756 : f32
    %11 = vector.broadcast %cst_6 : f32 to vector<1x32xf32>
    %12 = arith.mulf %10, %11 : vector<1x32xf32>
    %13 = math.exp %12 : vector<1x32xf32>
    %14 = vector.broadcast %8 : vector<8x1xf32> to vector<8x32xf32>
    %15 = vector.broadcast %13 : vector<1x32xf32> to vector<8x32xf32>
    %16 = arith.mulf %14, %15 : vector<8x32xf32>
    %17 = math.sin %16 : vector<8x32xf32>
    %18 = math.cos %16 : vector<8x32xf32>
    %19 = tpu.concatenate %17, %18 in 1 : vector<8x32xf32>, vector<8x32xf32> -> vector<8x64xf32>
    %20 = arith.addf %6, %19 : vector<8x64xf32>
    %c0_7 = arith.constant 0 : index
    %c0_8 = arith.constant 0 : index
    %c0_9 = arith.constant 0 : index
    %21 = vector.load %arg4[%c0_7, %c0_8, %c0_9] : memref<1x8x64xf32, #tpu.memory_space<vmem>>, vector<1x8x64xf32>
    %22 = vector.shape_cast %21 : vector<1x8x64xf32> to vector<8x64xf32>
    %23 = vector.shape_cast %20 : vector<8x64xf32> to vector<1x8x64xf32>
    tpu.vector_store %arg4[%c0_7, %c0_8, %c0_9], %23 {strides = array<i32>} : memref<1x8x64xf32, #tpu.memory_space<vmem>>, vector<1x8x64xf32>,
    return
  }
  func.func @transform_0(%arg0: i32) -> (i32, i32, i32) {
    %c0_i32 = arith.constant 0 : i32
    %c0_i32_0 = arith.constant 0 : i32
    %c0_i32_1 = arith.constant 0 : i32
    return %arg0, %c0_i32, %c0_i32_0 : i32, i32, i32
  }
  func.func @transform_1(%arg0: i32) -> (i32, i32) {
    %c0_i32 = arith.constant 0 : i32
    %c0_i32_0 = arith.constant 0 : i32
    %c0_i32_1 = arith.constant 0 : i32
    return %c0_i32, %c0_i32_0 : i32, i32
  }
  func.func @transform_2(%arg0: i32) -> (i32, i32) {
    %c0_i32 = arith.constant 0 : i32
    %c0_i32_0 = arith.constant 0 : i32
    %c0_i32_1 = arith.constant 0 : i32
    return %c0_i32, %c0_i32_0 : i32, i32
  }
  func.func @transform_3(%arg0: i32) -> (i32, i32, i32) {
    %c0_i32 = arith.constant 0 : i32
    %c0_i32_0 = arith.constant 0 : i32
    %c0_i32_1 = arith.constant 0 : i32
    return %arg0, %c0_i32, %c0_i32_0 : i32, i32, i32
  }
}

module attributes {stable_mosaic.version = 11 : i64} {
  func.func @_mha_ln_kernel(%arg0: i32, %arg1: memref<1x8x64xf32, #tpu.memory_space<vmem>>, %arg2: memref<1x16x64xf32, #tpu.memory_space<vmem>>, %arg3: memref<64x64xf32, #tpu.memory_space<vmem>>, %arg4: memref<1x64xf32, #tpu.memory_space<vmem>>, %arg5: memref<64x128xf32, #tpu.memory_space<vmem>>, %arg6: memref<1x128xf32, #tpu.memory_space<vmem>>, %arg7: memref<64x64xf32, #tpu.memory_space<vmem>>, %arg8: memref<1x64xf32, #tpu.memory_space<vmem>>, %arg9: memref<1x64xf32, #tpu.memory_space<vmem>>, %arg10: memref<1x64xf32, #tpu.memory_space<vmem>>, %arg11: memref<1x8x64xf32, #tpu.memory_space<vmem>>) attributes {dimension_semantics = [#tpu.dimension_semantics<parallel>], iteration_bounds = array<i64: 2>, scalar_prefetch = 0 : i64, scratch_operands = 0 : i64, tpu.core_type = #tpu.core_type<tc>, window_params = [{transform_indices = @transform_0, window_bounds = array<i64: 1, 8, 64>}, {transform_indices = @transform_1, window_bounds = array<i64: 1, 16, 64>}, {pipeline_mode = #tpu.pipeline_mode<synchronous>, transform_indices = @transform_2, window_bounds = array<i64: 64, 64>}, {pipeline_mode = #tpu.pipeline_mode<synchronous>, transform_indices = @transform_3, window_bounds = array<i64: 1, 64>}, {pipeline_mode = #tpu.pipeline_mode<synchronous>, transform_indices = @transform_4, window_bounds = array<i64: 64, 128>}, {pipeline_mode = #tpu.pipeline_mode<synchronous>, transform_indices = @transform_5, window_bounds = array<i64: 1, 128>}, {pipeline_mode = #tpu.pipeline_mode<synchronous>, transform_indices = @transform_6, window_bounds = array<i64: 64, 64>}, {pipeline_mode = #tpu.pipeline_mode<synchronous>, transform_indices = @transform_7, window_bounds = array<i64: 1, 64>}, {pipeline_mode = #tpu.pipeline_mode<synchronous>, transform_indices = @transform_8, window_bounds = array<i64: 1, 64>}, {pipeline_mode = #tpu.pipeline_mode<synchronous>, transform_indices = @transform_9, window_bounds = array<i64: 1, 64>}, {transform_indices = @transform_10, window_bounds = array<i64: 1, 8, 64>}]} {
    %c0 = arith.constant 0 : index
    %c0_0 = arith.constant 0 : index
    %c0_1 = arith.constant 0 : index
    %0 = vector.load %arg1[%c0, %c0_0, %c0_1] : memref<1x8x64xf32, #tpu.memory_space<vmem>>, vector<1x8x64xf32>
    %1 = vector.shape_cast %0 : vector<1x8x64xf32> to vector<8x64xf32>
    %c0_2 = arith.constant 0 : index
    %c0_3 = arith.constant 0 : index
    %c0_4 = arith.constant 0 : index
    %2 = vector.load %arg2[%c0_2, %c0_3, %c0_4] : memref<1x16x64xf32, #tpu.memory_space<vmem>>, vector<1x16x64xf32>
    %3 = vector.shape_cast %2 : vector<1x16x64xf32> to vector<16x64xf32>
    %c0_5 = arith.constant 0 : index
    %c0_6 = arith.constant 0 : index
    %4 = vector.load %arg3[%c0_5, %c0_6] : memref<64x64xf32, #tpu.memory_space<vmem>>, vector<64x64xf32>
    %cst = arith.constant dense<0.000000e+00> : vector<8x64xf32>
    %5 = tpu.matmul %1, %4, %cst {dimension_numbers = #tpu.dot_dimension_numbers<[1], [0], [0], [1], [0, 0, 1, 1], [], []>} : vector<8x64xf32>, vector<64x64xf32>, vector<8x64xf32> -> vector<8x64xf32>
    %c0_7 = arith.constant 0 : index
    %c0_8 = arith.constant 0 : index
    %6 = vector.load %arg4[%c0_7, %c0_8] : memref<1x64xf32, #tpu.memory_space<vmem>>, vector<1x64xf32>
    %7 = vector.broadcast %6 : vector<1x64xf32> to vector<8x64xf32>
    %8 = arith.addf %5, %7 : vector<8x64xf32>
    %c0_9 = arith.constant 0 : index
    %c0_10 = arith.constant 0 : index
    %9 = vector.load %arg5[%c0_9, %c0_10] : memref<64x128xf32, #tpu.memory_space<vmem>>, vector<64x128xf32>
    %cst_11 = arith.constant dense<0.000000e+00> : vector<16x128xf32>
    %10 = tpu.matmul %3, %9, %cst_11 {dimension_numbers = #tpu.dot_dimension_numbers<[1], [0], [0], [1], [0, 0, 1, 1], [], []>} : vector<16x64xf32>, vector<64x128xf32>, vector<16x128xf32> -> vector<16x128xf32>
    %c0_12 = arith.constant 0 : index
    %c0_13 = arith.constant 0 : index
    %11 = vector.load %arg6[%c0_12, %c0_13] : memref<1x128xf32, #tpu.memory_space<vmem>>, vector<1x128xf32>
    %12 = vector.broadcast %11 : vector<1x128xf32> to vector<16x128xf32>
    %13 = arith.addf %10, %12 : vector<16x128xf32>
    %14 = vector.extract_strided_slice %13 {offsets = [0, 0], sizes = [16, 64], strides = [1, 1]} : vector<16x128xf32> to vector<16x64xf32>
    %15 = vector.extract_strided_slice %13 {offsets = [0, 64], sizes = [16, 64], strides = [1, 1]} : vector<16x128xf32> to vector<16x64xf32>
    %16 = vector.extract_strided_slice %8 {offsets = [0, 0], sizes = [8, 16], strides = [1, 1]} : vector<8x64xf32> to vector<8x16xf32>
    %17 = vector.extract_strided_slice %14 {offsets = [0, 0], sizes = [16, 16], strides = [1, 1]} : vector<16x64xf32> to vector<16x16xf32>
    %18 = vector.extract_strided_slice %15 {offsets = [0, 0], sizes = [16, 16], strides = [1, 1]} : vector<16x64xf32> to vector<16x16xf32>
    %cst_14 = arith.constant dense<0.000000e+00> : vector<8x16xf32>
    %19 = tpu.matmul %16, %17, %cst_14 {dimension_numbers = #tpu.dot_dimension_numbers<[1], [1], [0], [0], [0, 0, 1, 0], [], []>} : vector<8x16xf32>, vector<16x16xf32>, vector<8x16xf32> -> vector<8x16xf32>
    %cst_15 = arith.constant 2.500000e-01 : f32
    %20 = vector.broadcast %cst_15 : f32 to vector<8x16xf32>
    %21 = arith.mulf %19, %20 : vector<8x16xf32>
    %cst_16 = arith.constant dense<0xFF800000> : vector<8xf32>
    %22 = vector.multi_reduction <maximumf>, %21, %cst_16 [1] : vector<8x16xf32> to vector<8xf32>
    %23 = vector.shape_cast %22 : vector<8xf32> to vector<8x1xf32>
    %24 = vector.broadcast %23 : vector<8x1xf32> to vector<8x16xf32>
    %25 = arith.subf %21, %24 : vector<8x16xf32>
    %26 = math.exp %25 : vector<8x16xf32>
    %cst_17 = arith.constant dense<0.000000e+00> : vector<8xf32>
    %27 = vector.multi_reduction <add>, %26, %cst_17 [1] : vector<8x16xf32> to vector<8xf32>
    %28 = vector.shape_cast %27 : vector<8xf32> to vector<8x1xf32>
    %29 = tpu.reciprocal %28 {approx = true} : vector<8x1xf32> -> vector<8x1xf32>
    %30 = arith.mulf %28, %29 : vector<8x1xf32>
    %cst_18 = arith.constant 2.000000e+00 : f32
    %31 = vector.broadcast %cst_18 : f32 to vector<8x1xf32>
    %32 = arith.subf %31, %30 : vector<8x1xf32>
    %33 = arith.mulf %29, %32 : vector<8x1xf32>
    %34 = vector.broadcast %33 : vector<8x1xf32> to vector<8x16xf32>
    %35 = arith.mulf %26, %34 : vector<8x16xf32>
    %cst_19 = arith.constant dense<0.000000e+00> : vector<8x16xf32>
    %36 = tpu.matmul %35, %18, %cst_19 {dimension_numbers = #tpu.dot_dimension_numbers<[1], [0], [0], [1], [0, 0, 1, 1], [], []>} : vector<8x16xf32>, vector<16x16xf32>, vector<8x16xf32> -> vector<8x16xf32>
    %37 = vector.extract_strided_slice %8 {offsets = [0, 16], sizes = [8, 16], strides = [1, 1]} : vector<8x64xf32> to vector<8x16xf32>
    %38 = vector.extract_strided_slice %14 {offsets = [0, 16], sizes = [16, 16], strides = [1, 1]} : vector<16x64xf32> to vector<16x16xf32>
    %39 = vector.extract_strided_slice %15 {offsets = [0, 16], sizes = [16, 16], strides = [1, 1]} : vector<16x64xf32> to vector<16x16xf32>
    %cst_20 = arith.constant dense<0.000000e+00> : vector<8x16xf32>
    %40 = tpu.matmul %37, %38, %cst_20 {dimension_numbers = #tpu.dot_dimension_numbers<[1], [1], [0], [0], [0, 0, 1, 0], [], []>} : vector<8x16xf32>, vector<16x16xf32>, vector<8x16xf32> -> vector<8x16xf32>
    %cst_21 = arith.constant 2.500000e-01 : f32
    %41 = vector.broadcast %cst_21 : f32 to vector<8x16xf32>
    %42 = arith.mulf %40, %41 : vector<8x16xf32>
    %cst_22 = arith.constant dense<0xFF800000> : vector<8xf32>
    %43 = vector.multi_reduction <maximumf>, %42, %cst_22 [1] : vector<8x16xf32> to vector<8xf32>
    %44 = vector.shape_cast %43 : vector<8xf32> to vector<8x1xf32>
    %45 = vector.broadcast %44 : vector<8x1xf32> to vector<8x16xf32>
    %46 = arith.subf %42, %45 : vector<8x16xf32>
    %47 = math.exp %46 : vector<8x16xf32>
    %cst_23 = arith.constant dense<0.000000e+00> : vector<8xf32>
    %48 = vector.multi_reduction <add>, %47, %cst_23 [1] : vector<8x16xf32> to vector<8xf32>
    %49 = vector.shape_cast %48 : vector<8xf32> to vector<8x1xf32>
    %50 = tpu.reciprocal %49 {approx = true} : vector<8x1xf32> -> vector<8x1xf32>
    %51 = arith.mulf %49, %50 : vector<8x1xf32>
    %cst_24 = arith.constant 2.000000e+00 : f32
    %52 = vector.broadcast %cst_24 : f32 to vector<8x1xf32>
    %53 = arith.subf %52, %51 : vector<8x1xf32>
    %54 = arith.mulf %50, %53 : vector<8x1xf32>
    %55 = vector.broadcast %54 : vector<8x1xf32> to vector<8x16xf32>
    %56 = arith.mulf %47, %55 : vector<8x16xf32>
    %cst_25 = arith.constant dense<0.000000e+00> : vector<8x16xf32>
    %57 = tpu.matmul %56, %39, %cst_25 {dimension_numbers = #tpu.dot_dimension_numbers<[1], [0], [0], [1], [0, 0, 1, 1], [], []>} : vector<8x16xf32>, vector<16x16xf32>, vector<8x16xf32> -> vector<8x16xf32>
    %58 = vector.extract_strided_slice %8 {offsets = [0, 32], sizes = [8, 16], strides = [1, 1]} : vector<8x64xf32> to vector<8x16xf32>
    %59 = vector.extract_strided_slice %14 {offsets = [0, 32], sizes = [16, 16], strides = [1, 1]} : vector<16x64xf32> to vector<16x16xf32>
    %60 = vector.extract_strided_slice %15 {offsets = [0, 32], sizes = [16, 16], strides = [1, 1]} : vector<16x64xf32> to vector<16x16xf32>
    %cst_26 = arith.constant dense<0.000000e+00> : vector<8x16xf32>
    %61 = tpu.matmul %58, %59, %cst_26 {dimension_numbers = #tpu.dot_dimension_numbers<[1], [1], [0], [0], [0, 0, 1, 0], [], []>} : vector<8x16xf32>, vector<16x16xf32>, vector<8x16xf32> -> vector<8x16xf32>
    %cst_27 = arith.constant 2.500000e-01 : f32
    %62 = vector.broadcast %cst_27 : f32 to vector<8x16xf32>
    %63 = arith.mulf %61, %62 : vector<8x16xf32>
    %cst_28 = arith.constant dense<0xFF800000> : vector<8xf32>
    %64 = vector.multi_reduction <maximumf>, %63, %cst_28 [1] : vector<8x16xf32> to vector<8xf32>
    %65 = vector.shape_cast %64 : vector<8xf32> to vector<8x1xf32>
    %66 = vector.broadcast %65 : vector<8x1xf32> to vector<8x16xf32>
    %67 = arith.subf %63, %66 : vector<8x16xf32>
    %68 = math.exp %67 : vector<8x16xf32>
    %cst_29 = arith.constant dense<0.000000e+00> : vector<8xf32>
    %69 = vector.multi_reduction <add>, %68, %cst_29 [1] : vector<8x16xf32> to vector<8xf32>
    %70 = vector.shape_cast %69 : vector<8xf32> to vector<8x1xf32>
    %71 = tpu.reciprocal %70 {approx = true} : vector<8x1xf32> -> vector<8x1xf32>
    %72 = arith.mulf %70, %71 : vector<8x1xf32>
    %cst_30 = arith.constant 2.000000e+00 : f32
    %73 = vector.broadcast %cst_30 : f32 to vector<8x1xf32>
    %74 = arith.subf %73, %72 : vector<8x1xf32>
    %75 = arith.mulf %71, %74 : vector<8x1xf32>
    %76 = vector.broadcast %75 : vector<8x1xf32> to vector<8x16xf32>
    %77 = arith.mulf %68, %76 : vector<8x16xf32>
    %cst_31 = arith.constant dense<0.000000e+00> : vector<8x16xf32>
    %78 = tpu.matmul %77, %60, %cst_31 {dimension_numbers = #tpu.dot_dimension_numbers<[1], [0], [0], [1], [0, 0, 1, 1], [], []>} : vector<8x16xf32>, vector<16x16xf32>, vector<8x16xf32> -> vector<8x16xf32>
    %79 = vector.extract_strided_slice %8 {offsets = [0, 48], sizes = [8, 16], strides = [1, 1]} : vector<8x64xf32> to vector<8x16xf32>
    %80 = vector.extract_strided_slice %14 {offsets = [0, 48], sizes = [16, 16], strides = [1, 1]} : vector<16x64xf32> to vector<16x16xf32>
    %81 = vector.extract_strided_slice %15 {offsets = [0, 48], sizes = [16, 16], strides = [1, 1]} : vector<16x64xf32> to vector<16x16xf32>
    %cst_32 = arith.constant dense<0.000000e+00> : vector<8x16xf32>
    %82 = tpu.matmul %79, %80, %cst_32 {dimension_numbers = #tpu.dot_dimension_numbers<[1], [1], [0], [0], [0, 0, 1, 0], [], []>} : vector<8x16xf32>, vector<16x16xf32>, vector<8x16xf32> -> vector<8x16xf32>
    %cst_33 = arith.constant 2.500000e-01 : f32
    %83 = vector.broadcast %cst_33 : f32 to vector<8x16xf32>
    %84 = arith.mulf %82, %83 : vector<8x16xf32>
    %cst_34 = arith.constant dense<0xFF800000> : vector<8xf32>
    %85 = vector.multi_reduction <maximumf>, %84, %cst_34 [1] : vector<8x16xf32> to vector<8xf32>
    %86 = vector.shape_cast %85 : vector<8xf32> to vector<8x1xf32>
    %87 = vector.broadcast %86 : vector<8x1xf32> to vector<8x16xf32>
    %88 = arith.subf %84, %87 : vector<8x16xf32>
    %89 = math.exp %88 : vector<8x16xf32>
    %cst_35 = arith.constant dense<0.000000e+00> : vector<8xf32>
    %90 = vector.multi_reduction <add>, %89, %cst_35 [1] : vector<8x16xf32> to vector<8xf32>
    %91 = vector.shape_cast %90 : vector<8xf32> to vector<8x1xf32>
    %92 = tpu.reciprocal %91 {approx = true} : vector<8x1xf32> -> vector<8x1xf32>
    %93 = arith.mulf %91, %92 : vector<8x1xf32>
    %cst_36 = arith.constant 2.000000e+00 : f32
    %94 = vector.broadcast %cst_36 : f32 to vector<8x1xf32>
    %95 = arith.subf %94, %93 : vector<8x1xf32>
    %96 = arith.mulf %92, %95 : vector<8x1xf32>
    %97 = vector.broadcast %96 : vector<8x1xf32> to vector<8x16xf32>
    %98 = arith.mulf %89, %97 : vector<8x16xf32>
    %cst_37 = arith.constant dense<0.000000e+00> : vector<8x16xf32>
    %99 = tpu.matmul %98, %81, %cst_37 {dimension_numbers = #tpu.dot_dimension_numbers<[1], [0], [0], [1], [0, 0, 1, 1], [], []>} : vector<8x16xf32>, vector<16x16xf32>, vector<8x16xf32> -> vector<8x16xf32>
    %100 = tpu.concatenate %36, %57, %78, %99 in 1 : vector<8x16xf32>, vector<8x16xf32>, vector<8x16xf32>, vector<8x16xf32> -> vector<8x64xf32>
    %c0_38 = arith.constant 0 : index
    %c0_39 = arith.constant 0 : index
    %101 = vector.load %arg7[%c0_38, %c0_39] : memref<64x64xf32, #tpu.memory_space<vmem>>, vector<64x64xf32>
    %cst_40 = arith.constant dense<0.000000e+00> : vector<8x64xf32>
    %102 = tpu.matmul %100, %101, %cst_40 {dimension_numbers = #tpu.dot_dimension_numbers<[1], [0], [0], [1], [0, 0, 1, 1], [], []>} : vector<8x64xf32>, vector<64x64xf32>, vector<8x64xf32> -> vector<8x64xf32>
    %c0_41 = arith.constant 0 : index
    %c0_42 = arith.constant 0 : index
    %103 = vector.load %arg8[%c0_41, %c0_42] : memref<1x64xf32, #tpu.memory_space<vmem>>, vector<1x64xf32>
    %104 = vector.broadcast %103 : vector<1x64xf32> to vector<8x64xf32>
    %105 = arith.addf %102, %104 : vector<8x64xf32>
    %106 = arith.addf %105, %1 : vector<8x64xf32>
    %cst_43 = arith.constant dense<0.000000e+00> : vector<8xf32>
    %107 = vector.multi_reduction <add>, %106, %cst_43 [1] : vector<8x64xf32> to vector<8xf32>
    %108 = vector.shape_cast %107 : vector<8xf32> to vector<8x1xf32>
    %cst_44 = arith.constant 6.400000e+01 : f32
    %109 = vector.broadcast %cst_44 : f32 to vector<8x1xf32>
    %110 = arith.divf %108, %109 : vector<8x1xf32>
    %111 = vector.broadcast %110 : vector<8x1xf32> to vector<8x64xf32>
    %112 = arith.subf %106, %111 : vector<8x64xf32>
    %113 = arith.mulf %112, %112 : vector<8x64xf32>
    %cst_45 = arith.constant dense<0.000000e+00> : vector<8xf32>
    %114 = vector.multi_reduction <add>, %113, %cst_45 [1] : vector<8x64xf32> to vector<8xf32>
    %115 = vector.shape_cast %114 : vector<8xf32> to vector<8x1xf32>
    %cst_46 = arith.constant 6.400000e+01 : f32
    %116 = vector.broadcast %cst_46 : f32 to vector<8x1xf32>
    %117 = arith.divf %115, %116 : vector<8x1xf32>
    %cst_47 = arith.constant 9.99999974E-6 : f32
    %118 = vector.broadcast %cst_47 : f32 to vector<8x1xf32>
    %119 = arith.addf %117, %118 : vector<8x1xf32>
    %120 = math.rsqrt %119 : vector<8x1xf32>
    %121 = vector.broadcast %120 : vector<8x1xf32> to vector<8x64xf32>
    %122 = arith.mulf %112, %121 : vector<8x64xf32>
    %c0_48 = arith.constant 0 : index
    %c0_49 = arith.constant 0 : index
    %123 = vector.load %arg9[%c0_48, %c0_49] : memref<1x64xf32, #tpu.memory_space<vmem>>, vector<1x64xf32>
    %124 = vector.broadcast %123 : vector<1x64xf32> to vector<8x64xf32>
    %125 = arith.mulf %122, %124 : vector<8x64xf32>
    %c0_50 = arith.constant 0 : index
    %c0_51 = arith.constant 0 : index
    %126 = vector.load %arg10[%c0_50, %c0_51] : memref<1x64xf32, #tpu.memory_space<vmem>>, vector<1x64xf32>
    %127 = vector.broadcast %126 : vector<1x64xf32> to vector<8x64xf32>
    %128 = arith.addf %125, %127 : vector<8x64xf32>
    %c0_52 = arith.constant 0 : index
    %c0_53 = arith.constant 0 : index
    %c0_54 = arith.constant 0 : index
    %129 = vector.load %arg11[%c0_52, %c0_53, %c0_54] : memref<1x8x64xf32, #tpu.memory_space<vmem>>, vector<1x8x64xf32>
    %130 = vector.shape_cast %129 : vector<1x8x64xf32> to vector<8x64xf32>
    %131 = vector.shape_cast %128 : vector<8x64xf32> to vector<1x8x64xf32>
    tpu.vector_store %arg11[%c0_52, %c0_53, %c0_54], %131 {strides = array<i32>} : memref<1x8x64xf32, #tpu.memory_space<vmem>>, vector<1x8x64xf32>,
    return
  }
  func.func @transform_0(%arg0: i32) -> (i32, i32, i32) {
    %c0_i32 = arith.constant 0 : i32
    %c0_i32_0 = arith.constant 0 : i32
    %c0_i32_1 = arith.constant 0 : i32
    return %arg0, %c0_i32, %c0_i32_0 : i32, i32, i32
  }
  func.func @transform_1(%arg0: i32) -> (i32, i32, i32) {
    %c0_i32 = arith.constant 0 : i32
    %c0_i32_0 = arith.constant 0 : i32
    %c0_i32_1 = arith.constant 0 : i32
    return %arg0, %c0_i32, %c0_i32_0 : i32, i32, i32
  }
  func.func @transform_2(%arg0: i32) -> (i32, i32) {
    %c0_i32 = arith.constant 0 : i32
    %c0_i32_0 = arith.constant 0 : i32
    %c0_i32_1 = arith.constant 0 : i32
    return %c0_i32, %c0_i32_0 : i32, i32
  }
  func.func @transform_3(%arg0: i32) -> (i32, i32) {
    %c0_i32 = arith.constant 0 : i32
    %c0_i32_0 = arith.constant 0 : i32
    %c0_i32_1 = arith.constant 0 : i32
    return %c0_i32, %c0_i32_0 : i32, i32
  }
  func.func @transform_4(%arg0: i32) -> (i32, i32) {
    %c0_i32 = arith.constant 0 : i32
    %c0_i32_0 = arith.constant 0 : i32
    %c0_i32_1 = arith.constant 0 : i32
    return %c0_i32, %c0_i32_0 : i32, i32
  }
  func.func @transform_5(%arg0: i32) -> (i32, i32) {
    %c0_i32 = arith.constant 0 : i32
    %c0_i32_0 = arith.constant 0 : i32
    %c0_i32_1 = arith.constant 0 : i32
    return %c0_i32, %c0_i32_0 : i32, i32
  }
  func.func @transform_6(%arg0: i32) -> (i32, i32) {
    %c0_i32 = arith.constant 0 : i32
    %c0_i32_0 = arith.constant 0 : i32
    %c0_i32_1 = arith.constant 0 : i32
    return %c0_i32, %c0_i32_0 : i32, i32
  }
  func.func @transform_7(%arg0: i32) -> (i32, i32) {
    %c0_i32 = arith.constant 0 : i32
    %c0_i32_0 = arith.constant 0 : i32
    %c0_i32_1 = arith.constant 0 : i32
    return %c0_i32, %c0_i32_0 : i32, i32
  }
  func.func @transform_8(%arg0: i32) -> (i32, i32) {
    %c0_i32 = arith.constant 0 : i32
    %c0_i32_0 = arith.constant 0 : i32
    %c0_i32_1 = arith.constant 0 : i32
    return %c0_i32, %c0_i32_0 : i32, i32
  }
  func.func @transform_9(%arg0: i32) -> (i32, i32) {
    %c0_i32 = arith.constant 0 : i32
    %c0_i32_0 = arith.constant 0 : i32
    %c0_i32_1 = arith.constant 0 : i32
    return %c0_i32, %c0_i32_0 : i32, i32
  }
  func.func @transform_10(%arg0: i32) -> (i32, i32, i32) {
    %c0_i32 = arith.constant 0 : i32
    %c0_i32_0 = arith.constant 0 : i32
    %c0_i32_1 = arith.constant 0 : i32
    return %arg0, %c0_i32, %c0_i32_0 : i32, i32, i32
  }
}

module attributes {stable_mosaic.version = 11 : i64} {
  func.func @_mha_ln_kernel(%arg0: i32, %arg1: memref<1x8x64xf32, #tpu.memory_space<vmem>>, %arg2: memref<1x8x64xf32, #tpu.memory_space<vmem>>, %arg3: memref<64x64xf32, #tpu.memory_space<vmem>>, %arg4: memref<1x64xf32, #tpu.memory_space<vmem>>, %arg5: memref<64x128xf32, #tpu.memory_space<vmem>>, %arg6: memref<1x128xf32, #tpu.memory_space<vmem>>, %arg7: memref<64x64xf32, #tpu.memory_space<vmem>>, %arg8: memref<1x64xf32, #tpu.memory_space<vmem>>, %arg9: memref<1x64xf32, #tpu.memory_space<vmem>>, %arg10: memref<1x64xf32, #tpu.memory_space<vmem>>, %arg11: memref<1x8x64xf32, #tpu.memory_space<vmem>>) attributes {dimension_semantics = [#tpu.dimension_semantics<parallel>], iteration_bounds = array<i64: 2>, scalar_prefetch = 0 : i64, scratch_operands = 0 : i64, tpu.core_type = #tpu.core_type<tc>, window_params = [{transform_indices = @transform_0, window_bounds = array<i64: 1, 8, 64>}, {transform_indices = @transform_1, window_bounds = array<i64: 1, 8, 64>}, {pipeline_mode = #tpu.pipeline_mode<synchronous>, transform_indices = @transform_2, window_bounds = array<i64: 64, 64>}, {pipeline_mode = #tpu.pipeline_mode<synchronous>, transform_indices = @transform_3, window_bounds = array<i64: 1, 64>}, {pipeline_mode = #tpu.pipeline_mode<synchronous>, transform_indices = @transform_4, window_bounds = array<i64: 64, 128>}, {pipeline_mode = #tpu.pipeline_mode<synchronous>, transform_indices = @transform_5, window_bounds = array<i64: 1, 128>}, {pipeline_mode = #tpu.pipeline_mode<synchronous>, transform_indices = @transform_6, window_bounds = array<i64: 64, 64>}, {pipeline_mode = #tpu.pipeline_mode<synchronous>, transform_indices = @transform_7, window_bounds = array<i64: 1, 64>}, {pipeline_mode = #tpu.pipeline_mode<synchronous>, transform_indices = @transform_8, window_bounds = array<i64: 1, 64>}, {pipeline_mode = #tpu.pipeline_mode<synchronous>, transform_indices = @transform_9, window_bounds = array<i64: 1, 64>}, {transform_indices = @transform_10, window_bounds = array<i64: 1, 8, 64>}]} {
    %c0 = arith.constant 0 : index
    %c0_0 = arith.constant 0 : index
    %c0_1 = arith.constant 0 : index
    %0 = vector.load %arg1[%c0, %c0_0, %c0_1] : memref<1x8x64xf32, #tpu.memory_space<vmem>>, vector<1x8x64xf32>
    %1 = vector.shape_cast %0 : vector<1x8x64xf32> to vector<8x64xf32>
    %c0_2 = arith.constant 0 : index
    %c0_3 = arith.constant 0 : index
    %c0_4 = arith.constant 0 : index
    %2 = vector.load %arg2[%c0_2, %c0_3, %c0_4] : memref<1x8x64xf32, #tpu.memory_space<vmem>>, vector<1x8x64xf32>
    %3 = vector.shape_cast %2 : vector<1x8x64xf32> to vector<8x64xf32>
    %c0_5 = arith.constant 0 : index
    %c0_6 = arith.constant 0 : index
    %4 = vector.load %arg3[%c0_5, %c0_6] : memref<64x64xf32, #tpu.memory_space<vmem>>, vector<64x64xf32>
    %cst = arith.constant dense<0.000000e+00> : vector<8x64xf32>
    %5 = tpu.matmul %1, %4, %cst {dimension_numbers = #tpu.dot_dimension_numbers<[1], [0], [0], [1], [0, 0, 1, 1], [], []>} : vector<8x64xf32>, vector<64x64xf32>, vector<8x64xf32> -> vector<8x64xf32>
    %c0_7 = arith.constant 0 : index
    %c0_8 = arith.constant 0 : index
    %6 = vector.load %arg4[%c0_7, %c0_8] : memref<1x64xf32, #tpu.memory_space<vmem>>, vector<1x64xf32>
    %7 = vector.broadcast %6 : vector<1x64xf32> to vector<8x64xf32>
    %8 = arith.addf %5, %7 : vector<8x64xf32>
    %c0_9 = arith.constant 0 : index
    %c0_10 = arith.constant 0 : index
    %9 = vector.load %arg5[%c0_9, %c0_10] : memref<64x128xf32, #tpu.memory_space<vmem>>, vector<64x128xf32>
    %cst_11 = arith.constant dense<0.000000e+00> : vector<8x128xf32>
    %10 = tpu.matmul %3, %9, %cst_11 {dimension_numbers = #tpu.dot_dimension_numbers<[1], [0], [0], [1], [0, 0, 1, 1], [], []>} : vector<8x64xf32>, vector<64x128xf32>, vector<8x128xf32> -> vector<8x128xf32>
    %c0_12 = arith.constant 0 : index
    %c0_13 = arith.constant 0 : index
    %11 = vector.load %arg6[%c0_12, %c0_13] : memref<1x128xf32, #tpu.memory_space<vmem>>, vector<1x128xf32>
    %12 = vector.broadcast %11 : vector<1x128xf32> to vector<8x128xf32>
    %13 = arith.addf %10, %12 : vector<8x128xf32>
    %14 = vector.extract_strided_slice %13 {offsets = [0, 0], sizes = [8, 64], strides = [1, 1]} : vector<8x128xf32> to vector<8x64xf32>
    %15 = vector.extract_strided_slice %13 {offsets = [0, 64], sizes = [8, 64], strides = [1, 1]} : vector<8x128xf32> to vector<8x64xf32>
    %16 = vector.extract_strided_slice %8 {offsets = [0, 0], sizes = [8, 16], strides = [1, 1]} : vector<8x64xf32> to vector<8x16xf32>
    %17 = vector.extract_strided_slice %14 {offsets = [0, 0], sizes = [8, 16], strides = [1, 1]} : vector<8x64xf32> to vector<8x16xf32>
    %18 = vector.extract_strided_slice %15 {offsets = [0, 0], sizes = [8, 16], strides = [1, 1]} : vector<8x64xf32> to vector<8x16xf32>
    %cst_14 = arith.constant dense<0.000000e+00> : vector<8x8xf32>
    %19 = tpu.matmul %16, %17, %cst_14 {dimension_numbers = #tpu.dot_dimension_numbers<[1], [1], [0], [0], [0, 0, 1, 0], [], []>} : vector<8x16xf32>, vector<8x16xf32>, vector<8x8xf32> -> vector<8x8xf32>
    %cst_15 = arith.constant 2.500000e-01 : f32
    %20 = vector.broadcast %cst_15 : f32 to vector<8x8xf32>
    %21 = arith.mulf %19, %20 : vector<8x8xf32>
    %22 = tpu.iota {dimensions = array<i32: 0>} : vector<8x8xi32>
    %23 = tpu.iota {dimensions = array<i32: 1>} : vector<8x8xi32>
    %24 = arith.cmpi sgt, %23, %22 : vector<8x8xi32>
    %cst_16 = arith.constant -1.000000e+30 : f32
    %25 = vector.broadcast %cst_16 : f32 to vector<8x8xf32>
    %26 = arith.select %24, %25, %21 : vector<8x8xi1>, vector<8x8xf32>
    %cst_17 = arith.constant dense<0xFF800000> : vector<8xf32>
    %27 = vector.multi_reduction <maximumf>, %26, %cst_17 [1] : vector<8x8xf32> to vector<8xf32>
    %28 = vector.shape_cast %27 : vector<8xf32> to vector<8x1xf32>
    %29 = vector.broadcast %28 : vector<8x1xf32> to vector<8x8xf32>
    %30 = arith.subf %26, %29 : vector<8x8xf32>
    %31 = math.exp %30 : vector<8x8xf32>
    %cst_18 = arith.constant dense<0.000000e+00> : vector<8xf32>
    %32 = vector.multi_reduction <add>, %31, %cst_18 [1] : vector<8x8xf32> to vector<8xf32>
    %33 = vector.shape_cast %32 : vector<8xf32> to vector<8x1xf32>
    %34 = tpu.reciprocal %33 {approx = true} : vector<8x1xf32> -> vector<8x1xf32>
    %35 = arith.mulf %33, %34 : vector<8x1xf32>
    %cst_19 = arith.constant 2.000000e+00 : f32
    %36 = vector.broadcast %cst_19 : f32 to vector<8x1xf32>
    %37 = arith.subf %36, %35 : vector<8x1xf32>
    %38 = arith.mulf %34, %37 : vector<8x1xf32>
    %39 = vector.broadcast %38 : vector<8x1xf32> to vector<8x8xf32>
    %40 = arith.mulf %31, %39 : vector<8x8xf32>
    %cst_20 = arith.constant dense<0.000000e+00> : vector<8x16xf32>
    %41 = tpu.matmul %40, %18, %cst_20 {dimension_numbers = #tpu.dot_dimension_numbers<[1], [0], [0], [1], [0, 0, 1, 1], [], []>} : vector<8x8xf32>, vector<8x16xf32>, vector<8x16xf32> -> vector<8x16xf32>
    %42 = vector.extract_strided_slice %8 {offsets = [0, 16], sizes = [8, 16], strides = [1, 1]} : vector<8x64xf32> to vector<8x16xf32>
    %43 = vector.extract_strided_slice %14 {offsets = [0, 16], sizes = [8, 16], strides = [1, 1]} : vector<8x64xf32> to vector<8x16xf32>
    %44 = vector.extract_strided_slice %15 {offsets = [0, 16], sizes = [8, 16], strides = [1, 1]} : vector<8x64xf32> to vector<8x16xf32>
    %cst_21 = arith.constant dense<0.000000e+00> : vector<8x8xf32>
    %45 = tpu.matmul %42, %43, %cst_21 {dimension_numbers = #tpu.dot_dimension_numbers<[1], [1], [0], [0], [0, 0, 1, 0], [], []>} : vector<8x16xf32>, vector<8x16xf32>, vector<8x8xf32> -> vector<8x8xf32>
    %cst_22 = arith.constant 2.500000e-01 : f32
    %46 = vector.broadcast %cst_22 : f32 to vector<8x8xf32>
    %47 = arith.mulf %45, %46 : vector<8x8xf32>
    %48 = tpu.iota {dimensions = array<i32: 0>} : vector<8x8xi32>
    %49 = tpu.iota {dimensions = array<i32: 1>} : vector<8x8xi32>
    %50 = arith.cmpi sgt, %49, %48 : vector<8x8xi32>
    %cst_23 = arith.constant -1.000000e+30 : f32
    %51 = vector.broadcast %cst_23 : f32 to vector<8x8xf32>
    %52 = arith.select %50, %51, %47 : vector<8x8xi1>, vector<8x8xf32>
    %cst_24 = arith.constant dense<0xFF800000> : vector<8xf32>
    %53 = vector.multi_reduction <maximumf>, %52, %cst_24 [1] : vector<8x8xf32> to vector<8xf32>
    %54 = vector.shape_cast %53 : vector<8xf32> to vector<8x1xf32>
    %55 = vector.broadcast %54 : vector<8x1xf32> to vector<8x8xf32>
    %56 = arith.subf %52, %55 : vector<8x8xf32>
    %57 = math.exp %56 : vector<8x8xf32>
    %cst_25 = arith.constant dense<0.000000e+00> : vector<8xf32>
    %58 = vector.multi_reduction <add>, %57, %cst_25 [1] : vector<8x8xf32> to vector<8xf32>
    %59 = vector.shape_cast %58 : vector<8xf32> to vector<8x1xf32>
    %60 = tpu.reciprocal %59 {approx = true} : vector<8x1xf32> -> vector<8x1xf32>
    %61 = arith.mulf %59, %60 : vector<8x1xf32>
    %cst_26 = arith.constant 2.000000e+00 : f32
    %62 = vector.broadcast %cst_26 : f32 to vector<8x1xf32>
    %63 = arith.subf %62, %61 : vector<8x1xf32>
    %64 = arith.mulf %60, %63 : vector<8x1xf32>
    %65 = vector.broadcast %64 : vector<8x1xf32> to vector<8x8xf32>
    %66 = arith.mulf %57, %65 : vector<8x8xf32>
    %cst_27 = arith.constant dense<0.000000e+00> : vector<8x16xf32>
    %67 = tpu.matmul %66, %44, %cst_27 {dimension_numbers = #tpu.dot_dimension_numbers<[1], [0], [0], [1], [0, 0, 1, 1], [], []>} : vector<8x8xf32>, vector<8x16xf32>, vector<8x16xf32> -> vector<8x16xf32>
    %68 = vector.extract_strided_slice %8 {offsets = [0, 32], sizes = [8, 16], strides = [1, 1]} : vector<8x64xf32> to vector<8x16xf32>
    %69 = vector.extract_strided_slice %14 {offsets = [0, 32], sizes = [8, 16], strides = [1, 1]} : vector<8x64xf32> to vector<8x16xf32>
    %70 = vector.extract_strided_slice %15 {offsets = [0, 32], sizes = [8, 16], strides = [1, 1]} : vector<8x64xf32> to vector<8x16xf32>
    %cst_28 = arith.constant dense<0.000000e+00> : vector<8x8xf32>
    %71 = tpu.matmul %68, %69, %cst_28 {dimension_numbers = #tpu.dot_dimension_numbers<[1], [1], [0], [0], [0, 0, 1, 0], [], []>} : vector<8x16xf32>, vector<8x16xf32>, vector<8x8xf32> -> vector<8x8xf32>
    %cst_29 = arith.constant 2.500000e-01 : f32
    %72 = vector.broadcast %cst_29 : f32 to vector<8x8xf32>
    %73 = arith.mulf %71, %72 : vector<8x8xf32>
    %74 = tpu.iota {dimensions = array<i32: 0>} : vector<8x8xi32>
    %75 = tpu.iota {dimensions = array<i32: 1>} : vector<8x8xi32>
    %76 = arith.cmpi sgt, %75, %74 : vector<8x8xi32>
    %cst_30 = arith.constant -1.000000e+30 : f32
    %77 = vector.broadcast %cst_30 : f32 to vector<8x8xf32>
    %78 = arith.select %76, %77, %73 : vector<8x8xi1>, vector<8x8xf32>
    %cst_31 = arith.constant dense<0xFF800000> : vector<8xf32>
    %79 = vector.multi_reduction <maximumf>, %78, %cst_31 [1] : vector<8x8xf32> to vector<8xf32>
    %80 = vector.shape_cast %79 : vector<8xf32> to vector<8x1xf32>
    %81 = vector.broadcast %80 : vector<8x1xf32> to vector<8x8xf32>
    %82 = arith.subf %78, %81 : vector<8x8xf32>
    %83 = math.exp %82 : vector<8x8xf32>
    %cst_32 = arith.constant dense<0.000000e+00> : vector<8xf32>
    %84 = vector.multi_reduction <add>, %83, %cst_32 [1] : vector<8x8xf32> to vector<8xf32>
    %85 = vector.shape_cast %84 : vector<8xf32> to vector<8x1xf32>
    %86 = tpu.reciprocal %85 {approx = true} : vector<8x1xf32> -> vector<8x1xf32>
    %87 = arith.mulf %85, %86 : vector<8x1xf32>
    %cst_33 = arith.constant 2.000000e+00 : f32
    %88 = vector.broadcast %cst_33 : f32 to vector<8x1xf32>
    %89 = arith.subf %88, %87 : vector<8x1xf32>
    %90 = arith.mulf %86, %89 : vector<8x1xf32>
    %91 = vector.broadcast %90 : vector<8x1xf32> to vector<8x8xf32>
    %92 = arith.mulf %83, %91 : vector<8x8xf32>
    %cst_34 = arith.constant dense<0.000000e+00> : vector<8x16xf32>
    %93 = tpu.matmul %92, %70, %cst_34 {dimension_numbers = #tpu.dot_dimension_numbers<[1], [0], [0], [1], [0, 0, 1, 1], [], []>} : vector<8x8xf32>, vector<8x16xf32>, vector<8x16xf32> -> vector<8x16xf32>
    %94 = vector.extract_strided_slice %8 {offsets = [0, 48], sizes = [8, 16], strides = [1, 1]} : vector<8x64xf32> to vector<8x16xf32>
    %95 = vector.extract_strided_slice %14 {offsets = [0, 48], sizes = [8, 16], strides = [1, 1]} : vector<8x64xf32> to vector<8x16xf32>
    %96 = vector.extract_strided_slice %15 {offsets = [0, 48], sizes = [8, 16], strides = [1, 1]} : vector<8x64xf32> to vector<8x16xf32>
    %cst_35 = arith.constant dense<0.000000e+00> : vector<8x8xf32>
    %97 = tpu.matmul %94, %95, %cst_35 {dimension_numbers = #tpu.dot_dimension_numbers<[1], [1], [0], [0], [0, 0, 1, 0], [], []>} : vector<8x16xf32>, vector<8x16xf32>, vector<8x8xf32> -> vector<8x8xf32>
    %cst_36 = arith.constant 2.500000e-01 : f32
    %98 = vector.broadcast %cst_36 : f32 to vector<8x8xf32>
    %99 = arith.mulf %97, %98 : vector<8x8xf32>
    %100 = tpu.iota {dimensions = array<i32: 0>} : vector<8x8xi32>
    %101 = tpu.iota {dimensions = array<i32: 1>} : vector<8x8xi32>
    %102 = arith.cmpi sgt, %101, %100 : vector<8x8xi32>
    %cst_37 = arith.constant -1.000000e+30 : f32
    %103 = vector.broadcast %cst_37 : f32 to vector<8x8xf32>
    %104 = arith.select %102, %103, %99 : vector<8x8xi1>, vector<8x8xf32>
    %cst_38 = arith.constant dense<0xFF800000> : vector<8xf32>
    %105 = vector.multi_reduction <maximumf>, %104, %cst_38 [1] : vector<8x8xf32> to vector<8xf32>
    %106 = vector.shape_cast %105 : vector<8xf32> to vector<8x1xf32>
    %107 = vector.broadcast %106 : vector<8x1xf32> to vector<8x8xf32>
    %108 = arith.subf %104, %107 : vector<8x8xf32>
    %109 = math.exp %108 : vector<8x8xf32>
    %cst_39 = arith.constant dense<0.000000e+00> : vector<8xf32>
    %110 = vector.multi_reduction <add>, %109, %cst_39 [1] : vector<8x8xf32> to vector<8xf32>
    %111 = vector.shape_cast %110 : vector<8xf32> to vector<8x1xf32>
    %112 = tpu.reciprocal %111 {approx = true} : vector<8x1xf32> -> vector<8x1xf32>
    %113 = arith.mulf %111, %112 : vector<8x1xf32>
    %cst_40 = arith.constant 2.000000e+00 : f32
    %114 = vector.broadcast %cst_40 : f32 to vector<8x1xf32>
    %115 = arith.subf %114, %113 : vector<8x1xf32>
    %116 = arith.mulf %112, %115 : vector<8x1xf32>
    %117 = vector.broadcast %116 : vector<8x1xf32> to vector<8x8xf32>
    %118 = arith.mulf %109, %117 : vector<8x8xf32>
    %cst_41 = arith.constant dense<0.000000e+00> : vector<8x16xf32>
    %119 = tpu.matmul %118, %96, %cst_41 {dimension_numbers = #tpu.dot_dimension_numbers<[1], [0], [0], [1], [0, 0, 1, 1], [], []>} : vector<8x8xf32>, vector<8x16xf32>, vector<8x16xf32> -> vector<8x16xf32>
    %120 = tpu.concatenate %41, %67, %93, %119 in 1 : vector<8x16xf32>, vector<8x16xf32>, vector<8x16xf32>, vector<8x16xf32> -> vector<8x64xf32>
    %c0_42 = arith.constant 0 : index
    %c0_43 = arith.constant 0 : index
    %121 = vector.load %arg7[%c0_42, %c0_43] : memref<64x64xf32, #tpu.memory_space<vmem>>, vector<64x64xf32>
    %cst_44 = arith.constant dense<0.000000e+00> : vector<8x64xf32>
    %122 = tpu.matmul %120, %121, %cst_44 {dimension_numbers = #tpu.dot_dimension_numbers<[1], [0], [0], [1], [0, 0, 1, 1], [], []>} : vector<8x64xf32>, vector<64x64xf32>, vector<8x64xf32> -> vector<8x64xf32>
    %c0_45 = arith.constant 0 : index
    %c0_46 = arith.constant 0 : index
    %123 = vector.load %arg8[%c0_45, %c0_46] : memref<1x64xf32, #tpu.memory_space<vmem>>, vector<1x64xf32>
    %124 = vector.broadcast %123 : vector<1x64xf32> to vector<8x64xf32>
    %125 = arith.addf %122, %124 : vector<8x64xf32>
    %126 = arith.addf %125, %1 : vector<8x64xf32>
    %cst_47 = arith.constant dense<0.000000e+00> : vector<8xf32>
    %127 = vector.multi_reduction <add>, %126, %cst_47 [1] : vector<8x64xf32> to vector<8xf32>
    %128 = vector.shape_cast %127 : vector<8xf32> to vector<8x1xf32>
    %cst_48 = arith.constant 6.400000e+01 : f32
    %129 = vector.broadcast %cst_48 : f32 to vector<8x1xf32>
    %130 = arith.divf %128, %129 : vector<8x1xf32>
    %131 = vector.broadcast %130 : vector<8x1xf32> to vector<8x64xf32>
    %132 = arith.subf %126, %131 : vector<8x64xf32>
    %133 = arith.mulf %132, %132 : vector<8x64xf32>
    %cst_49 = arith.constant dense<0.000000e+00> : vector<8xf32>
    %134 = vector.multi_reduction <add>, %133, %cst_49 [1] : vector<8x64xf32> to vector<8xf32>
    %135 = vector.shape_cast %134 : vector<8xf32> to vector<8x1xf32>
    %cst_50 = arith.constant 6.400000e+01 : f32
    %136 = vector.broadcast %cst_50 : f32 to vector<8x1xf32>
    %137 = arith.divf %135, %136 : vector<8x1xf32>
    %cst_51 = arith.constant 9.99999974E-6 : f32
    %138 = vector.broadcast %cst_51 : f32 to vector<8x1xf32>
    %139 = arith.addf %137, %138 : vector<8x1xf32>
    %140 = math.rsqrt %139 : vector<8x1xf32>
    %141 = vector.broadcast %140 : vector<8x1xf32> to vector<8x64xf32>
    %142 = arith.mulf %132, %141 : vector<8x64xf32>
    %c0_52 = arith.constant 0 : index
    %c0_53 = arith.constant 0 : index
    %143 = vector.load %arg9[%c0_52, %c0_53] : memref<1x64xf32, #tpu.memory_space<vmem>>, vector<1x64xf32>
    %144 = vector.broadcast %143 : vector<1x64xf32> to vector<8x64xf32>
    %145 = arith.mulf %142, %144 : vector<8x64xf32>
    %c0_54 = arith.constant 0 : index
    %c0_55 = arith.constant 0 : index
    %146 = vector.load %arg10[%c0_54, %c0_55] : memref<1x64xf32, #tpu.memory_space<vmem>>, vector<1x64xf32>
    %147 = vector.broadcast %146 : vector<1x64xf32> to vector<8x64xf32>
    %148 = arith.addf %145, %147 : vector<8x64xf32>
    %c0_56 = arith.constant 0 : index
    %c0_57 = arith.constant 0 : index
    %c0_58 = arith.constant 0 : index
    %149 = vector.load %arg11[%c0_56, %c0_57, %c0_58] : memref<1x8x64xf32, #tpu.memory_space<vmem>>, vector<1x8x64xf32>
    %150 = vector.shape_cast %149 : vector<1x8x64xf32> to vector<8x64xf32>
    %151 = vector.shape_cast %148 : vector<8x64xf32> to vector<1x8x64xf32>
    tpu.vector_store %arg11[%c0_56, %c0_57, %c0_58], %151 {strides = array<i32>} : memref<1x8x64xf32, #tpu.memory_space<vmem>>, vector<1x8x64xf32>,
    return
  }
  func.func @transform_0(%arg0: i32) -> (i32, i32, i32) {
    %c0_i32 = arith.constant 0 : i32
    %c0_i32_0 = arith.constant 0 : i32
    %c0_i32_1 = arith.constant 0 : i32
    return %arg0, %c0_i32, %c0_i32_0 : i32, i32, i32
  }
  func.func @transform_1(%arg0: i32) -> (i32, i32, i32) {
    %c0_i32 = arith.constant 0 : i32
    %c0_i32_0 = arith.constant 0 : i32
    %c0_i32_1 = arith.constant 0 : i32
    return %arg0, %c0_i32, %c0_i32_0 : i32, i32, i32
  }
  func.func @transform_2(%arg0: i32) -> (i32, i32) {
    %c0_i32 = arith.constant 0 : i32
    %c0_i32_0 = arith.constant 0 : i32
    %c0_i32_1 = arith.constant 0 : i32
    return %c0_i32, %c0_i32_0 : i32, i32
  }
  func.func @transform_3(%arg0: i32) -> (i32, i32) {
    %c0_i32 = arith.constant 0 : i32
    %c0_i32_0 = arith.constant 0 : i32
    %c0_i32_1 = arith.constant 0 : i32
    return %c0_i32, %c0_i32_0 : i32, i32
  }
  func.func @transform_4(%arg0: i32) -> (i32, i32) {
    %c0_i32 = arith.constant 0 : i32
    %c0_i32_0 = arith.constant 0 : i32
    %c0_i32_1 = arith.constant 0 : i32
    return %c0_i32, %c0_i32_0 : i32, i32
  }
  func.func @transform_5(%arg0: i32) -> (i32, i32) {
    %c0_i32 = arith.constant 0 : i32
    %c0_i32_0 = arith.constant 0 : i32
    %c0_i32_1 = arith.constant 0 : i32
    return %c0_i32, %c0_i32_0 : i32, i32
  }
  func.func @transform_6(%arg0: i32) -> (i32, i32) {
    %c0_i32 = arith.constant 0 : i32
    %c0_i32_0 = arith.constant 0 : i32
    %c0_i32_1 = arith.constant 0 : i32
    return %c0_i32, %c0_i32_0 : i32, i32
  }
  func.func @transform_7(%arg0: i32) -> (i32, i32) {
    %c0_i32 = arith.constant 0 : i32
    %c0_i32_0 = arith.constant 0 : i32
    %c0_i32_1 = arith.constant 0 : i32
    return %c0_i32, %c0_i32_0 : i32, i32
  }
  func.func @transform_8(%arg0: i32) -> (i32, i32) {
    %c0_i32 = arith.constant 0 : i32
    %c0_i32_0 = arith.constant 0 : i32
    %c0_i32_1 = arith.constant 0 : i32
    return %c0_i32, %c0_i32_0 : i32, i32
  }
  func.func @transform_9(%arg0: i32) -> (i32, i32) {
    %c0_i32 = arith.constant 0 : i32
    %c0_i32_0 = arith.constant 0 : i32
    %c0_i32_1 = arith.constant 0 : i32
    return %c0_i32, %c0_i32_0 : i32, i32
  }
  func.func @transform_10(%arg0: i32) -> (i32, i32, i32) {
    %c0_i32 = arith.constant 0 : i32
    %c0_i32_0 = arith.constant 0 : i32
    %c0_i32_1 = arith.constant 0 : i32
    return %arg0, %c0_i32, %c0_i32_0 : i32, i32, i32
  }
}

module attributes {stable_mosaic.version = 11 : i64} {
  func.func @_mlp_ln_kernel(%arg0: i32, %arg1: memref<8x64xf32, #tpu.memory_space<vmem>>, %arg2: memref<64x256xf32, #tpu.memory_space<vmem>>, %arg3: memref<1x256xf32, #tpu.memory_space<vmem>>, %arg4: memref<256x64xf32, #tpu.memory_space<vmem>>, %arg5: memref<1x64xf32, #tpu.memory_space<vmem>>, %arg6: memref<1x64xf32, #tpu.memory_space<vmem>>, %arg7: memref<1x64xf32, #tpu.memory_space<vmem>>, %arg8: memref<8x64xf32, #tpu.memory_space<vmem>>) attributes {dimension_semantics = [#tpu.dimension_semantics<parallel>], iteration_bounds = array<i64: 2>, scalar_prefetch = 0 : i64, scratch_operands = 0 : i64, tpu.core_type = #tpu.core_type<tc>, window_params = [{transform_indices = @transform_0, window_bounds = array<i64: 8, 64>}, {pipeline_mode = #tpu.pipeline_mode<synchronous>, transform_indices = @transform_1, window_bounds = array<i64: 64, 256>}, {pipeline_mode = #tpu.pipeline_mode<synchronous>, transform_indices = @transform_2, window_bounds = array<i64: 1, 256>}, {pipeline_mode = #tpu.pipeline_mode<synchronous>, transform_indices = @transform_3, window_bounds = array<i64: 256, 64>}, {pipeline_mode = #tpu.pipeline_mode<synchronous>, transform_indices = @transform_4, window_bounds = array<i64: 1, 64>}, {pipeline_mode = #tpu.pipeline_mode<synchronous>, transform_indices = @transform_5, window_bounds = array<i64: 1, 64>}, {pipeline_mode = #tpu.pipeline_mode<synchronous>, transform_indices = @transform_6, window_bounds = array<i64: 1, 64>}, {transform_indices = @transform_7, window_bounds = array<i64: 8, 64>}]} {
    %c0 = arith.constant 0 : index
    %c0_0 = arith.constant 0 : index
    %0 = vector.load %arg1[%c0, %c0_0] : memref<8x64xf32, #tpu.memory_space<vmem>>, vector<8x64xf32>
    %c0_1 = arith.constant 0 : index
    %c0_2 = arith.constant 0 : index
    %1 = vector.load %arg2[%c0_1, %c0_2] : memref<64x256xf32, #tpu.memory_space<vmem>>, vector<64x256xf32>
    %cst = arith.constant dense<0.000000e+00> : vector<8x256xf32>
    %2 = tpu.matmul %0, %1, %cst {dimension_numbers = #tpu.dot_dimension_numbers<[1], [0], [0], [1], [0, 0, 1, 1], [], []>} : vector<8x64xf32>, vector<64x256xf32>, vector<8x256xf32> -> vector<8x256xf32>
    %c0_3 = arith.constant 0 : index
    %c0_4 = arith.constant 0 : index
    %3 = vector.load %arg3[%c0_3, %c0_4] : memref<1x256xf32, #tpu.memory_space<vmem>>, vector<1x256xf32>
    %4 = vector.broadcast %3 : vector<1x256xf32> to vector<8x256xf32>
    %5 = arith.addf %2, %4 : vector<8x256xf32>
    %cst_5 = arith.constant 0.000000e+00 : f32
    %6 = vector.broadcast %cst_5 : f32 to vector<8x256xf32>
    %7 = arith.cmpf ogt, %5, %6 : vector<8x256xf32>
    %cst_6 = arith.constant 0.000000e+00 : f32
    %8 = vector.broadcast %cst_6 : f32 to vector<8x256xf32>
    %9 = arith.minimumf %5, %8 : vector<8x256xf32>
    %10 = math.exp %9 : vector<8x256xf32>
    %cst_7 = arith.constant 1.000000e+00 : f32
    %11 = vector.broadcast %cst_7 : f32 to vector<8x256xf32>
    %12 = arith.subf %10, %11 : vector<8x256xf32>
    %13 = arith.select %7, %5, %12 : vector<8x256xi1>, vector<8x256xf32>
    %c0_8 = arith.constant 0 : index
    %c0_9 = arith.constant 0 : index
    %14 = vector.load %arg4[%c0_8, %c0_9] : memref<256x64xf32, #tpu.memory_space<vmem>>, vector<256x64xf32>
    %cst_10 = arith.constant dense<0.000000e+00> : vector<8x64xf32>
    %15 = tpu.matmul %13, %14, %cst_10 {dimension_numbers = #tpu.dot_dimension_numbers<[1], [0], [0], [1], [0, 0, 1, 1], [], []>} : vector<8x256xf32>, vector<256x64xf32>, vector<8x64xf32> -> vector<8x64xf32>
    %c0_11 = arith.constant 0 : index
    %c0_12 = arith.constant 0 : index
    %16 = vector.load %arg5[%c0_11, %c0_12] : memref<1x64xf32, #tpu.memory_space<vmem>>, vector<1x64xf32>
    %17 = vector.broadcast %16 : vector<1x64xf32> to vector<8x64xf32>
    %18 = arith.addf %15, %17 : vector<8x64xf32>
    %19 = arith.addf %18, %0 : vector<8x64xf32>
    %cst_13 = arith.constant dense<0.000000e+00> : vector<8xf32>
    %20 = vector.multi_reduction <add>, %19, %cst_13 [1] : vector<8x64xf32> to vector<8xf32>
    %21 = vector.shape_cast %20 : vector<8xf32> to vector<8x1xf32>
    %cst_14 = arith.constant 6.400000e+01 : f32
    %22 = vector.broadcast %cst_14 : f32 to vector<8x1xf32>
    %23 = arith.divf %21, %22 : vector<8x1xf32>
    %24 = vector.broadcast %23 : vector<8x1xf32> to vector<8x64xf32>
    %25 = arith.subf %19, %24 : vector<8x64xf32>
    %26 = arith.mulf %25, %25 : vector<8x64xf32>
    %cst_15 = arith.constant dense<0.000000e+00> : vector<8xf32>
    %27 = vector.multi_reduction <add>, %26, %cst_15 [1] : vector<8x64xf32> to vector<8xf32>
    %28 = vector.shape_cast %27 : vector<8xf32> to vector<8x1xf32>
    %cst_16 = arith.constant 6.400000e+01 : f32
    %29 = vector.broadcast %cst_16 : f32 to vector<8x1xf32>
    %30 = arith.divf %28, %29 : vector<8x1xf32>
    %cst_17 = arith.constant 9.99999974E-6 : f32
    %31 = vector.broadcast %cst_17 : f32 to vector<8x1xf32>
    %32 = arith.addf %30, %31 : vector<8x1xf32>
    %33 = math.rsqrt %32 : vector<8x1xf32>
    %34 = vector.broadcast %33 : vector<8x1xf32> to vector<8x64xf32>
    %35 = arith.mulf %25, %34 : vector<8x64xf32>
    %c0_18 = arith.constant 0 : index
    %c0_19 = arith.constant 0 : index
    %36 = vector.load %arg6[%c0_18, %c0_19] : memref<1x64xf32, #tpu.memory_space<vmem>>, vector<1x64xf32>
    %37 = vector.broadcast %36 : vector<1x64xf32> to vector<8x64xf32>
    %38 = arith.mulf %35, %37 : vector<8x64xf32>
    %c0_20 = arith.constant 0 : index
    %c0_21 = arith.constant 0 : index
    %39 = vector.load %arg7[%c0_20, %c0_21] : memref<1x64xf32, #tpu.memory_space<vmem>>, vector<1x64xf32>
    %40 = vector.broadcast %39 : vector<1x64xf32> to vector<8x64xf32>
    %41 = arith.addf %38, %40 : vector<8x64xf32>
    %c0_22 = arith.constant 0 : index
    %c0_23 = arith.constant 0 : index
    %42 = vector.load %arg8[%c0_22, %c0_23] : memref<8x64xf32, #tpu.memory_space<vmem>>, vector<8x64xf32>
    tpu.vector_store %arg8[%c0_22, %c0_23], %41 {strides = array<i32>} : memref<8x64xf32, #tpu.memory_space<vmem>>, vector<8x64xf32>,
    return
  }
  func.func @transform_0(%arg0: i32) -> (i32, i32) {
    %c0_i32 = arith.constant 0 : i32
    %c0_i32_0 = arith.constant 0 : i32
    return %arg0, %c0_i32 : i32, i32
  }
  func.func @transform_1(%arg0: i32) -> (i32, i32) {
    %c0_i32 = arith.constant 0 : i32
    %c0_i32_0 = arith.constant 0 : i32
    %c0_i32_1 = arith.constant 0 : i32
    return %c0_i32, %c0_i32_0 : i32, i32
  }
  func.func @transform_2(%arg0: i32) -> (i32, i32) {
    %c0_i32 = arith.constant 0 : i32
    %c0_i32_0 = arith.constant 0 : i32
    %c0_i32_1 = arith.constant 0 : i32
    return %c0_i32, %c0_i32_0 : i32, i32
  }
  func.func @transform_3(%arg0: i32) -> (i32, i32) {
    %c0_i32 = arith.constant 0 : i32
    %c0_i32_0 = arith.constant 0 : i32
    %c0_i32_1 = arith.constant 0 : i32
    return %c0_i32, %c0_i32_0 : i32, i32
  }
  func.func @transform_4(%arg0: i32) -> (i32, i32) {
    %c0_i32 = arith.constant 0 : i32
    %c0_i32_0 = arith.constant 0 : i32
    %c0_i32_1 = arith.constant 0 : i32
    return %c0_i32, %c0_i32_0 : i32, i32
  }
  func.func @transform_5(%arg0: i32) -> (i32, i32) {
    %c0_i32 = arith.constant 0 : i32
    %c0_i32_0 = arith.constant 0 : i32
    %c0_i32_1 = arith.constant 0 : i32
    return %c0_i32, %c0_i32_0 : i32, i32
  }
  func.func @transform_6(%arg0: i32) -> (i32, i32) {
    %c0_i32 = arith.constant 0 : i32
    %c0_i32_0 = arith.constant 0 : i32
    %c0_i32_1 = arith.constant 0 : i32
    return %c0_i32, %c0_i32_0 : i32, i32
  }
  func.func @transform_7(%arg0: i32) -> (i32, i32) {
    %c0_i32 = arith.constant 0 : i32
    %c0_i32_0 = arith.constant 0 : i32
    return %arg0, %c0_i32 : i32, i32
  }
}

module attributes {stable_mosaic.version = 11 : i64} {
  func.func @_linear_kernel(%arg0: i32, %arg1: memref<8x64xf32, #tpu.memory_space<vmem>>, %arg2: memref<64x128xf32, #tpu.memory_space<vmem>>, %arg3: memref<1x128xf32, #tpu.memory_space<vmem>>, %arg4: memref<8x128xf32, #tpu.memory_space<vmem>>) attributes {dimension_semantics = [#tpu.dimension_semantics<parallel>], iteration_bounds = array<i64: 2>, scalar_prefetch = 0 : i64, scratch_operands = 0 : i64, tpu.core_type = #tpu.core_type<tc>, window_params = [{transform_indices = @transform_0, window_bounds = array<i64: 8, 64>}, {pipeline_mode = #tpu.pipeline_mode<synchronous>, transform_indices = @transform_1, window_bounds = array<i64: 64, 128>}, {pipeline_mode = #tpu.pipeline_mode<synchronous>, transform_indices = @transform_2, window_bounds = array<i64: 1, 128>}, {transform_indices = @transform_3, window_bounds = array<i64: 8, 128>}]} {
    %c0 = arith.constant 0 : index
    %c0_0 = arith.constant 0 : index
    %0 = vector.load %arg1[%c0, %c0_0] : memref<8x64xf32, #tpu.memory_space<vmem>>, vector<8x64xf32>
    %c0_1 = arith.constant 0 : index
    %c0_2 = arith.constant 0 : index
    %1 = vector.load %arg2[%c0_1, %c0_2] : memref<64x128xf32, #tpu.memory_space<vmem>>, vector<64x128xf32>
    %cst = arith.constant dense<0.000000e+00> : vector<8x128xf32>
    %2 = tpu.matmul %0, %1, %cst {dimension_numbers = #tpu.dot_dimension_numbers<[1], [0], [0], [1], [0, 0, 1, 1], [], []>} : vector<8x64xf32>, vector<64x128xf32>, vector<8x128xf32> -> vector<8x128xf32>
    %c0_3 = arith.constant 0 : index
    %c0_4 = arith.constant 0 : index
    %3 = vector.load %arg3[%c0_3, %c0_4] : memref<1x128xf32, #tpu.memory_space<vmem>>, vector<1x128xf32>
    %4 = vector.broadcast %3 : vector<1x128xf32> to vector<8x128xf32>
    %5 = arith.addf %2, %4 : vector<8x128xf32>
    %c0_5 = arith.constant 0 : index
    %c0_6 = arith.constant 0 : index
    %6 = vector.load %arg4[%c0_5, %c0_6] : memref<8x128xf32, #tpu.memory_space<vmem>>, vector<8x128xf32>
    tpu.vector_store %arg4[%c0_5, %c0_6], %5 {strides = array<i32>} : memref<8x128xf32, #tpu.memory_space<vmem>>, vector<8x128xf32>,
    return
  }
  func.func @transform_0(%arg0: i32) -> (i32, i32) {
    %c0_i32 = arith.constant 0 : i32
    %c0_i32_0 = arith.constant 0 : i32
    return %arg0, %c0_i32 : i32, i32
  }
  func.func @transform_1(%arg0: i32) -> (i32, i32) {
    %c0_i32 = arith.constant 0 : i32
    %c0_i32_0 = arith.constant 0 : i32
    %c0_i32_1 = arith.constant 0 : i32
    return %c0_i32, %c0_i32_0 : i32, i32
  }
  func.func @transform_2(%arg0: i32) -> (i32, i32) {
    %c0_i32 = arith.constant 0 : i32
    %c0_i32_0 = arith.constant 0 : i32
    %c0_i32_1 = arith.constant 0 : i32
    return %c0_i32, %c0_i32_0 : i32, i32
  }
  func.func @transform_3(%arg0: i32) -> (i32, i32) {
    %c0_i32 = arith.constant 0 : i32
    %c0_i32_0 = arith.constant 0 : i32
    return %arg0, %c0_i32 : i32, i32
  }
}

</mosaic_0001>

<bundles_post_ra>
// kernel: transformer_forward.13
= control target key start
LH: loop header
LB: loop body
LE: loop exit
PB: predicated region body
PF: predicated region fallthrough
CT: control target
= control target key end

     0   :  { %s873_s12 = smov 0   ;;  %s976_s0 = inlined_call_operand.vmem [shape: f32[2,16,16], index: 0, kind: input, shape index: {}]   ;;  %s977_s1 = inlined_call_operand.vmem [shape: f32[16,64], index: 1, kind: input, shape index: {}]   ;;  %s978_s2 = inlined_call_operand.vmem [shape: f32[1,64], index: 2, kind: input, shape index: {}]   ;;  %s979_s3 = inlined_call_operand.vmem [shape: f32[2,16,64], index: 3, kind: output, shape index: {}]  }
   0x1 LB: > { %s762_s13 = sadd.s32 4294967295, %s844_s12   ;;  %p766_p0 = scmp.ge.s32.totalorder %s844_s12, 1  ;;  %s844_s12 = sphi %s873_s12, %s13_s12  }
   0x2   : > { %p137_p1 = scmp.lt.s32.totalorder %s844_s12, 3 }
   0x4   : > { %p138_p2 = pnand %p766_p0, %p137_p1 }
   0x5   : > { %p161_p3 = scmp.lt.s32.totalorder (!%p138_p2), %s762_s13, 1  ;;  %s852_s22 = smov (!%p138_p2), 32  }
   0x6   : > { %141 = sbr.rel (%p138_p2) target bundleno = 248 (0xf8), region = 32 }
   0xb   : > { %v174_v0 = vld [vmem:[%s977_s1 + $0x8] sm:$0xff]  ;;  %v173_v1 = vld [vmem:[%s977_s1] sm:$0xff]  ;;  %v264_v2 = vlaneseq  ;;  %s981_s13 = smov (!%p161_p3, %s762_s13), 1  ;;  %vm182_vm0 = vcmask 130048   ;;  %v846_v38 = vmov 683565275  }
   0xc   : > { %798 = vmatprep.subr.mxu0 %v174_v0  ;;  %s792_s18 = sshll.u32 %s981_s13, 4  ;;  %v847_v40 = vmov 2475754826   ;;  %v848_v42 = vmov 2131351028  }
   0xd   : > { %799 = vmatpush3.msra.mxu0 %v174_v0  ;;  %v270_v3 = vand.u32 127, %v264_v2  ;;  %s165_s21 = scalar_lea.vmem %s976_s0, %s792_s18  ;;  %v265_v9 = vshrl.u32 %v264_v2, 7  ;;  %v849_v44 = vmov 2102212464   ;;  %v850_v46 = vmov 920167782   ;;  %s170_s27 = scalar_lea.vmem %s979_s3, %s792_s18 }
   0xe   : > { %800 = vmatprep.subr.mxu0 %v173_v1  ;;  %v171_v5 = vld [vmem:[%s165_s21] sm:$0xff]  ;;  %v172_v6 = vld [vmem:[%s165_s21 + $0x8] sm:$0xff]  ;;  %v851_v54 = vmov 1326507024  }
   0xf   : > { %801 = vmatpush3.msra.mxu0 %v173_v1  ;;  %v271_v4 = vcvt.s32.f32 %v270_v3  ;;  %802 = vmatprep.mubr.msk.f32.mxu0 %vm182_vm0, %v171_v5  ;;  %v266_v10 = vadd.s32 8, %v265_v9  ;;  %v267_v11 = vcvt.s32.f32 %v265_v9 }
  0x10   : > { %803 = vmatmul.mubr.msk.f32.vlgmr.msra.gmra.mxu0 %vm182_vm0, %v172_v6 }
  0x11   : > { %v272_v7 = vmul.f32 -0.29710776, %v271_v4  ;;  %v268_v12 = vcvt.s32.f32 %v266_v10 }
  0x13   : > { %v273_v8 = vmul.f32 1.442695, %v272_v7 }
  0x15   : > { %828 = vpow2.f32 %v273_v8 }
  0x22   : > { %v829_v13 = vpop.eup %828 }
  0x23   : > { %v895_v14 = vmul.f32 %v829_v13, %v267_v11  ;;  %v897_v15 = vmul.f32 %v829_v13, %v268_v12 }
  0x25   : > { %v277_v16 = vand.u32 2147483647, %v895_v14  ;;  %v280_v17 = vand.u32 2139095040, %v895_v14  ;;  %v381_v18 = vand.u32 2147483647, %v897_v15  ;;  %v384_v19 = vand.u32 2139095040, %v897_v15 }
  0x26   : > { %vm279_vm15 = vcmp.lt.s32.totalorder %v895_v14, 0 }
  0x27   : > { %v281_v20 = vshrl.u32 %v280_v17, 23  ;;  %v284_v21 = vand.u32 8388607, %v277_v16  ;;  %v385_v22 = vshrl.u32 %v384_v19, 23  ;;  %v388_v23 = vand.u32 8388607, %v381_v18 }
  0x28   : > { %vm278_vm0 = vcmp.le.f32.partialorder %v277_v16, 0.7853982 }
  0x29   : > { %v774_v24 = vadd.s32 4294967169, %v281_v20  ;;  %v778_v25 = vadd.s32 4294967169, %v385_v22  ;;  %v285_v27 = vor.u32 8388608, %v284_v21  ;;  %v389_v28 = vor.u32 8388608, %v388_v23 }
  0x2b   : > { %v287_v26 = vadd.s32 1, %v774_v24  ;;  %v391_v29 = vadd.s32 1, %v778_v25  ;;  %v907_v34 = vshll.u32 %v285_v27, 8  ;;  %v909_v36 = vshll.u32 %v389_v28, 8 }
  0x2d   : > { %vm288_vm1 = vcmp.gt.s32.totalorder %v287_v26, 0  ;;  %vm392_vm2 = vcmp.gt.s32.totalorder %v391_v29, 0 }
  0x2e   : > { %v289_v30 = vsel %vm288_vm1, %v287_v26, 0  ;;  %v393_v33 = vsel %vm392_vm2, %v391_v29, 0  ;;  %vm383_vm1 = vcmp.lt.s32.totalorder %v897_v15, 0  ;;  %vm382_vm2 = vcmp.le.f32.partialorder %v381_v18, 0.7853982 }
  0x2f   : > { %v290_v31 = vshrl.u32 %v289_v30, 5  ;;  %v291_v32 = vand.u32 31, %v289_v30  ;;  %v395_v35 = vand.u32 31, %v393_v33  ;;  %v911_v48 = vshrl.u32 %v393_v33, 5 }
  0x31   : > { %v292_v37 = vsub.s32 32, %v291_v32  ;;  %v294_v39 = vshll.u32 %v846_v38, %v291_v32  ;;  %v297_v41 = vshll.u32 %v847_v40, %v291_v32  ;;  %v300_v43 = vshll.u32 %v848_v42, %v291_v32 }
  0x32   : > { %v303_v45 = vshll.u32 %v849_v44, %v291_v32  ;;  %v306_v47 = vshll.u32 %v850_v46, %v291_v32  ;;  %vm309_vm3 = vcmp.lt.s32.totalorder %v290_v31, 1  ;;  %vm310_vm4 = vcmp.lt.s32.totalorder %v290_v31, 2 }
  0x33   : > { %v293_v49 = vshrl.u32 %v846_v38, %v292_v37  ;;  %v295_v50 = vshrl.u32 %v847_v40, %v292_v37  ;;  %v298_v51 = vshrl.u32 %v848_v42, %v292_v37  ;;  %v301_v52 = vshrl.u32 %v849_v44, %v292_v37 }
  0x34   : > { %v304_v53 = vshrl.u32 %v850_v46, %v292_v37  ;;  %v307_v55 = vshrl.u32 %v851_v54, %v292_v37  ;;  %vm312_vm5 = vcmp.lt.s32.totalorder %v290_v31, 4  ;;  %v396_v59 = vsub.s32 32, %v395_v35 }
  0x35   : > { %v296_v56 = vor.u32 %v295_v50, %v294_v39  ;;  %v299_v57 = vor.u32 %v298_v51, %v297_v41  ;;  %v302_v58 = vor.u32 %v301_v52, %v300_v43  ;;  %vm311_vm6 = vcmp.lt.s32.totalorder %v290_v31, 3 }
  0x36   : > { %v305_v60 = vor.u32 %v304_v53, %v303_v45  ;;  %v308_v61 = vor.u32 %v307_v55, %v306_v47  ;;  %v398_v62 = vshll.u32 %v846_v38, %v395_v35  ;;  %v401_v6 = vshll.u32 %v847_v40, %v395_v35 }
  0x37   : > { %v313_v63 = vsel %vm309_vm3, %v293_v49, %v296_v56  ;;  %v314_v0 = vsel %vm312_vm5, %v302_v58, 2102212464  ;;  %v317_v1 = vsel %vm309_vm3, %v296_v56, %v299_v57  ;;  %v321_v2 = vsel %vm309_vm3, %v299_v57, %v302_v58 }
  0x38   : > { %v315_v3 = vsel %vm311_vm6, %v299_v57, %v314_v0  ;;  %v318_v4 = vsel %vm312_vm5, %v305_v60, 920167782  ;;  %v322_v5 = vsel %vm312_vm5, %v308_v61, 1326507024  ;;  %v397_v9 = vshrl.u32 %v846_v38, %v396_v59 }
  0x39   : > { %v319_v7 = vsel %vm311_vm6, %v302_v58, %v318_v4  ;;  %v323_v8 = vsel %vm311_vm6, %v305_v60, %v322_v5  ;;  %v399_v10 = vshrl.u32 %v847_v40, %v396_v59  ;;  %v316_v11 = vsel %vm310_vm4, %v313_v63, %v315_v3 }
  0x3a   : > { %v320_v12 = vsel %vm310_vm4, %v317_v1, %v319_v7  ;;  %v324_v13 = vsel %vm310_vm4, %v321_v2, %v323_v8  ;;  %v402_v17 = vshrl.u32 %v848_v42, %v396_v59  ;;  %v404_v25 = vshll.u32 %v848_v42, %v395_v35 }
  0x3b   : > { %v920_v19 = vmul.u32.u64.low %v907_v34, %v324_v13  ;;  %v921_v20 = vmul.u32.u64.high %v907_v34, %v324_v13, %v920_v19  ;;  %v924_v21 = vmul.u32.u64.low %v907_v34, %v320_v12  ;;  %v925_v22 = vmul.u32.u64.high %v907_v34, %v320_v12, %v924_v21 }
  0x3c   : > { %v400_v23 = vor.u32 %v399_v10, %v398_v62  ;;  %v403_v24 = vor.u32 %v402_v17, %v401_v6  ;;  %v405_v26 = vshrl.u32 %v849_v44, %v396_v59  ;;  %v407_v27 = vshll.u32 %v849_v44, %v395_v35 }
  0x3d   : > { %v408_v28 = vshrl.u32 %v850_v46, %v396_v59  ;;  %v410_v29 = vshll.u32 %v850_v46, %v395_v35  ;;  %v411_v30 = vshrl.u32 %v851_v54, %v396_v59  ;;  %v332_v31 = vmul.u32 %v907_v34, %v316_v11 }
  0x3e   : > { %v406_v32 = vor.u32 %v405_v26, %v404_v25  ;;  %vm413_vm7 = vcmp.lt.s32.totalorder %v911_v48, 1  ;;  %vm414_vm8 = vcmp.lt.s32.totalorder %v911_v48, 2  ;;  %vm334_vm9 = vc.u32 %v921_v20, %v924_v21 }
  0x3f   : > { %v335_v33 = vadd.s32 1, %v925_v22  ;;  %v409_v37 = vor.u32 %v408_v28, %v407_v27  ;;  %vm415_vm10 = vcmp.lt.s32.totalorder %v911_v48, 3  ;;  %v412_v38 = vor.u32 %v411_v30, %v410_v29 }
  0x40   : > { %vm416_vm11 = vcmp.lt.s32.totalorder %v911_v48, 4  ;;  %v417_v39 = vsel %vm413_vm7, %v397_v9, %v400_v23  ;;  %v421_v35 = vsel %vm413_vm7, %v400_v23, %v403_v24  ;;  %v425_v42 = vsel %vm413_vm7, %v403_v24, %v406_v32 }
  0x41   : > { %v336_v40 = vsel %vm334_vm9, %v335_v33, %v925_v22  ;;  %v418_v34 = vsel %vm416_vm11, %v406_v32, 2102212464  ;;  %v422_v41 = vsel %vm416_vm11, %v409_v37, 920167782  ;;  %v426_v46 = vsel %vm416_vm11, %v412_v38, 1326507024 }
  0x42   : > { %v337_v43 = vadd.s32 %v336_v40, %v332_v31  ;;  %v419_v44 = vsel %vm415_vm10, %v403_v24, %v418_v34  ;;  %v423_v45 = vsel %vm415_vm10, %v406_v32, %v422_v41  ;;  %v427_v50 = vsel %vm415_vm10, %v409_v37, %v426_v46 }
  0x43   : > { %v420_v47 = vsel %vm414_vm8, %v417_v39, %v419_v44  ;;  %v424_v49 = vsel %vm414_vm8, %v421_v35, %v423_v45  ;;  %v428_v52 = vsel %vm414_vm8, %v425_v42, %v427_v50  ;;  %v333_v7 = vadd.s32 %v924_v21, %v921_v20 }
  0x44   : > { %v338_v51 = vadd.s32 536870912, %v337_v43  ;;  %v942_v53 = vmul.u32.u64.low %v909_v36, %v424_v49  ;;  %v943_v54 = vmul.u32.u64.high %v909_v36, %v424_v49, %v942_v53  ;;  %v436_v58 = vmul.u32 %v909_v36, %v420_v47 }
  0x45   : > { %v946_v55 = vmul.u32.u64.low %v909_v36, %v428_v52  ;;  %v947_v56 = vmul.u32.u64.high %v909_v36, %v428_v52, %v946_v55  ;;  %vm369_vm9 = vweird.f32 %v895_v14 }
  0x46   : > { %v339_v57 = vshrl.u32 %v338_v51, 30  ;;  %v439_v60 = vadd.s32 1, %v943_v54 }
  0x47   : > { %vm438_vm12 = vc.u32 %v947_v56, %v942_v53  ;;  %v437_v27 = vadd.s32 %v942_v53, %v947_v56 }
  0x48   : > { %v340_v59 = vshll.u32 %v339_v57, 30  ;;  %v440_v48 = vsel %vm438_vm12, %v439_v60, %v943_v54  ;;  %v363_v38 = vsub.s32 4, %v339_v57 }
  0x49   : > { %v441_v62 = vadd.s32 %v440_v48, %v436_v58 }
  0x4a   : > { %v341_v61 = vsub.s32 %v337_v43, %v340_v59  ;;  %v364_v43 = vsel %vm279_vm15, %v363_v38, %v339_v57 }
  0x4b   : > { %v442_v0 = vadd.s32 536870912, %v441_v62  ;;  %v366_v46 = vsel %vm278_vm0, 0, %v364_v43 }
  0x4c   : > { %v343_v63 = vsub.s32 0, %v341_v61  ;;  %v370_v47 = vadd.s32 3, %v366_v46  ;;  %v578_v53 = vand.u32 3, %v366_v46 }
  0x4d   : > { %v443_v2 = vshrl.u32 %v442_v0, 30 }
  0x4e   : > { %v775_v1 = vmin.u32 %v343_v63, %v341_v61  ;;  %v371_v52 = vand.u32 3, %v370_v47  ;;  %vm583_vm4 = vcmp.eq.s32.totalorder %v578_v53, 2  ;;  %vm580_vm6 = vcmp.eq.s32.totalorder %v578_v53, 0 }
  0x4f   : > { %v444_v4 = vshll.u32 %v443_v2, 30  ;;  %v467_v49 = vsub.s32 4, %v443_v2  ;;  %vm579_vm8 = vcmp.lt.s32.totalorder %v578_v53, 2 }
  0x50   : > { %v345_v3 = vclz %v775_v1  ;;  %vm376_vm3 = vcmp.eq.s32.totalorder %v371_v52, 2  ;;  %vm373_vm5 = vcmp.eq.s32.totalorder %v371_v52, 0  ;;  %vm372_vm7 = vcmp.lt.s32.totalorder %v371_v52, 2 }
  0x51   : > { %v445_v6 = vsub.s32 %v441_v62, %v444_v4  ;;  %v468_v54 = vsel %vm383_vm1, %v467_v49, %v443_v2 }
  0x52   : > { %v776_v5 = vadd.s32 4294967294, %v345_v3  ;;  %v470_v56 = vsel %vm382_vm2, 0, %v468_v54 }
  0x53   : > { %v447_v8 = vsub.s32 0, %v445_v6  ;;  %v474_v59 = vadd.s32 3, %v470_v56  ;;  %v681_v2 = vand.u32 3, %v470_v56 }
  0x54   : > { %vm777_vm13 = vcmp.lt.s32.totalorder %v776_v5, 0 }
  0x55   : > { %v348_v36 = vsel %vm777_vm13, 0, %v776_v5  ;;  %v779_v12 = vmin.u32 %v447_v8, %v445_v6  ;;  %v475_v1 = vand.u32 3, %v474_v59  ;;  %vm686_vm11 = vcmp.eq.s32.totalorder %v681_v2, 2 }
  0x56   : > { %v349_v9 = vsub.s32 32, %v348_v36  ;;  %v350_v10 = vshll.u32 %v341_v61, %v348_v36  ;;  %v353_v11 = vsub.s32 4294967266, %v348_v36  ;;  %vm683_vm13 = vcmp.eq.s32.totalorder %v681_v2, 0 }
  0x57   : > { %v449_v19 = vclz %v779_v12  ;;  %vm480_vm10 = vcmp.eq.s32.totalorder %v475_v1, 2  ;;  %vm477_vm12 = vcmp.eq.s32.totalorder %v475_v1, 0 }
  0x58   : > { %v351_v13 = vshrl.u32 %v333_v7, %v349_v9  ;;  %v354_v17 = vadd.s32 127, %v353_v11 }
  0x59   : > { %v780_v24 = vadd.s32 4294967294, %v449_v19 }
  0x5a   : > { %v352_v22 = vor.u32 %v351_v13, %v350_v10  ;;  %v355_v23 = vshll.u32 %v354_v17, 23 }
  0x5b   : > { %vm781_vm14 = vcmp.lt.s32.totalorder %v780_v24, 0 }
  0x5c   : > { %v356_v25 = vor.u32 4788187, %v355_v23  ;;  %v359_v26 = vcvt.s32.f32 %v352_v22  ;;  %v452_v20 = vsel %vm781_vm14, 0, %v780_v24  ;;  %vm476_vm14 = vcmp.lt.s32.totalorder %v475_v1, 2  ;;  %v771_v22 = vld [vmem:[%s978_s2] ss:$0 sm:$0xff] }
  0x5d   : > { %v453_v21 = vsub.s32 32, %v452_v20  ;;  %v454_v29 = vshll.u32 %v445_v6, %v452_v20  ;;  %v457_v30 = vsub.s32 4294967266, %v452_v20 }
  0x5e   : > { %v357_v28 = vand.u32 2147483647, %v356_v25 }
  0x5f   : > { %v455_v32 = vshrl.u32 %v437_v27, %v453_v21  ;;  %v458_v33 = vadd.s32 127, %v457_v30 }
  0x60   : > { %v360_v31 = vmul.f32 %v359_v26, %v357_v28 }
  0x61   : > { %v456_v39 = vor.u32 %v455_v32, %v454_v29  ;;  %v459_v35 = vshll.u32 %v458_v33, 23 }
  0x62   : > { %v361_v37 = vxor.u32 2147483648, %v360_v31 }
  0x63   : > { %v460_v41 = vor.u32 4788187, %v459_v35  ;;  %v463_v42 = vcvt.s32.f32 %v456_v39 }
  0x64   : > { %v362_v40 = vsel %vm279_vm15, %v361_v37, %v360_v31  ;;  %vm682_vm15 = vcmp.lt.s32.totalorder %v681_v2, 2 }
  0x65   : > { %v365_v34 = vsel %vm278_vm0, %v895_v14, %v362_v40  ;;  %v461_v44 = vand.u32 2147483647, %v460_v41  ;;  %vm473_vm0 = vweird.f32 %v897_v15 }
  0x66   : > { %830 = vcosq.f32 %v365_v34 }
  0x67   : > { %832 = vsinq.f32 %v365_v34  ;;  %v464_v45 = vmul.f32 %v463_v42, %v461_v44 }
  0x69   : > { %v465_v16 = vxor.u32 2147483648, %v464_v45 }
  0x6b   : > { %v466_v50 = vsel %vm383_vm1, %v465_v16, %v464_v45  ;;  %vm699_vm1 = vcmask 261120  }
  0x6c   : > { %v469_v51 = vsel %vm382_vm2, %v897_v15, %v466_v50  ;;  %vm704_vm2 = vcmask 523264  }
  0x6d   : > { %834 = vcosq.f32 %v469_v51 }
  0x6e   : > { %836 = vsinq.f32 %v469_v51 }
  0x73   : > { %v831_v55 = vpop.eup %830 }
  0x74   : > { %v833_v57 = vpop.eup %832  ;;  %v377_v58 = vxor.u32 2147483648, %v831_v55 }
  0x75   : > { %v374_v18 = vxor.u32 2147483648, %v833_v57 }
  0x76   : > { %v585_v60 = vsel %vm583_vm4, %v377_v58, %v833_v57  ;;  %v378_v61 = vsel %vm376_vm3, %v377_v58, %v833_v57 }
  0x77   : > { %v582_v48 = vsel %vm580_vm6, %v831_v55, %v374_v18  ;;  %v375_v62 = vsel %vm373_vm5, %v831_v55, %v374_v18 }
  0x78   : > { %v586_v63 = vsel %vm579_vm8, %v582_v48, %v585_v60  ;;  %v379_v0 = vsel %vm372_vm7, %v375_v62, %v378_v61 }
  0x79   : > { %v587_v3 = vsel %vm369_vm9, nan, %v586_v63  ;;  %v380_v4 = vsel %vm369_vm9, nan, %v379_v0 }
  0x7a   : > { %693 = vrot.lane.b32.xlu0 %v587_v3, %s852_s22  ;;  %v835_v5 = vpop.eup %834 }
  0x7b   : > { %v837_v6 = vpop.eup %836  ;;  %v481_v7 = vxor.u32 2147483648, %v835_v5 }
  0x7c   : > { %v478_v14 = vxor.u32 2147483648, %v837_v6 }
  0x7d   : > { %v688_v36 = vsel %vm686_vm11, %v481_v7, %v837_v6  ;;  %v482_v8 = vsel %vm480_vm10, %v481_v7, %v837_v6 }
  0x7e   : > { %v685_v9 = vsel %vm683_vm13, %v835_v5, %v478_v14  ;;  %v479_v10 = vsel %vm477_vm12, %v835_v5, %v478_v14 }
  0x7f   : > { %v689_v11 = vsel %vm682_vm15, %v685_v9, %v688_v36  ;;  %v483_v12 = vsel %vm476_vm14, %v479_v10, %v482_v8 }
  0x80   : > { %v690_v13 = vsel %vm473_vm0, nan, %v689_v11  ;;  %v484_v17 = vsel %vm473_vm0, nan, %v483_v12 }
  0x81   : > { %695 = vrot.lane.b32.xlu0 %v690_v13, %s852_s22 }
  0xd0   : > { %v804_v19 = vpop.f32.mrf.mxu0 }
  0xd1   : > { %v261_v27 = vadd.f32 %v804_v19, %v771_v22 }
  0xd2   : > { %v255_v23 = vpop.f32.mrf.mxu0 }
  0xd3   : > { %v256_v24 = vadd.f32 %v771_v22, %v255_v23 }
  0xec   : > { %v694_v25 = vpop.permute.xlu0 %693 }
  0xed   : > { %v700_v15 = vsel %vm699_vm1, %v380_v4, %v694_v25 }
  0xee   : > { %v702_v26 = vadd.f32 %v700_v15, %v256_v24 }
  0xf0   : > { %705 = vst.msk [vmem:[%s170_s27] sm:$0xff] %vm704_vm2, %v702_v26 }
  0xf3   : > { %v696_v28 = vpop.permute.xlu0 %695 }
  0xf4   : > { %v701_v20 = vsel %vm699_vm1, %v484_v17, %v696_v28 }
  0xf5   : > { %v703_v21 = vadd.f32 %v701_v20, %v261_v27 }
  0xf7   : > { %706 = vst.msk [vmem:[%s170_s27 + $0x8] sm:$0xff] %vm704_vm2, %v703_v21 }
  0xf8 PF: > { %s13_s12 = sadd.s32 1, %s844_s12  }
  0xf9   : > { %p10_p4 = scmp.ge.s32.totalorder %s13_s12, 4  }
  0xfb   :  { %12 = sbr.rel (!%p10_p4) target bundleno = 1 (0x1), region = 62 }

// kernel: transformer_forward.18
= control target key start
LH: loop header
LB: loop body
LE: loop exit
PB: predicated region body
PF: predicated region fallthrough
CT: control target
= control target key end

     0   :  { %s618_s12 = smov 0   ;;  %s669_s0 = inlined_call_operand.vmem [shape: f32[2,8,8], index: 0, kind: input, shape index: {}]   ;;  %s670_s1 = inlined_call_operand.vmem [shape: f32[8,64], index: 1, kind: input, shape index: {}]   ;;  %s671_s2 = inlined_call_operand.vmem [shape: f32[1,64], index: 2, kind: input, shape index: {}]   ;;  %s672_s3 = inlined_call_operand.vmem [shape: f32[2,8,64], index: 3, kind: output, shape index: {}]  }
   0x1 LB: > { %s528_s13 = sadd.s32 4294967295, %s587_s12   ;;  %p532_p0 = scmp.ge.s32.totalorder %s587_s12, 1  ;;  %s587_s12 = sphi %s618_s12, %s13_s12  }
   0x2   : > { %p136_p1 = scmp.lt.s32.totalorder %s587_s12, 3 }
   0x4   : > { %p137_p2 = pnand %p532_p0, %p136_p1 }
   0x5   : > { %p158_p3 = scmp.lt.s32.totalorder (!%p137_p2), %s528_s13, 1  ;;  %s597_s20 = smov (!%p137_p2), 32  }
   0x6   : > { %140 = sbr.rel (%p137_p2) target bundleno = 239 (0xef), region = 32 }
   0xb   : > { %v167_v0 = vld [vmem:[%s670_s1] sm:$0xff]  ;;  %v249_v1 = vlaneseq  ;;  %v589_v2 = vmov 0.0   ;;  %vm590_vm0 = vmmov 0   ;;  %s674_s13 = smov (!%p158_p3, %s528_s13), 1  ;;  %vm175_vm1 = vcmask 64512  }
   0xc   : > { %549 = vmatprep.subr.mxu0 %v589_v2  ;;  %551 = vmatprep.mubr.msk.f32.mxu0 %vm590_vm0, %v589_v2  ;;  %s533_s16 = sshll.u32 %s674_s13, 3  ;;  %v591_v23 = vmov 683565275   ;;  %v592_v25 = vmov 2475754826  }
   0xd   : > { %550 = vmatpush3.msra.mxu0 %v167_v0  ;;  %v253_v3 = vand.u32 127, %v249_v1  ;;  %s161_s19 = scalar_lea.vmem %s669_s0, %s533_s16  ;;  %v250_v8 = vshrl.u32 %v249_v1, 7  ;;  %v593_v27 = vmov 2131351028   ;;  %v594_v29 = vmov 2102212464   ;;  %s165_s25 = scalar_lea.vmem %s672_s3, %s533_s16 }
   0xe   : > { %v166_v5 = vld [vmem:[%s161_s19] sm:$0xff]  ;;  %v595_v31 = vmov 920167782   ;;  %v596_v38 = vmov 1326507024  }
   0xf   : > { %v254_v4 = vcvt.s32.f32 %v253_v3  ;;  %552 = vmatmul.mubr.msk.f32.vlgmr.msra.gmra.mxu0 %vm175_vm1, %v166_v5  ;;  %v251_v9 = vcvt.s32.f32 %v250_v8 }
  0x11   : > { %v255_v6 = vmul.f32 -0.29710776, %v254_v4 }
  0x13   : > { %v256_v7 = vmul.f32 1.442695, %v255_v6 }
  0x15   : > { %575 = vpow2.f32 %v256_v7 }
  0x22   : > { %v576_v10 = vpop.eup %575 }
  0x23   : > { %v637_v11 = vmul.f32 %v576_v10, %v251_v9 }
  0x25   : > { %v262_v12 = vand.u32 2139095040, %v637_v11  ;;  %v259_v14 = vand.u32 2147483647, %v637_v11  ;;  %vm261_vm9 = vcmp.lt.s32.totalorder %v637_v11, 0  ;;  %vm351_vm1 = vweird.f32 %v637_v11 }
  0x27   : > { %v263_v13 = vshrl.u32 %v262_v12, 23  ;;  %v266_v17 = vand.u32 8388607, %v259_v14  ;;  %vm260_vm10 = vcmp.le.f32.partialorder %v259_v14, 0.7853982 }
  0x29   : > { %v537_v15 = vadd.s32 4294967169, %v263_v13  ;;  %v267_v20 = vor.u32 8388608, %v266_v17 }
  0x2b   : > { %v269_v16 = vadd.s32 1, %v537_v15  ;;  %v307_v40 = vshll.u32 %v267_v20, 8 }
  0x2d   : > { %vm270_vm2 = vcmp.gt.s32.totalorder %v269_v16, 0 }
  0x2e   : > { %v271_v18 = vsel %vm270_vm2, %v269_v16, 0  ;;  %vm470_vm2 = vcmask 261120  }
  0x2f   : > { %v273_v19 = vand.u32 31, %v271_v18  ;;  %v272_v21 = vshrl.u32 %v271_v18, 5 }
  0x31   : > { %v274_v22 = vsub.s32 32, %v273_v19  ;;  %v276_v24 = vshll.u32 %v591_v23, %v273_v19  ;;  %v279_v26 = vshll.u32 %v592_v25, %v273_v19  ;;  %v282_v28 = vshll.u32 %v593_v27, %v273_v19 }
  0x32   : > { %v285_v30 = vshll.u32 %v594_v29, %v273_v19  ;;  %v288_v32 = vshll.u32 %v595_v31, %v273_v19  ;;  %vm291_vm3 = vcmp.lt.s32.totalorder %v272_v21, 1  ;;  %vm294_vm4 = vcmp.lt.s32.totalorder %v272_v21, 4 }
  0x33   : > { %v275_v33 = vshrl.u32 %v591_v23, %v274_v22  ;;  %v277_v34 = vshrl.u32 %v592_v25, %v274_v22  ;;  %v280_v35 = vshrl.u32 %v593_v27, %v274_v22  ;;  %v283_v36 = vshrl.u32 %v594_v29, %v274_v22 }
  0x34   : > { %v286_v37 = vshrl.u32 %v595_v31, %v274_v22  ;;  %v289_v39 = vshrl.u32 %v596_v38, %v274_v22  ;;  %vm292_vm5 = vcmp.lt.s32.totalorder %v272_v21, 2  ;;  %vm293_vm6 = vcmp.lt.s32.totalorder %v272_v21, 3 }
  0x35   : > { %v278_v41 = vor.u32 %v277_v34, %v276_v24  ;;  %v281_v42 = vor.u32 %v280_v35, %v279_v26  ;;  %v284_v43 = vor.u32 %v283_v36, %v282_v28 }
  0x36   : > { %v287_v44 = vor.u32 %v286_v37, %v285_v30  ;;  %v290_v45 = vor.u32 %v289_v39, %v288_v32 }
  0x37   : > { %v295_v46 = vsel %vm291_vm3, %v275_v33, %v278_v41  ;;  %v296_v47 = vsel %vm294_vm4, %v284_v43, 2102212464  ;;  %v299_v48 = vsel %vm291_vm3, %v278_v41, %v281_v42  ;;  %v303_v49 = vsel %vm291_vm3, %v281_v42, %v284_v43 }
  0x38   : > { %v297_v50 = vsel %vm293_vm6, %v281_v42, %v296_v47  ;;  %v300_v51 = vsel %vm294_vm4, %v287_v44, 920167782  ;;  %v304_v52 = vsel %vm294_vm4, %v290_v45, 1326507024  ;;  %v535_v47 = vld [vmem:[%s671_s2] ss:$0 sm:$0xff] }
  0x39   : > { %v301_v53 = vsel %vm293_vm6, %v284_v43, %v300_v51  ;;  %v305_v54 = vsel %vm293_vm6, %v287_v44, %v304_v52  ;;  %v298_v55 = vsel %vm292_vm5, %v295_v46, %v297_v50  ;;  %vm473_vm3 = vcmask 523264  }
  0x3a   : > { %v302_v56 = vsel %vm292_vm5, %v299_v48, %v301_v53  ;;  %v306_v57 = vsel %vm292_vm5, %v303_v49, %v305_v54  ;;  %v314_v62 = vmul.u32 %v307_v40, %v298_v55 }
  0x3b   : > { %v643_v58 = vmul.u32.u64.low %v307_v40, %v306_v57  ;;  %v644_v59 = vmul.u32.u64.high %v307_v40, %v306_v57, %v643_v58  ;;  %v646_v60 = vmul.u32.u64.low %v307_v40, %v302_v56  ;;  %v647_v61 = vmul.u32.u64.high %v307_v40, %v302_v56, %v646_v60 }
  0x3d   : > { %vm316_vm7 = vc.u32 %v644_v59, %v646_v60  ;;  %v317_v63 = vadd.s32 1, %v647_v61  ;;  %v315_v10 = vadd.s32 %v646_v60, %v644_v59 }
  0x3f   : > { %v318_v0 = vsel %vm316_vm7, %v317_v63, %v647_v61 }
  0x40   : > { %v319_v1 = vadd.s32 %v318_v0, %v314_v62 }
  0x42   : > { %v320_v2 = vadd.s32 536870912, %v319_v1 }
  0x44   : > { %v321_v3 = vshrl.u32 %v320_v2, 30 }
  0x46   : > { %v322_v4 = vshll.u32 %v321_v3, 30  ;;  %v345_v26 = vsub.s32 4, %v321_v3 }
  0x48   : > { %v323_v5 = vsub.s32 %v319_v1, %v322_v4  ;;  %v346_v29 = vsel %vm261_vm9, %v345_v26, %v321_v3 }
  0x49   : > { %v348_v30 = vsel %vm260_vm10, 0, %v346_v29 }
  0x4a   : > { %v325_v6 = vsub.s32 0, %v323_v5  ;;  %v352_v31 = vadd.s32 3, %v348_v30  ;;  %v456_v33 = vand.u32 3, %v348_v30 }
  0x4c   : > { %v538_v7 = vmin.u32 %v325_v6, %v323_v5  ;;  %v353_v32 = vand.u32 3, %v352_v31  ;;  %vm461_vm12 = vcmp.eq.s32.totalorder %v456_v33, 2  ;;  %vm458_vm14 = vcmp.eq.s32.totalorder %v456_v33, 0 }
  0x4d   : > { %vm457_vm0 = vcmp.lt.s32.totalorder %v456_v33, 2 }
  0x4e   : > { %v327_v8 = vclz %v538_v7  ;;  %vm358_vm11 = vcmp.eq.s32.totalorder %v353_v32, 2  ;;  %vm355_vm13 = vcmp.eq.s32.totalorder %v353_v32, 0  ;;  %vm354_vm15 = vcmp.lt.s32.totalorder %v353_v32, 2 }
  0x50   : > { %v539_v9 = vadd.s32 4294967294, %v327_v8 }
  0x52   : > { %vm540_vm8 = vcmp.lt.s32.totalorder %v539_v9, 0 }
  0x53   : > { %v330_v12 = vsel %vm540_vm8, 0, %v539_v9 }
  0x54   : > { %v331_v13 = vsub.s32 32, %v330_v12  ;;  %v332_v15 = vshll.u32 %v323_v5, %v330_v12  ;;  %v335_v16 = vsub.s32 4294967266, %v330_v12 }
  0x56   : > { %v333_v17 = vshrl.u32 %v315_v10, %v331_v13  ;;  %v336_v18 = vadd.s32 127, %v335_v16 }
  0x58   : > { %v334_v19 = vor.u32 %v333_v17, %v332_v15  ;;  %v337_v20 = vshll.u32 %v336_v18, 23 }
  0x5a   : > { %v338_v21 = vor.u32 4788187, %v337_v20  ;;  %v341_v22 = vcvt.s32.f32 %v334_v19 }
  0x5c   : > { %v339_v23 = vand.u32 2147483647, %v338_v21 }
  0x5e   : > { %v342_v24 = vmul.f32 %v341_v22, %v339_v23 }
  0x60   : > { %v343_v25 = vxor.u32 2147483648, %v342_v24 }
  0x62   : > { %v344_v27 = vsel %vm261_vm9, %v343_v25, %v342_v24 }
  0x63   : > { %v347_v28 = vsel %vm260_vm10, %v637_v11, %v344_v27 }
  0x64   : > { %577 = vcosq.f32 %v347_v28 }
  0x65   : > { %579 = vsinq.f32 %v347_v28 }
  0x71   : > { %v578_v34 = vpop.eup %577 }
  0x72   : > { %v580_v35 = vpop.eup %579  ;;  %v359_v36 = vxor.u32 2147483648, %v578_v34 }
  0x73   : > { %v356_v14 = vxor.u32 2147483648, %v580_v35 }
  0x74   : > { %v360_v37 = vsel %vm358_vm11, %v359_v36, %v580_v35  ;;  %v463_v38 = vsel %vm461_vm12, %v359_v36, %v580_v35 }
  0x75   : > { %v357_v39 = vsel %vm355_vm13, %v578_v34, %v356_v14  ;;  %v460_v40 = vsel %vm458_vm14, %v578_v34, %v356_v14 }
  0x76   : > { %v361_v41 = vsel %vm354_vm15, %v357_v39, %v360_v37  ;;  %v464_v42 = vsel %vm457_vm0, %v460_v40, %v463_v38 }
  0x77   : > { %v362_v43 = vsel %vm351_vm1, nan, %v361_v41  ;;  %v465_v44 = vsel %vm351_vm1, nan, %v464_v42 }
  0x78   : > { %467 = vrot.lane.b32.xlu0 %v465_v44, %s597_s20 }
  0xcf   : > { %v245_v45 = vpop.f32.mrf.mxu0 }
  0xd0   : > { %v246_v48 = vadd.f32 %v535_v47, %v245_v45 }
  0xd1   : > { %v553_v46 = vpop.f32.mrf.mxu0 }
  0xea   : > { %v468_v11 = vpop.permute.xlu0 %467 }
  0xeb   : > { %v471_v49 = vsel %vm470_vm2, %v362_v43, %v468_v11 }
  0xec   : > { %v472_v50 = vadd.f32 %v471_v49, %v246_v48 }
  0xee   : > { %474 = vst.msk [vmem:[%s165_s25] sm:$0xff] %vm473_vm3, %v472_v50 }
  0xef PF: > { %s13_s12 = sadd.s32 1, %s587_s12  }
  0xf0   : > { %p10_p4 = scmp.ge.s32.totalorder %s13_s12, 4  }
  0xf2   :  { %12 = sbr.rel (!%p10_p4) target bundleno = 1 (0x1), region = 62 }

// kernel: transformer_forward.15
= control target key start
LH: loop header
LB: loop body
LE: loop exit
PB: predicated region body
PF: predicated region fallthrough
CT: control target
= control target key end

     0   :  { %s767_s24 = smov 0   ;;  %s963_s0 = inlined_call_operand.vmem [shape: f32[32,64], index: 0, kind: input, shape index: {}]   ;;  %s964_s1 = inlined_call_operand.vmem [shape: f32[64,256], index: 1, kind: input, shape index: {}]   ;;  %s965_s2 = inlined_call_operand.vmem [shape: f32[1,256], index: 2, kind: input, shape index: {}]   ;;  %s966_s3 = inlined_call_operand.vmem [shape: f32[256,64], index: 3, kind: input, shape index: {}]   ;;  %s967_s4 = inlined_call_operand.vmem [shape: f32[1,64], index: 4, kind: input, shape index: {}]   ;;  %s968_s5 = inlined_call_operand.vmem [shape: f32[1,64], index: 5, kind: input, shape index: {}]   ;;  %s969_s6 = inlined_call_operand.vmem [shape: f32[1,64], index: 6, kind: input, shape index: {}]   ;;  %s970_s7 = inlined_call_operand.vmem [shape: f32[32,64], index: 7, kind: output, shape index: {}]  }
   0x1 LB: > { %s639_s25 = sadd.s32 4294967295, %s724_s24   ;;  %p643_p0 = scmp.ge.s32.totalorder %s724_s24, 1  ;;  %s724_s24 = sphi %s767_s24, %s17_s24  }
   0x2   : > { %p238_p1 = scmp.lt.s32.totalorder %s724_s24, 3 }
   0x4   : > { %p239_p2 = pnand %p643_p0, %p238_p1 }
   0x5   : > { %s644_s9 = sshll.u32 (!%p239_p2), %s639_s25, 1 }
   0x6   : > { %242 = sbr.rel (%p239_p2) target bundleno = 761 (0x2f9), region = 48  ;;  %p271_p3 = scmp.lt.s32.totalorder (!%p239_p2), %s644_s9, 3 }
   0xb   : > { %v299_v0 = vld [vmem:[%s964_s1 + $0x78] sm:$0xff]  ;;  %v298_v1 = vld [vmem:[%s964_s1 + $0x70] sm:$0xff]  ;;  %v297_v2 = vld [vmem:[%s964_s1 + $0x68] sm:$0xff]  ;;  %v726_v4 = vmov 0.0   ;;  %s972_s9 = smov (!%p271_p3, %s644_s9), 3  ;;  %vm312_vm0 = vcmask 523264   ;;  %v302_v51 = vlaneseq }
   0xc   : > { %335 = vmatprep.subr.mxu0 %v299_v0  ;;  %v296_v3 = vld [vmem:[%s964_s1 + $0x60] sm:$0xff]  ;;  %383 = vmatprep.mubr.f32.mxu0 %v726_v4  ;;  %v295_v5 = vld [vmem:[%s964_s1 + $0x58] sm:$0xff]  ;;  %v294_v6 = vld [vmem:[%s964_s1 + $0x50] sm:$0xff]  ;;  %s645_s15 = sshll.u32 %s972_s9, 3 }
   0xd   : > { %336 = vmatpush1.msra.mxu0 %v298_v1  ;;  %v293_v7 = vld [vmem:[%s964_s1 + $0x48] sm:$0xff]  ;;  %v292_v8 = vld [vmem:[%s964_s1 + $0x40] sm:$0xff]  ;;  %v451_v9 = vld [vmem:[%s966_s3 + $0xf8] sm:$0xff]  ;;  %s274_s25 = scalar_lea.vmem %s963_s0, %s645_s15  ;;  %v303_v52 = vshrl.u32 %v302_v51, 7  ;;  %s280_s12 = scalar_lea.vmem %s970_s7, %s645_s15 }
   0xe   : > { %337 = vmatprep.subr.mxu0 %v297_v2  ;;  %v435_v10 = vld [vmem:[%s966_s3 + $0x78] sm:$0xff]  ;;  %659 = vmatprep.subr.mxu1 %v451_v9  ;;  %v450_v12 = vld [vmem:[%s966_s3 + $0xf0] sm:$0xff]  ;;  %v449_v15 = vld [vmem:[%s966_s3 + $0xe8] sm:$0xff] }
   0xf   : > { %338 = vmatpush1.msra.mxu0 %v296_v3  ;;  %v291_v11 = vld [vmem:[%s964_s1 + $0x38] sm:$0xff]  ;;  %v434_v13 = vld [vmem:[%s966_s3 + $0x70] sm:$0xff]  ;;  %660 = vmatpush3.msra.mxu1 %v435_v10  ;;  %v289_v16 = vld [vmem:[%s964_s1 + $0x28] sm:$0xff]  ;;  %v304_v53 = vsub.s32 0, %v303_v52  ;;  %v308_v55 = vsub.s32 1, %v303_v52 }
  0x10   : > { %339 = vmatprep.subr.mxu0 %v295_v5  ;;  %v290_v14 = vld [vmem:[%s964_s1 + $0x30] sm:$0xff]  ;;  %661 = vmatprep.subr.mxu1 %v450_v12  ;;  %v288_v17 = vld [vmem:[%s964_s1 + $0x20] sm:$0xff]  ;;  %v287_v18 = vld [vmem:[%s964_s1 + $0x18] sm:$0xff] }
  0x11   : > { %340 = vmatpush1.msra.mxu0 %v294_v6  ;;  %662 = vmatpush3.msra.mxu1 %v434_v13  ;;  %v286_v19 = vld [vmem:[%s964_s1 + $0x10] sm:$0xff]  ;;  %v285_v20 = vld [vmem:[%s964_s1 + $0x8] sm:$0xff]  ;;  %v284_v21 = vld [vmem:[%s964_s1] sm:$0xff] }
  0x12   : > { %341 = vmatprep.subr.mxu0 %v293_v7  ;;  %663 = vmatprep.subr.mxu1 %v449_v15  ;;  %v846_v22 = vld [vmem:[%s274_s25] sm:$0xff]  ;;  %v850_v23 = vld [vmem:[%s274_s25 + $0x8] sm:$0xff]  ;;  %v447_v27 = vld [vmem:[%s966_s3 + $0xd8] sm:$0xff] }
  0x13   : > { %342 = vmatpush1.msra.mxu0 %v292_v8  ;;  %v433_v24 = vld [vmem:[%s966_s3 + $0x68] sm:$0xff]  ;;  %v448_v25 = vld [vmem:[%s966_s3 + $0xe0] sm:$0xff]  ;;  %v431_v28 = vld [vmem:[%s966_s3 + $0x58] sm:$0xff] }
  0x14   : > { %343 = vmatprep.subr.mxu0 %v291_v11  ;;  %664 = vmatpush3.msra.mxu1 %v433_v24  ;;  %v432_v26 = vld [vmem:[%s966_s3 + $0x60] sm:$0xff]  ;;  %v446_v29 = vld [vmem:[%s966_s3 + $0xd0] sm:$0xff]  ;;  %v445_v31 = vld [vmem:[%s966_s3 + $0xc8] sm:$0xff] }
  0x15   : > { %344 = vmatpush1.msra.mxu0 %v290_v14  ;;  %665 = vmatprep.subr.mxu1 %v448_v25  ;;  %v430_v30 = vld [vmem:[%s966_s3 + $0x50] sm:$0xff]  ;;  %v429_v32 = vld [vmem:[%s966_s3 + $0x48] sm:$0xff]  ;;  %v444_v33 = vld [vmem:[%s966_s3 + $0xc0] sm:$0xff] }
  0x16   : > { %345 = vmatprep.subr.mxu0 %v289_v16  ;;  %666 = vmatpush3.msra.mxu1 %v432_v26  ;;  %v428_v34 = vld [vmem:[%s966_s3 + $0x40] sm:$0xff]  ;;  %v443_v35 = vld [vmem:[%s966_s3 + $0xb8] sm:$0xff]  ;;  %v442_v37 = vld [vmem:[%s966_s3 + $0xb0] sm:$0xff] }
  0x17   : > { %346 = vmatpush1.msra.mxu0 %v288_v17  ;;  %667 = vmatprep.subr.mxu1 %v447_v27  ;;  %v427_v36 = vld [vmem:[%s966_s3 + $0x38] sm:$0xff]  ;;  %v426_v38 = vld [vmem:[%s966_s3 + $0x30] sm:$0xff]  ;;  %v441_v39 = vld [vmem:[%s966_s3 + $0xa8] sm:$0xff] }
  0x18   : > { %347 = vmatprep.subr.mxu0 %v287_v18  ;;  %668 = vmatpush3.msra.mxu1 %v431_v28  ;;  %v425_v40 = vld [vmem:[%s966_s3 + $0x28] sm:$0xff]  ;;  %v440_v41 = vld [vmem:[%s966_s3 + $0xa0] sm:$0xff]  ;;  %v439_v43 = vld [vmem:[%s966_s3 + $0x98] sm:$0xff] }
  0x19   : > { %348 = vmatpush1.msra.mxu0 %v286_v19  ;;  %669 = vmatprep.subr.mxu1 %v446_v29  ;;  %v424_v42 = vld [vmem:[%s966_s3 + $0x20] sm:$0xff]  ;;  %v423_v44 = vld [vmem:[%s966_s3 + $0x18] sm:$0xff]  ;;  %v438_v45 = vld [vmem:[%s966_s3 + $0x90] sm:$0xff] }
  0x1a   : > { %349 = vmatprep.subr.mxu0 %v285_v20  ;;  %670 = vmatpush3.msra.mxu1 %v430_v30  ;;  %v422_v46 = vld [vmem:[%s966_s3 + $0x10] sm:$0xff]  ;;  %v437_v47 = vld [vmem:[%s966_s3 + $0x88] sm:$0xff]  ;;  %v436_v49 = vld [vmem:[%s966_s3 + $0x80] sm:$0xff] }
  0x1b   : > { %350 = vmatpush1.msra.mxu0 %v284_v21  ;;  %671 = vmatprep.subr.mxu1 %v445_v31  ;;  %v421_v48 = vld [vmem:[%s966_s3 + $0x8] sm:$0xff]  ;;  %v420_v50 = vld [vmem:[%s966_s3] sm:$0xff] }
  0x1c   : > { %648 = vmatmul.mubr.msk.f32.vlgmr.msra.gmra.mxu0 %vm312_vm0, %v846_v22  ;;  %672 = vmatpush3.msra.mxu1 %v429_v32  ;;  %v300_v54 = vld [vmem:[%s965_s2] sm:$0x3] }
  0x1d   : > { %389 = vmatprep.mubr.f32.mxu0 %v726_v4  ;;  %673 = vmatprep.subr.mxu1 %v444_v33  ;;  %v305_v56 = vrot.slane %v300_v54, %v304_v53  ;;  %v309_v57 = vrot.slane %v300_v54, %v308_v55  ;;  %v654_v25 = vld [vmem:[%s967_s4] ss:$0 sm:$0xff] }
  0x1e   : > { %674 = vmatpush3.msra.mxu1 %v428_v34  ;;  %v655_v52 = vld [vmem:[%s968_s5] ss:$0 sm:$0xff] }
  0x1f   : > { %675 = vmatprep.subr.mxu1 %v443_v35  ;;  %v656_v54 = vld [vmem:[%s969_s6] ss:$0 sm:$0xff] }
  0x20   : > { %649 = vmatmul.mubr.msk.f32.gmra.mxu0 %vm312_vm0, %v850_v23  ;;  %676 = vmatpush3.msra.mxu1 %v427_v36 }
  0x21   : > { %677 = vmatprep.subr.mxu1 %v442_v37 }
  0x22   : > { %678 = vmatpush3.msra.mxu1 %v426_v38 }
  0x23   : > { %679 = vmatprep.subr.mxu1 %v441_v39 }
  0x24   : > { %680 = vmatpush3.msra.mxu1 %v425_v40 }
  0x25   : > { %681 = vmatprep.subr.mxu1 %v440_v41 }
  0x26   : > { %682 = vmatpush3.msra.mxu1 %v424_v42 }
  0x27   : > { %683 = vmatprep.subr.mxu1 %v439_v43 }
  0x28   : > { %684 = vmatpush3.msra.mxu1 %v423_v44 }
  0x29   : > { %685 = vmatprep.subr.mxu1 %v438_v45 }
  0x2a   : > { %686 = vmatpush3.msra.mxu1 %v422_v46 }
  0x2b   : > { %687 = vmatprep.subr.mxu1 %v437_v47 }
  0x2c   : > { %688 = vmatpush3.msra.mxu1 %v421_v48 }
  0x2d   : > { %689 = vmatprep.subr.mxu1 %v436_v49 }
  0x2e   : > { %690 = vmatpush3.msra.mxu1 %v420_v50 }
  0xdc   : > { %v385_v58 = vpop.f32.mrf.mxu0 }
  0xdd   : > { %v386_v59 = vadd.f32 %v385_v58, %v305_v56 }
  0xde   : > { %v387_v60 = vpop.f32.mrf.mxu0 }
  0xdf   : > { %v400_v61 = vmin.f32 %v386_v59, 0.0  ;;  %v388_v62 = vadd.f32 %v387_v60, %v309_v57  ;;  %vm396_vm2 = vcmp.gt.f32.partialorder %v386_v59, 0.0 }
  0xe0   : > { %v391_v63 = vpop.f32.mrf.mxu0 }
  0xe1   : > { %v404_v0 = vmul.f32 1.442695, %v400_v61  ;;  %v401_v1 = vmin.f32 %v388_v62, 0.0  ;;  %v392_v2 = vadd.f32 %v391_v63, %v305_v56  ;;  %vm397_vm1 = vcmp.gt.f32.partialorder %v388_v62, 0.0 }
  0xe2   : > { %v393_v3 = vpop.f32.mrf.mxu0 }
  0xe3   : > { %706 = vpow2.f32 %v404_v0  ;;  %v406_v4 = vmul.f32 1.442695, %v401_v1  ;;  %v402_v5 = vmin.f32 %v392_v2, 0.0  ;;  %v394_v6 = vadd.f32 %v393_v3, %v309_v57 }
  0xe4   : > { %vm398_vm4 = vcmp.gt.f32.partialorder %v392_v2, 0.0 }
  0xe5   : > { %708 = vpow2.f32 %v406_v4  ;;  %v408_v7 = vmul.f32 1.442695, %v402_v5  ;;  %v403_v8 = vmin.f32 %v394_v6, 0.0  ;;  %vm399_vm3 = vcmp.gt.f32.partialorder %v394_v6, 0.0 }
  0xe7   : > { %710 = vpow2.f32 %v408_v7  ;;  %v410_v9 = vmul.f32 1.442695, %v403_v8 }
  0xe9   : > { %712 = vpow2.f32 %v410_v9 }
  0xf0   : > { %v707_v10 = vpop.eup %706 }
  0xf1   : > { %v650_v12 = vadd.f32 -1.0, %v707_v10 }
  0xf2   : > { %v709_v11 = vpop.eup %708 }
  0xf3   : > { %v651_v13 = vadd.f32 -1.0, %v709_v11  ;;  %v416_v17 = vsel %vm396_vm2, %v386_v59, %v650_v12 }
  0xf4   : > { %v711_v14 = vpop.eup %710 }
  0xf5   : > { %v417_v15 = vsel %vm397_vm1, %v388_v62, %v651_v13  ;;  %v652_v18 = vadd.f32 -1.0, %v711_v14 }
  0xf6   : > { %v713_v16 = vpop.eup %712  ;;  %523 = vmatprep.mubr.f32.mxu1 %v417_v15 }
  0xf7   : > { %524 = vmatmul.mubr.f32.vlgmr.msra.gmra.mxu1 %v416_v17  ;;  %v653_v19 = vadd.f32 -1.0, %v713_v16  ;;  %v418_v21 = vsel %vm398_vm4, %v392_v2, %v652_v18 }
  0xf9   : > { %v419_v20 = vsel %vm399_vm3, %v394_v6, %v653_v19 }
  0xfa   : > { %528 = vmatprep.mubr.f32.mxu1 %v419_v20 }
  0xfb   : > { %529 = vmatmul.mubr.f32.gmra.mxu1 %v418_v21 }
 0x1b7   : > { %v691_v24 = vpop.f32.mrf.mxu1 }
 0x1b9   : > { %v692_v26 = vpop.f32.mrf.mxu1 }
 0x1ba   : > { %v693_v27 = vadd.f32 %v692_v26, %v691_v24 }
 0x1bb   : > { %v694_v28 = vpop.f32.mrf.mxu1 }
 0x1bc   : > { %v526_v29 = vadd.f32 %v693_v27, %v654_v25 }
 0x1bd   : > { %v695_v30 = vpop.f32.mrf.mxu1 }
 0x1be   : > { %v696_v31 = vadd.f32 %v695_v30, %v694_v28  ;;  %v534_v32 = vadd.f32 %v526_v29, %v846_v22 }
 0x1c0   : > { %v531_v33 = vadd.f32 %v696_v31, %v654_v25  ;;  %v536_v34 = vsel %vm312_vm0, %v534_v32, 0.0 }
 0x1c1   : > { %537 = vadd.xlane.f32.xlu0 %v536_v34 }
 0x1c2   : > { %v535_v35 = vadd.f32 %v531_v33, %v850_v23 }
 0x1c4   : > { %v539_v36 = vsel %vm312_vm0, %v535_v35, 0.0 }
 0x1c5   : > { %540 = vadd.xlane.f32.xlu0 %v539_v36 }
 0x24a   : > { %v538_v37 = vpop.xlane.xlu0 %537 }
 0x24b   : > { %v543_v38 = vmul.f32 0.015625, %v538_v37 }
 0x24d   : > { %v545_v39 = vsub.f32 %v534_v32, %v543_v38 }
 0x24e   : > { %v541_v40 = vpop.xlane.xlu0 %540 }
 0x24f   : > { %v544_v41 = vmul.f32 0.015625, %v541_v40  ;;  %v547_v42 = vmul.f32 %v545_v39, %v545_v39 }
 0x251   : > { %v546_v43 = vsub.f32 %v535_v35, %v544_v41  ;;  %v549_v44 = vsel %vm312_vm0, %v547_v42, 0.0 }
 0x252   : > { %550 = vadd.xlane.f32.xlu1 %v549_v44 }
 0x253   : > { %v548_v22 = vmul.f32 %v546_v43, %v546_v43 }
 0x255   : > { %v552_v45 = vsel %vm312_vm0, %v548_v22, 0.0 }
 0x256   : > { %553 = vadd.xlane.f32.xlu1 %v552_v45 }
 0x2db   : > { %v551_v46 = vpop.xlane.xlu1 %550 }
 0x2dc   : > { %v555_v23 = vmul.f32 0.015625, %v551_v46 }
 0x2de   : > { %v557_v47 = vadd.f32 1e-05, %v555_v23 }
 0x2df   : > { %v554_v48 = vpop.xlane.xlu1 %553 }
 0x2e0   : > { %714 = vrsqrt.f32 %v557_v47  ;;  %v556_v49 = vmul.f32 0.015625, %v554_v48 }
 0x2e2   : > { %v558_v50 = vadd.f32 1e-05, %v556_v49 }
 0x2e4   : > { %716 = vrsqrt.f32 %v558_v50 }
 0x2ed   : > { %v715_v51 = vpop.eup %714 }
 0x2ee   : > { %v561_v53 = vmul.f32 %v715_v51, %v545_v39 }
 0x2f0   : > { %v570_v55 = vmul.f32 %v655_v52, %v561_v53 }
 0x2f1   : > { %v717_v56 = vpop.eup %716 }
 0x2f2   : > { %v579_v57 = vadd.f32 %v656_v54, %v570_v55  ;;  %v562_v58 = vmul.f32 %v717_v56, %v546_v43 }
 0x2f4   : > { %581 = vst.msk [vmem:[%s280_s12] sm:$0xff] %vm312_vm0, %v579_v57  ;;  %v571_v59 = vmul.f32 %v655_v52, %v562_v58 }
 0x2f6   : > { %v580_v60 = vadd.f32 %v656_v54, %v571_v59 }
 0x2f8   : > { %582 = vst.msk [vmem:[%s280_s12 + $0x8] sm:$0xff] %vm312_vm0, %v580_v60 }
 0x2f9 PF: > { %s17_s24 = sadd.s32 1, %s724_s24  }
 0x2fa   : > { %p14_p4 = scmp.ge.s32.totalorder %s17_s24, 4  }
 0x2fc   :  { %16 = sbr.rel (!%p14_p4) target bundleno = 1 (0x1), region = 78 }

// kernel: transformer_forward.14
= control target key start
LH: loop header
LB: loop body
LE: loop exit
PB: predicated region body
PF: predicated region fallthrough
CT: control target
= control target key end

     0   :  { %s1997_s13 = smov 0   ;;  %s2233_s0 = inlined_call_operand.vmem [shape: f32[2,16,64], index: 0, kind: input, shape index: {}, may-alias: {0,1}]   ;;  %s2234_s1 = inlined_call_operand.vmem [shape: f32[2,16,64], index: 1, kind: input, shape index: {}, may-alias: {0,1}]   ;;  %s2235_s2 = inlined_call_operand.vmem [shape: f32[64,64], index: 2, kind: input, shape index: {}]   ;;  %s2236_s3 = inlined_call_operand.vmem [shape: f32[1,64], index: 3, kind: input, shape index: {}]   ;;  %s2237_s4 = inlined_call_operand.vmem [shape: f32[64,128], index: 4, kind: input, shape index: {}]   ;;  %s2238_s5 = inlined_call_operand.vmem [shape: f32[1,128], index: 5, kind: input, shape index: {}]   ;;  %s2239_s6 = inlined_call_operand.vmem [shape: f32[64,64], index: 6, kind: input, shape index: {}]   ;;  %s2240_s7 = inlined_call_operand.vmem [shape: f32[1,64], index: 7, kind: input, shape index: {}]   ;;  %s2241_s8 = inlined_call_operand.vmem [shape: f32[1,64], index: 8, kind: input, shape index: {}]   ;;  %s2242_s9 = inlined_call_operand.vmem [shape: f32[1,64], index: 9, kind: input, shape index: {}]   ;;  %s2243_s10 = inlined_call_operand.vmem [shape: f32[2,16,64], index: 10, kind: output, shape index: {}]  }
   0x1 LB: > { %s1650_s14 = sadd.s32 4294967295, %s1933_s13   ;;  %p1654_p0 = scmp.ge.s32.totalorder %s1933_s13, 1  ;;  %s1933_s13 = sphi %s1997_s13, %s20_s13  }
   0x2   : > { %p322_p1 = scmp.lt.s32.totalorder %s1933_s13, 3 }
   0x4   : > { %p323_p2 = pnand %p1654_p0, %p322_p1 }
   0x5   : > { %p365_p3 = scmp.lt.s32.totalorder (!%p323_p2), %s1650_s14, 1  ;;  %s1935_s21 = smov (!%p323_p2), 64  }
   0x6   : > { %326 = sbr.rel (%p323_p2) target bundleno = 3157 (0xc55), region = 60  ;;  %s1936_s22 = smov (!%p323_p2), 112  }
   0x7   : > { %s1938_s24 = smov (!%p323_p2), 96   ;;  %s1939_s25 = smov (!%p323_p2), 32  }
   0x8   : > { %s1940_s26 = smov (!%p323_p2), 80   ;;  %s1941_s27 = smov (!%p323_p2), 16  }
   0xb   : > { %v488_v0 = vld [vmem:[%s2237_s4 + $0x38] sm:$0xff]  ;;  %v487_v1 = vld [vmem:[%s2237_s4 + $0x30] sm:$0xff]  ;;  %v486_v4 = vld [vmem:[%s2237_s4 + $0x28] sm:$0xff]  ;;  %s2245_s14 = smov (!%p365_p3, %s1650_s14), 1  ;;  %vm399_vm0 = vcmask 523264   ;;  %vm577_vm1 = vcmask 130048  }
   0xc   : > { %v391_v2 = vld [vmem:[%s2235_s2 + $0x38] sm:$0xff]  ;;  %1782 = vmatprep.subr.mxu1 %v488_v0  ;;  %v390_v3 = vld [vmem:[%s2235_s2 + $0x30] sm:$0xff]  ;;  %v389_v5 = vld [vmem:[%s2235_s2 + $0x28] sm:$0xff]  ;;  %s2029_s11 = sshll.u32 %s2245_s14, 4  ;;  %vm1432_vm2 = vcmask 261120   ;;  %vm1435_vm3 = vcmask 392192  }
   0xd   : > { %1763 = vmatprep.subr.mxu0 %v391_v2  ;;  %1783 = vmatpush3.msra.mxu1 %v488_v0  ;;  %v485_v6 = vld [vmem:[%s2237_s4 + $0x20] sm:$0xff]  ;;  %v484_v8 = vld [vmem:[%s2237_s4 + $0x18] sm:$0xff]  ;;  %v483_v10 = vld [vmem:[%s2237_s4 + $0x10] sm:$0xff]  ;;  %s374_s23 = scalar_lea.vmem %s2234_s1, %s2029_s11  ;;  %s369_s15 = scalar_lea.vmem %s2233_s0, %s2029_s11 }
   0xe   : > { %1764 = vmatpush3.msra.mxu0 %v391_v2  ;;  %1784 = vmatprep.subr.mxu1 %v487_v1  ;;  %v388_v7 = vld [vmem:[%s2235_s2 + $0x20] sm:$0xff]  ;;  %v387_v9 = vld [vmem:[%s2235_s2 + $0x18] sm:$0xff]  ;;  %v386_v11 = vld [vmem:[%s2235_s2 + $0x10] sm:$0xff]  ;;  %s379_s17 = scalar_lea.vmem %s2243_s10, %s2029_s11 }
   0xf   : > { %1765 = vmatprep.subr.mxu0 %v390_v3  ;;  %1785 = vmatpush3.msra.mxu1 %v487_v1  ;;  %v482_v12 = vld [vmem:[%s2237_s4 + $0x8] sm:$0xff]  ;;  %v382_v14 = vld [vmem:[%s374_s23] sm:$0xff] }
  0x10   : > { %1766 = vmatpush3.msra.mxu0 %v390_v3  ;;  %1786 = vmatprep.subr.mxu1 %v486_v4  ;;  %v385_v13 = vld [vmem:[%s2235_s2 + $0x8] sm:$0xff]  ;;  %v481_v15 = vld [vmem:[%s2237_s4] sm:$0xff] }
  0x11   : > { %1767 = vmatprep.subr.mxu0 %v389_v5  ;;  %1787 = vmatpush3.msra.mxu1 %v486_v4  ;;  %v384_v16 = vld [vmem:[%s2235_s2] sm:$0xff]  ;;  %v383_v17 = vld [vmem:[%s374_s23 + $0x8] sm:$0xff]  ;;  %s1937_s23 = smov 48  }
  0x12   : > { %1768 = vmatpush3.msra.mxu0 %v389_v5  ;;  %1788 = vmatprep.subr.mxu1 %v485_v6  ;;  %v2064_v18 = vld [vmem:[%s369_s15] sm:$0xff]  ;;  %v2066_v19 = vld [vmem:[%s369_s15 + $0x8] sm:$0xff] }
  0x13   : > { %1769 = vmatprep.subr.mxu0 %v388_v7  ;;  %1789 = vmatpush3.msra.mxu1 %v485_v6  ;;  %v1664_v20 = vld [vmem:[%s2238_s5] ss:$0 sm:$0xff] }
  0x14   : > { %1770 = vmatpush3.msra.mxu0 %v388_v7  ;;  %1790 = vmatprep.subr.mxu1 %v484_v8  ;;  %v1661_v25 = vld [vmem:[%s2236_s3] ss:$0 sm:$0xff] }
  0x15   : > { %1771 = vmatprep.subr.mxu0 %v387_v9  ;;  %1791 = vmatpush3.msra.mxu1 %v484_v8 }
  0x16   : > { %1772 = vmatpush3.msra.mxu0 %v387_v9  ;;  %1792 = vmatprep.subr.mxu1 %v483_v10 }
  0x17   : > { %1773 = vmatprep.subr.mxu0 %v386_v11  ;;  %1793 = vmatpush3.msra.mxu1 %v483_v10 }
  0x18   : > { %1774 = vmatpush3.msra.mxu0 %v386_v11  ;;  %1794 = vmatprep.subr.mxu1 %v482_v12 }
  0x19   : > { %1775 = vmatprep.subr.mxu0 %v385_v13  ;;  %1795 = vmatpush3.msra.mxu1 %v482_v12 }
  0x1a   : > { %1798 = vmatprep.mubr.msk.f32.mxu1 %vm399_vm0, %v382_v14  ;;  %1796 = vmatprep.subr.mxu1 %v481_v15 }
  0x1b   : > { %1776 = vmatpush3.msra.mxu0 %v385_v13  ;;  %1797 = vmatpush3.msra.mxu1 %v481_v15 }
  0x1c   : > { %1777 = vmatprep.subr.mxu0 %v384_v16  ;;  %1799 = vmatmul.mubr.msk.f32.vlgmr.msra.gmra.mxu1 %vm399_vm0, %v383_v17 }
  0x1d   : > { %1778 = vmatpush3.msra.mxu0 %v384_v16  ;;  %1779 = vmatprep.mubr.msk.f32.mxu0 %vm399_vm0, %v2064_v18 }
  0x1e   : > { %1780 = vmatmul.mubr.msk.f32.vlgmr.msra.gmra.mxu0 %vm399_vm0, %v2066_v19 }
  0xdc   : > { %v1800_v21 = vpop.f32.mrf.mxu1 }
  0xdd   : > { %v2076_v22 = vadd.f32 %v1800_v21, %v1664_v20 }
  0xde   : > { %v568_v23 = vpop.f32.mrf.mxu1  ;;  %v1781_v24 = vpop.f32.mrf.mxu0 }
  0xdf   : > { %v2081_v26 = vadd.f32 %v1664_v20, %v568_v23  ;;  %1801 = vmatprep.subr.msk.mxu1 %vm577_vm1, %v2076_v22  ;;  %v2096_v29 = vadd.f32 %v1781_v24, %v1661_v25 }
  0xe0   : > { %1802 = vmatpush3.xpose.msk.msra.mxu1 %vm577_vm1, %v2076_v22  ;;  %v472_v27 = vpop.f32.mrf.mxu0 }
  0xe1   : > { %695 = vrot.lane.b32.xlu1 %v2081_v26, %s1935_s21  ;;  %v2088_v28 = vadd.f32 %v1661_v25, %v472_v27  ;;  %1803 = vmatprep.subr.msk.mxu1 %vm577_vm1, %v2081_v26 }
  0xe3   : > { %1805 = vmatprep.mubr.msk.f32.mxu1 %vm577_vm1, %v2088_v28 }
  0xe4   : > { %1804 = vmatpush3.xpose.msk.msra.mxu1 %vm577_vm1, %v2081_v26 }
  0xe7   : > { %1806 = vmatmul.mubr.msk.f32.vlgmr.msra.gmra.mxu1 %vm577_vm1, %v2096_v29 }
 0x153   : > { %v696_v43 = vpop.permute.xlu1 %695 }
 0x1a7   : > { %v1807_v30 = vpop.f32.mrf.mxu1 }
 0x1a8   : > { %v666_v33 = vmul.f32 0.25, %v1807_v30 }
 0x1a9   : > { %v656_v31 = vpop.f32.mrf.mxu1 }
 0x1aa   : > { %v665_v32 = vmul.f32 0.25, %v656_v31  ;;  %v670_v35 = vsel %vm577_vm1, %v666_v33, -inf }
 0x1ac   : > { %v667_v34 = vsel %vm577_vm1, %v665_v32, -inf }
 0x1ad   : > { %668 = vmax.xlane.f32.xlu0 %v667_v34 }
 0x1b1   : > { %671 = vmax.xlane.f32.xlu0 %v670_v35 }
 0x1c7   : > { %697 = vrot.lane.b32.xlu0 %v2076_v22, %s1935_s21 }
 0x1cb   : > { %782 = vrot.lane.b32.xlu0 %v2088_v28, %s1936_s22 }
 0x236   : > { %v669_v36 = vpop.xlane.xlu0 %668 }
 0x237   : > { %v673_v37 = vsub.f32 %v665_v32, %v669_v36 }
 0x239   : > { %v675_v40 = vmul.f32 1.442695, %v673_v37 }
 0x23a   : > { %v672_v38 = vpop.xlane.xlu0 %671 }
 0x23b   : > { %v674_v39 = vsub.f32 %v666_v33, %v672_v38 }
 0x23d   : > { %v677_v41 = vmul.f32 1.442695, %v674_v39 }
 0x23e   : > { %v698_v42 = vpop.permute.xlu0 %697 }
 0x23f   : > { %1891 = vpow2.f32 %v677_v41  ;;  %1808 = vmatprep.subr.mxu1 %v698_v42 }
 0x240   : > { %1809 = vmatpush3.msra.mxu1 %v698_v42  ;;  %1893 = vpow2.f32 %v675_v40 }
 0x241   : > { %1810 = vmatprep.subr.mxu1 %v696_v43 }
 0x242   : > { %1811 = vmatpush3.msra.mxu1 %v696_v43  ;;  %v783_v61 = vpop.permute.xlu0 %782 }
 0x24c   : > { %v1892_v44 = vpop.eup %1891 }
 0x24d   : > { %v682_v45 = vsel %vm577_vm1, %v1892_v44, 0.0  ;;  %v1894_v46 = vpop.eup %1893 }
 0x24e   : > { %683 = vadd.xlane.f32.xlu1 %v682_v45  ;;  %v679_v47 = vsel %vm577_vm1, %v1894_v46, 0.0 }
 0x252   : > { %680 = vadd.xlane.f32.xlu1 %v679_v47 }
 0x263   : > { %788 = vrot.lane.b32.xlu1 %v2076_v22, %s1936_s22 }
 0x267   : > { %786 = vrot.lane.b32.xlu1 %v2081_v26, %s1936_s22 }
 0x26b   : > { %784 = vrot.lane.b32.xlu1 %v2096_v29, %s1936_s22 }
 0x2d7   : > { %v684_v48 = vpop.xlane.xlu1 %683 }
 0x2d8   : > { %1895 = vrcp.f32 %v684_v48 }
 0x2db   : > { %v681_v49 = vpop.xlane.xlu1 %680 }
 0x2dc   : > { %1897 = vrcp.f32 %v681_v49 }
 0x2df   : > { %v789_v50 = vpop.permute.xlu1 %788 }
 0x2e0   : > { %1815 = vmatprep.subr.msk.mxu1 %vm577_vm1, %v789_v50 }
 0x2e3   : > { %v787_v62 = vpop.permute.xlu1 %786 }
 0x2e5   : > { %v1896_v51 = vpop.eup %1895 }
 0x2e6   : > { %v688_v52 = vmul.f32 %v1896_v51, %v684_v48 }
 0x2e7   : > { %v785_v63 = vpop.permute.xlu1 %784 }
 0x2e8   : > { %v690_v54 = vsub.f32 2.0, %v688_v52 }
 0x2e9   : > { %v1898_v53 = vpop.eup %1897 }
 0x2ea   : > { %v687_v55 = vmul.f32 %v1898_v53, %v681_v49  ;;  %v692_v57 = vmul.f32 %v1896_v51, %v690_v54 }
 0x2ec   : > { %v689_v56 = vsub.f32 2.0, %v687_v55  ;;  %v694_v60 = vmul.f32 %v1892_v44, %v692_v57 }
 0x2ee   : > { %v691_v58 = vmul.f32 %v1898_v53, %v689_v56 }
 0x2f0   : > { %v693_v59 = vmul.f32 %v1894_v46, %v691_v58 }
 0x2f2   : > { %1812 = vmatprep.mubr.msk.f32.mxu1 %vm577_vm1, %v693_v59 }
 0x2f3   : > { %1813 = vmatmul.mubr.msk.f32.vlgmr.msra.gmra.mxu1 %vm577_vm1, %v694_v60 }
 0x2f4   : > { %1816 = vmatpush3.xpose.msk.msra.mxu1 %vm577_vm1, %v789_v50  ;;  %1819 = vmatprep.mubr.msk.f32.mxu1 %vm577_vm1, %v783_v61 }
 0x2f5   : > { %1817 = vmatprep.subr.msk.mxu1 %vm577_vm1, %v787_v62 }
 0x2f8   : > { %1818 = vmatpush3.xpose.msk.msra.mxu1 %vm577_vm1, %v787_v62 }
 0x2fb   : > { %1820 = vmatmul.mubr.msk.f32.vlgmr.msra.gmra.mxu1 %vm577_vm1, %v785_v63 }
 0x3b3   : > { %v2117_v0 = vpop.f32.mrf.mxu1 }
 0x3b5   : > { %v2119_v1 = vpop.f32.mrf.mxu1 }
 0x3bb   : > { %v1821_v2 = vpop.f32.mrf.mxu1 }
 0x3bc   : > { %v874_v3 = vmul.f32 0.25, %v1821_v2 }
 0x3bd   : > { %v864_v4 = vpop.f32.mrf.mxu1 }
 0x3be   : > { %v873_v5 = vmul.f32 0.25, %v864_v4  ;;  %v878_v6 = vsel %vm577_vm1, %v874_v3, -inf }
 0x3bf   : > { %879 = vmax.xlane.f32.xlu1 %v878_v6 }
 0x3c0   : > { %v875_v7 = vsel %vm577_vm1, %v873_v5, -inf }
 0x3c1   : > { %876 = vmax.xlane.f32.xlu0 %v875_v7 }
 0x3d0   : > { %903 = vrot.lane.b32.xlu1 %v2081_v26, %s1937_s23 }
 0x3d4   : > { %996 = vrot.lane.b32.xlu1 %v2076_v22, %s1938_s24 }
 0x3d8   : > { %994 = vrot.lane.b32.xlu1 %v2081_v26, %s1938_s24 }
 0x3dc   : > { %992 = vrot.lane.b32.xlu1 %v2096_v29, %s1938_s24 }
 0x448   : > { %v880_v8 = vpop.xlane.xlu1 %879 }
 0x449   : > { %v882_v9 = vsub.f32 %v874_v3, %v880_v8 }
 0x44a   : > { %v877_v10 = vpop.xlane.xlu0 %876 }
 0x44b   : > { %v885_v11 = vmul.f32 1.442695, %v882_v9  ;;  %v881_v12 = vsub.f32 %v873_v5, %v877_v10 }
 0x44c   : > { %v904_v23 = vpop.permute.xlu1 %903 }
 0x44d   : > { %1899 = vpow2.f32 %v885_v11  ;;  %v883_v13 = vmul.f32 1.442695, %v881_v12 }
 0x44f   : > { %1901 = vpow2.f32 %v883_v13 }
 0x450   : > { %v997_v25 = vpop.permute.xlu1 %996 }
 0x454   : > { %v995_v40 = vpop.permute.xlu1 %994 }
 0x458   : > { %v993_v41 = vpop.permute.xlu1 %992 }
 0x45a   : > { %v1900_v14 = vpop.eup %1899 }
 0x45b   : > { %v890_v15 = vsel %vm577_vm1, %v1900_v14, 0.0 }
 0x45c   : > { %v1902_v16 = vpop.eup %1901  ;;  %891 = vadd.xlane.f32.xlu0 %v890_v15 }
 0x45d   : > { %v887_v17 = vsel %vm577_vm1, %v1902_v16, 0.0 }
 0x460   : > { %888 = vadd.xlane.f32.xlu0 %v887_v17 }
 0x476   : > { %905 = vrot.lane.b32.xlu0 %v2076_v22, %s1937_s23 }
 0x47a   : > { %990 = vrot.lane.b32.xlu0 %v2088_v28, %s1938_s24 }
 0x4e5   : > { %v892_v20 = vpop.xlane.xlu0 %891 }
 0x4e6   : > { %1903 = vrcp.f32 %v892_v20 }
 0x4e9   : > { %v889_v21 = vpop.xlane.xlu0 %888 }
 0x4ea   : > { %1905 = vrcp.f32 %v889_v21 }
 0x4ed   : > { %v906_v24 = vpop.permute.xlu0 %905 }
 0x4ee   : > { %1822 = vmatprep.subr.mxu0 %v906_v24 }
 0x4ef   : > { %1823 = vmatpush3.msra.mxu0 %v906_v24 }
 0x4f0   : > { %1824 = vmatprep.subr.mxu0 %v904_v23 }
 0x4f1   : > { %1825 = vmatpush3.msra.mxu0 %v904_v23  ;;  %v991_v39 = vpop.permute.xlu0 %990 }
 0x4f2   : > { %1829 = vmatprep.subr.msk.mxu0 %vm577_vm1, %v997_v25 }
 0x4f3   : > { %v1904_v27 = vpop.eup %1903 }
 0x4f4   : > { %v896_v30 = vmul.f32 %v1904_v27, %v892_v20 }
 0x4f6   : > { %v898_v32 = vsub.f32 2.0, %v896_v30 }
 0x4f7   : > { %v1906_v31 = vpop.eup %1905 }
 0x4f8   : > { %v895_v33 = vmul.f32 %v1906_v31, %v889_v21  ;;  %v900_v35 = vmul.f32 %v1904_v27, %v898_v32 }
 0x4fa   : > { %v897_v34 = vsub.f32 2.0, %v895_v33  ;;  %v902_v38 = vmul.f32 %v1900_v14, %v900_v35 }
 0x4fc   : > { %v899_v36 = vmul.f32 %v1906_v31, %v897_v34 }
 0x4fe   : > { %v901_v37 = vmul.f32 %v1902_v16, %v899_v36 }
 0x500   : > { %1826 = vmatprep.mubr.msk.f32.mxu0 %vm577_vm1, %v901_v37 }
 0x501   : > { %1827 = vmatmul.mubr.msk.f32.vlgmr.msra.gmra.mxu0 %vm577_vm1, %v902_v38 }
 0x502   : > { %1830 = vmatpush3.xpose.msk.msra.mxu0 %vm577_vm1, %v997_v25  ;;  %1833 = vmatprep.mubr.msk.f32.mxu0 %vm577_vm1, %v991_v39 }
 0x503   : > { %1831 = vmatprep.subr.msk.mxu0 %vm577_vm1, %v995_v40 }
 0x506   : > { %1832 = vmatpush3.xpose.msk.msra.mxu0 %vm577_vm1, %v995_v40 }
 0x509   : > { %1834 = vmatmul.mubr.msk.f32.vlgmr.msra.gmra.mxu0 %vm577_vm1, %v993_v41 }
 0x5c1   : > { %v2141_v42 = vpop.f32.mrf.mxu0 }
 0x5c3   : > { %v2143_v43 = vpop.f32.mrf.mxu0 }
 0x5c9   : > { %v1835_v44 = vpop.f32.mrf.mxu0 }
 0x5ca   : > { %v1082_v45 = vmul.f32 0.25, %v1835_v44 }
 0x5cb   : > { %v1072_v46 = vpop.f32.mrf.mxu0 }
 0x5cc   : > { %v1081_v47 = vmul.f32 0.25, %v1072_v46  ;;  %v1086_v48 = vsel %vm577_vm1, %v1082_v45, -inf }
 0x5cd   : > { %1087 = vmax.xlane.f32.xlu1 %v1086_v48 }
 0x5ce   : > { %v1083_v49 = vsel %vm577_vm1, %v1081_v47, -inf }
 0x5cf   : > { %1084 = vmax.xlane.f32.xlu0 %v1083_v49 }
 0x5de   : > { %1111 = vrot.lane.b32.xlu1 %v2081_v26, %s1939_s25 }
 0x5e2   : > { %1204 = vrot.lane.b32.xlu1 %v2076_v22, %s1940_s26 }
 0x5e6   : > { %1202 = vrot.lane.b32.xlu1 %v2081_v26, %s1940_s26 }
 0x5ea   : > { %1200 = vrot.lane.b32.xlu1 %v2096_v29, %s1940_s26 }
 0x656   : > { %v1088_v50 = vpop.xlane.xlu1 %1087 }
 0x657   : > { %v1090_v51 = vsub.f32 %v1082_v45, %v1088_v50  ;;  %v1445_v50 = vld [vmem:[%s2239_s6 + $0x38] sm:$0xff] }
 0x658   : > { %v1085_v52 = vpop.xlane.xlu0 %1084 }
 0x659   : > { %v1093_v53 = vmul.f32 1.442695, %v1090_v51  ;;  %v1089_v54 = vsub.f32 %v1081_v47, %v1085_v52  ;;  %v1444_v51 = vld [vmem:[%s2239_s6 + $0x30] sm:$0xff]  ;;  %v1443_v52 = vld [vmem:[%s2239_s6 + $0x28] sm:$0xff] }
 0x65a   : > { %v1112_v61 = vpop.permute.xlu1 %1111 }
 0x65b   : > { %1907 = vpow2.f32 %v1093_v53  ;;  %v1091_v55 = vmul.f32 1.442695, %v1089_v54  ;;  %v1442_v53 = vld [vmem:[%s2239_s6 + $0x20] sm:$0xff]  ;;  %v1441_v54 = vld [vmem:[%s2239_s6 + $0x18] sm:$0xff] }
 0x65d   : > { %1909 = vpow2.f32 %v1091_v55  ;;  %v1440_v55 = vld [vmem:[%s2239_s6 + $0x10] sm:$0xff] }
 0x65e   : > { %v1205_v63 = vpop.permute.xlu1 %1204 }
 0x662   : > { %v1203_v12 = vpop.permute.xlu1 %1202 }
 0x666   : > { %v1201_v13 = vpop.permute.xlu1 %1200 }
 0x668   : > { %v1908_v56 = vpop.eup %1907 }
 0x669   : > { %v1098_v57 = vsel %vm577_vm1, %v1908_v56, 0.0 }
 0x66a   : > { %v1910_v58 = vpop.eup %1909  ;;  %1099 = vadd.xlane.f32.xlu0 %v1098_v57  ;;  %v1438_v57 = vld [vmem:[%s2239_s6] sm:$0xff] }
 0x66b   : > { %v1095_v59 = vsel %vm577_vm1, %v1910_v58, 0.0 }
 0x66e   : > { %1096 = vadd.xlane.f32.xlu0 %v1095_v59 }
 0x684   : > { %1113 = vrot.lane.b32.xlu0 %v2076_v22, %s1939_s25 }
 0x688   : > { %1198 = vrot.lane.b32.xlu0 %v2088_v28, %s1940_s26 }
 0x6f3   : > { %v1100_v29 = vpop.xlane.xlu0 %1099 }
 0x6f4   : > { %1911 = vrcp.f32 %v1100_v29 }
 0x6f7   : > { %v1097_v60 = vpop.xlane.xlu0 %1096 }
 0x6f8   : > { %1913 = vrcp.f32 %v1097_v60 }
 0x6fb   : > { %v1114_v62 = vpop.permute.xlu0 %1113 }
 0x6fc   : > { %1836 = vmatprep.subr.mxu1 %v1114_v62 }
 0x6fd   : > { %1837 = vmatpush3.msra.mxu1 %v1114_v62 }
 0x6fe   : > { %1838 = vmatprep.subr.mxu1 %v1112_v61 }
 0x6ff   : > { %1839 = vmatpush3.msra.mxu1 %v1112_v61  ;;  %v1199_v11 = vpop.permute.xlu0 %1198 }
 0x700   : > { %1843 = vmatprep.subr.msk.mxu1 %vm577_vm1, %v1205_v63 }
 0x701   : > { %v1912_v2 = vpop.eup %1911 }
 0x702   : > { %v1104_v3 = vmul.f32 %v1912_v2, %v1100_v29 }
 0x704   : > { %v1106_v5 = vsub.f32 2.0, %v1104_v3 }
 0x705   : > { %v1914_v4 = vpop.eup %1913 }
 0x706   : > { %v1103_v6 = vmul.f32 %v1914_v4, %v1097_v60  ;;  %v1108_v28 = vmul.f32 %v1912_v2, %v1106_v5 }
 0x708   : > { %v1105_v7 = vsub.f32 2.0, %v1103_v6  ;;  %v1110_v10 = vmul.f32 %v1908_v56, %v1108_v28  ;;  %v1439_v56 = vld [vmem:[%s2239_s6 + $0x8] sm:$0xff] }
 0x70a   : > { %v1107_v8 = vmul.f32 %v1914_v4, %v1105_v7 }
 0x70c   : > { %v1109_v9 = vmul.f32 %v1910_v58, %v1107_v8  ;;  %v1691_v8 = vld [vmem:[%s2240_s7] ss:$0 sm:$0xff] }
 0x70e   : > { %1840 = vmatprep.mubr.msk.f32.mxu1 %vm577_vm1, %v1109_v9 }
 0x70f   : > { %1841 = vmatmul.mubr.msk.f32.vlgmr.msra.gmra.mxu1 %vm577_vm1, %v1110_v10 }
 0x710   : > { %1844 = vmatpush3.xpose.msk.msra.mxu1 %vm577_vm1, %v1205_v63  ;;  %1847 = vmatprep.mubr.msk.f32.mxu1 %vm577_vm1, %v1199_v11 }
 0x711   : > { %1845 = vmatprep.subr.msk.mxu1 %vm577_vm1, %v1203_v12 }
 0x714   : > { %1846 = vmatpush3.xpose.msk.msra.mxu1 %vm577_vm1, %v1203_v12 }
 0x717   : > { %1848 = vmatmul.mubr.msk.f32.vlgmr.msra.gmra.mxu1 %vm577_vm1, %v1201_v13 }
 0x7cf   : > { %v1842_v14 = vpop.f32.mrf.mxu1 }
 0x7d1   : > { %v1189_v15 = vpop.f32.mrf.mxu1 }
 0x7d7   : > { %v1849_v16 = vpop.f32.mrf.mxu1 }
 0x7d8   : > { %v1290_v17 = vmul.f32 0.25, %v1849_v16 }
 0x7d9   : > { %v1280_v20 = vpop.f32.mrf.mxu1 }
 0x7da   : > { %v1289_v21 = vmul.f32 0.25, %v1280_v20  ;;  %v1294_v23 = vsel %vm577_vm1, %v1290_v17, -inf }
 0x7db   : > { %1295 = vmax.xlane.f32.xlu1 %v1294_v23 }
 0x7dc   : > { %v1291_v24 = vsel %vm577_vm1, %v1289_v21, -inf }
 0x7dd   : > { %1292 = vmax.xlane.f32.xlu0 %v1291_v24 }
 0x7ec   : > { %1319 = vrot.lane.b32.xlu1 %v2081_v26, %s1941_s27 }
 0x7f0   : > { %1408 = vrot.lane.b32.xlu1 %v2143_v43, %s1941_s27 }
 0x7f4   : > { %1410 = vrot.lane.b32.xlu1 %v2141_v42, %s1941_s27 }
 0x7f8   : > { %1418 = vrot.lane.b32.xlu1 %v1842_v14, %s1939_s25 }
 0x864   : > { %v1296_v25 = vpop.xlane.xlu1 %1295 }
 0x865   : > { %v1298_v27 = vsub.f32 %v1290_v17, %v1296_v25 }
 0x866   : > { %v1293_v30 = vpop.xlane.xlu0 %1292 }
 0x867   : > { %v1301_v31 = vmul.f32 1.442695, %v1298_v27  ;;  %v1297_v32 = vsub.f32 %v1289_v21, %v1293_v30 }
 0x868   : > { %v1320_v40 = vpop.permute.xlu1 %1319 }
 0x869   : > { %1915 = vpow2.f32 %v1301_v31  ;;  %v1299_v33 = vmul.f32 1.442695, %v1297_v32 }
 0x86b   : > { %1917 = vpow2.f32 %v1299_v33 }
 0x86c   : > { %v1409_v29 = vpop.permute.xlu1 %1408 }
 0x86d   : > { %v1430_v63 = vsel %vm577_vm1, %v2119_v1, %v1409_v29 }
 0x870   : > { %v1411_v60 = vpop.permute.xlu1 %1410 }
 0x871   : > { %v1431_v3 = vsel %vm577_vm1, %v2117_v0, %v1411_v60 }
 0x874   : > { %v1419_v61 = vpop.permute.xlu1 %1418 }
 0x875   : > { %v1434_v6 = vsel %vm1432_vm2, %v1431_v3, %v1419_v61 }
 0x876   : > { %v1916_v34 = vpop.eup %1915 }
 0x877   : > { %v1306_v35 = vsel %vm577_vm1, %v1916_v34, 0.0 }
 0x878   : > { %v1918_v36 = vpop.eup %1917  ;;  %1307 = vadd.xlane.f32.xlu0 %v1306_v35 }
 0x879   : > { %v1303_v26 = vsel %vm577_vm1, %v1918_v36, 0.0 }
 0x87c   : > { %1304 = vadd.xlane.f32.xlu0 %v1303_v26 }
 0x892   : > { %1321 = vrot.lane.b32.xlu0 %v2076_v22, %s1941_s27 }
 0x896   : > { %1416 = vrot.lane.b32.xlu0 %v1189_v15, %s1939_s25 }
 0x901   : > { %v1308_v37 = vpop.xlane.xlu0 %1307 }
 0x902   : > { %1919 = vrcp.f32 %v1308_v37 }
 0x905   : > { %v1305_v38 = vpop.xlane.xlu0 %1304 }
 0x906   : > { %1921 = vrcp.f32 %v1305_v38 }
 0x909   : > { %v1322_v39 = vpop.permute.xlu0 %1321 }
 0x90a   : > { %1850 = vmatprep.subr.mxu0 %v1322_v39 }
 0x90b   : > { %1851 = vmatpush3.msra.mxu0 %v1322_v39 }
 0x90c   : > { %1852 = vmatprep.subr.mxu0 %v1320_v40 }
 0x90d   : > { %1853 = vmatpush3.msra.mxu0 %v1320_v40  ;;  %v1417_v62 = vpop.permute.xlu0 %1416 }
 0x90e   : > { %1857 = vmatprep.subr.mxu0 %v1445_v50  ;;  %v1433_v4 = vsel %vm1432_vm2, %v1430_v63, %v1417_v62 }
 0x90f   : > { %v1920_v41 = vpop.eup %1919 }
 0x910   : > { %v1312_v42 = vmul.f32 %v1920_v41, %v1308_v37  ;;  %v1695_v37 = vld [vmem:[%s2242_s9] ss:$0 sm:$0xff] }
 0x912   : > { %v1314_v44 = vsub.f32 2.0, %v1312_v42 }
 0x913   : > { %v1922_v43 = vpop.eup %1921 }
 0x914   : > { %v1311_v45 = vmul.f32 %v1922_v43, %v1305_v38  ;;  %v1316_v47 = vmul.f32 %v1920_v41, %v1314_v44 }
 0x916   : > { %v1313_v46 = vsub.f32 2.0, %v1311_v45  ;;  %v1318_v49 = vmul.f32 %v1916_v34, %v1316_v47 }
 0x918   : > { %v1315_v22 = vmul.f32 %v1922_v43, %v1313_v46 }
 0x91a   : > { %v1317_v48 = vmul.f32 %v1918_v36, %v1315_v22  ;;  %v1694_v36 = vld [vmem:[%s2241_s8] ss:$0 sm:$0xff] }
 0x91c   : > { %1854 = vmatprep.mubr.msk.f32.mxu0 %vm577_vm1, %v1317_v48 }
 0x91d   : > { %1855 = vmatmul.mubr.msk.f32.vlgmr.msra.gmra.mxu0 %vm577_vm1, %v1318_v49 }
 0x91e   : > { %1858 = vmatpush3.msra.mxu0 %v1445_v50 }
 0x91f   : > { %1859 = vmatprep.subr.mxu0 %v1444_v51 }
 0x920   : > { %1860 = vmatpush3.msra.mxu0 %v1444_v51 }
 0x921   : > { %1861 = vmatprep.subr.mxu0 %v1443_v52 }
 0x922   : > { %1862 = vmatpush3.msra.mxu0 %v1443_v52 }
 0x923   : > { %1863 = vmatprep.subr.mxu0 %v1442_v53 }
 0x924   : > { %1864 = vmatpush3.msra.mxu0 %v1442_v53 }
 0x925   : > { %1865 = vmatprep.subr.mxu0 %v1441_v54 }
 0x926   : > { %1866 = vmatpush3.msra.mxu0 %v1441_v54 }
 0x927   : > { %1867 = vmatprep.subr.mxu0 %v1440_v55 }
 0x928   : > { %1868 = vmatpush3.msra.mxu0 %v1440_v55 }
 0x929   : > { %1869 = vmatprep.subr.mxu0 %v1439_v56 }
 0x92a   : > { %1870 = vmatpush3.msra.mxu0 %v1439_v56 }
 0x92b   : > { %1871 = vmatprep.subr.mxu0 %v1438_v57 }
 0x92c   : > { %1872 = vmatpush3.msra.mxu0 %v1438_v57 }
 0x9dd   : > { %v1856_v58 = vpop.f32.mrf.mxu0 }
 0x9de   : > { %1426 = vrot.lane.b32.xlu1 %v1856_v58, %s1937_s23 }
 0x9df   : > { %v1397_v59 = vpop.f32.mrf.mxu0 }
 0x9e0   : > { %1424 = vrot.lane.b32.xlu0 %v1397_v59, %s1937_s23 }
 0xa50   : > { %v1427_v2 = vpop.permute.xlu1 %1426 }
 0xa51   : > { %v1437_v28 = vsel %vm1435_vm3, %v1434_v6, %v1427_v2 }
 0xa52   : > { %v1425_v5 = vpop.permute.xlu0 %1424 }
 0xa53   : > { %v1436_v7 = vsel %vm1435_vm3, %v1433_v4, %v1425_v5 }
 0xa54   : > { %1873 = vmatprep.mubr.msk.f32.mxu0 %vm399_vm0, %v1436_v7 }
 0xa55   : > { %1874 = vmatmul.mubr.msk.f32.vlgmr.msra.gmra.mxu0 %vm399_vm0, %v1437_v28 }
 0xb15   : > { %v1875_v9 = vpop.f32.mrf.mxu0 }
 0xb16   : > { %v1531_v1 = vadd.f32 %v1875_v9, %v1691_v8 }
 0xb17   : > { %v1525_v10 = vpop.f32.mrf.mxu0 }
 0xb18   : > { %v1526_v11 = vadd.f32 %v1691_v8, %v1525_v10  ;;  %v1535_v12 = vadd.f32 %v1531_v1, %v2066_v19 }
 0xb1a   : > { %v1539_v0 = vsel %vm399_vm0, %v1535_v12, 0.0  ;;  %v1534_v13 = vadd.f32 %v1526_v11, %v2064_v18 }
 0xb1b   : > { %1540 = vadd.xlane.f32.xlu1 %v1539_v0 }
 0xb1c   : > { %v1536_v14 = vsel %vm399_vm0, %v1534_v13, 0.0 }
 0xb1d   : > { %1537 = vadd.xlane.f32.xlu0 %v1536_v14 }
 0xba4   : > { %v1541_v15 = vpop.xlane.xlu1 %1540 }
 0xba5   : > { %v1544_v16 = vmul.f32 0.015625, %v1541_v15 }
 0xba6   : > { %v1538_v17 = vpop.xlane.xlu0 %1537 }
 0xba7   : > { %v1543_v20 = vmul.f32 0.015625, %v1538_v17  ;;  %v1546_v21 = vsub.f32 %v1535_v12, %v1544_v16 }
 0xba9   : > { %v1545_v23 = vsub.f32 %v1534_v13, %v1543_v20  ;;  %v1548_v27 = vmul.f32 %v1546_v21, %v1546_v21 }
 0xbab   : > { %v1547_v24 = vmul.f32 %v1545_v23, %v1545_v23  ;;  %v1552_v19 = vsel %vm399_vm0, %v1548_v27, 0.0 }
 0xbad   : > { %v1549_v25 = vsel %vm399_vm0, %v1547_v24, 0.0 }
 0xbae   : > { %1550 = vadd.xlane.f32.xlu0 %v1549_v25 }
 0xbb2   : > { %1553 = vadd.xlane.f32.xlu0 %v1552_v19 }
 0xc37   : > { %v1551_v18 = vpop.xlane.xlu0 %1550 }
 0xc38   : > { %v1555_v30 = vmul.f32 0.015625, %v1551_v18 }
 0xc3a   : > { %v1557_v31 = vadd.f32 1e-05, %v1555_v30 }
 0xc3b   : > { %v1554_v32 = vpop.xlane.xlu0 %1553 }
 0xc3c   : > { %1923 = vrsqrt.f32 %v1557_v31  ;;  %v1556_v33 = vmul.f32 0.015625, %v1554_v32 }
 0xc3e   : > { %v1558_v34 = vadd.f32 1e-05, %v1556_v33 }
 0xc40   : > { %1925 = vrsqrt.f32 %v1558_v34 }
 0xc49   : > { %v1924_v35 = vpop.eup %1923 }
 0xc4a   : > { %v1561_v26 = vmul.f32 %v1924_v35, %v1545_v23 }
 0xc4c   : > { %v1570_v38 = vmul.f32 %v1694_v36, %v1561_v26 }
 0xc4d   : > { %v1926_v39 = vpop.eup %1925 }
 0xc4e   : > { %v1579_v40 = vadd.f32 %v1695_v37, %v1570_v38  ;;  %v1562_v41 = vmul.f32 %v1926_v39, %v1546_v21 }
 0xc50   : > { %1581 = vst.msk [vmem:[%s379_s17] sm:$0xff] %vm399_vm0, %v1579_v40  ;;  %v1571_v42 = vmul.f32 %v1694_v36, %v1562_v41 }
 0xc52   : > { %v1580_v43 = vadd.f32 %v1695_v37, %v1571_v42 }
 0xc54   : > { %1582 = vst.msk [vmem:[%s379_s17 + $0x8] sm:$0xff] %vm399_vm0, %v1580_v43 }
 0xc55 PF: > { %s20_s13 = sadd.s32 1, %s1933_s13  }
 0xc56   : > { %p17_p4 = scmp.ge.s32.totalorder %s20_s13, 4  }
 0xc58   :  { %19 = sbr.rel (!%p17_p4) target bundleno = 1 (0x1), region = 93 }

// kernel: transformer_forward.21
= control target key start
LH: loop header
LB: loop body
LE: loop exit
PB: predicated region body
PF: predicated region fallthrough
CT: control target
= control target key end

     0   :  { %s698_s24 = smov 0   ;;  %s886_s0 = inlined_call_operand.vmem [shape: f32[16,64], index: 0, kind: input, shape index: {}]   ;;  %s887_s1 = inlined_call_operand.vmem [shape: f32[64,256], index: 1, kind: input, shape index: {}]   ;;  %s888_s2 = inlined_call_operand.vmem [shape: f32[1,256], index: 2, kind: input, shape index: {}]   ;;  %s889_s3 = inlined_call_operand.vmem [shape: f32[256,64], index: 3, kind: input, shape index: {}]   ;;  %s890_s4 = inlined_call_operand.vmem [shape: f32[1,64], index: 4, kind: input, shape index: {}]   ;;  %s891_s5 = inlined_call_operand.vmem [shape: f32[1,64], index: 5, kind: input, shape index: {}]   ;;  %s892_s6 = inlined_call_operand.vmem [shape: f32[1,64], index: 6, kind: input, shape index: {}]   ;;  %s893_s7 = inlined_call_operand.vmem [shape: f32[16,64], index: 7, kind: output, shape index: {}]  }
   0x1 LB: > { %s584_s25 = sadd.s32 4294967295, %s655_s24   ;;  %p588_p0 = scmp.ge.s32.totalorder %s655_s24, 1  ;;  %s655_s24 = sphi %s698_s24, %s17_s24  }
   0x2   : > { %p236_p1 = scmp.lt.s32.totalorder %s655_s24, 3 }
   0x4   : > { %p237_p2 = pnand %p588_p0, %p236_p1 }
   0x5   : > { %p266_p3 = scmp.lt.s32.totalorder (!%p237_p2), %s584_s25, 1 }
   0x6   : > { %240 = sbr.rel (%p237_p2) target bundleno = 757 (0x2f5), region = 48 }
   0xb   : > { %v290_v0 = vld [vmem:[%s887_s1 + $0x78] sm:$0xff]  ;;  %v289_v1 = vld [vmem:[%s887_s1 + $0x70] sm:$0xff]  ;;  %v288_v2 = vld [vmem:[%s887_s1 + $0x68] sm:$0xff]  ;;  %v657_v4 = vmov 0.0   ;;  %s895_s25 = smov (!%p266_p3, %s584_s25), 1  ;;  %vm303_vm0 = vcmask 523264   ;;  %v293_v50 = vlaneseq }
   0xc   : > { %323 = vmatprep.subr.mxu0 %v290_v0  ;;  %v287_v3 = vld [vmem:[%s887_s1 + $0x60] sm:$0xff]  ;;  %371 = vmatprep.mubr.f32.mxu0 %v657_v4  ;;  %v286_v5 = vld [vmem:[%s887_s1 + $0x58] sm:$0xff]  ;;  %v285_v6 = vld [vmem:[%s887_s1 + $0x50] sm:$0xff]  ;;  %s589_s14 = sshll.u32 %s895_s25, 3 }
   0xd   : > { %324 = vmatpush1.msra.mxu0 %v289_v1  ;;  %v284_v7 = vld [vmem:[%s887_s1 + $0x48] sm:$0xff]  ;;  %v283_v8 = vld [vmem:[%s887_s1 + $0x40] sm:$0xff]  ;;  %v421_v9 = vld [vmem:[%s889_s3 + $0xf8] sm:$0xff]  ;;  %s269_s23 = scalar_lea.vmem %s886_s0, %s589_s14  ;;  %v294_v51 = vshrl.u32 %v293_v50, 7  ;;  %s273_s11 = scalar_lea.vmem %s893_s7, %s589_s14 }
   0xe   : > { %325 = vmatprep.subr.mxu0 %v288_v2  ;;  %v405_v10 = vld [vmem:[%s889_s3 + $0x78] sm:$0xff]  ;;  %599 = vmatprep.subr.mxu1 %v421_v9  ;;  %v420_v12 = vld [vmem:[%s889_s3 + $0xf0] sm:$0xff]  ;;  %v419_v15 = vld [vmem:[%s889_s3 + $0xe8] sm:$0xff] }
   0xf   : > { %326 = vmatpush1.msra.mxu0 %v287_v3  ;;  %v282_v11 = vld [vmem:[%s887_s1 + $0x38] sm:$0xff]  ;;  %v404_v13 = vld [vmem:[%s889_s3 + $0x70] sm:$0xff]  ;;  %600 = vmatpush3.msra.mxu1 %v405_v10  ;;  %v280_v16 = vld [vmem:[%s887_s1 + $0x28] sm:$0xff]  ;;  %v295_v52 = vsub.s32 0, %v294_v51  ;;  %v299_v54 = vsub.s32 1, %v294_v51 }
  0x10   : > { %327 = vmatprep.subr.mxu0 %v286_v5  ;;  %v281_v14 = vld [vmem:[%s887_s1 + $0x30] sm:$0xff]  ;;  %601 = vmatprep.subr.mxu1 %v420_v12  ;;  %v279_v17 = vld [vmem:[%s887_s1 + $0x20] sm:$0xff]  ;;  %v278_v18 = vld [vmem:[%s887_s1 + $0x18] sm:$0xff] }
  0x11   : > { %328 = vmatpush1.msra.mxu0 %v285_v6  ;;  %602 = vmatpush3.msra.mxu1 %v404_v13  ;;  %v277_v19 = vld [vmem:[%s887_s1 + $0x10] sm:$0xff]  ;;  %v276_v20 = vld [vmem:[%s887_s1 + $0x8] sm:$0xff]  ;;  %v275_v21 = vld [vmem:[%s887_s1] sm:$0xff] }
  0x12   : > { %329 = vmatprep.subr.mxu0 %v284_v7  ;;  %603 = vmatprep.subr.mxu1 %v419_v15  ;;  %v777_v22 = vld [vmem:[%s269_s23] sm:$0xff]  ;;  %v403_v23 = vld [vmem:[%s889_s3 + $0x68] sm:$0xff]  ;;  %v417_v26 = vld [vmem:[%s889_s3 + $0xd8] sm:$0xff] }
  0x13   : > { %330 = vmatpush1.msra.mxu0 %v283_v8  ;;  %604 = vmatpush3.msra.mxu1 %v403_v23  ;;  %v418_v24 = vld [vmem:[%s889_s3 + $0xe0] sm:$0xff]  ;;  %v401_v27 = vld [vmem:[%s889_s3 + $0x58] sm:$0xff]  ;;  %v416_v28 = vld [vmem:[%s889_s3 + $0xd0] sm:$0xff] }
  0x14   : > { %331 = vmatprep.subr.mxu0 %v282_v11  ;;  %605 = vmatprep.subr.mxu1 %v418_v24  ;;  %v402_v25 = vld [vmem:[%s889_s3 + $0x60] sm:$0xff]  ;;  %v400_v29 = vld [vmem:[%s889_s3 + $0x50] sm:$0xff]  ;;  %v415_v30 = vld [vmem:[%s889_s3 + $0xc8] sm:$0xff] }
  0x15   : > { %332 = vmatpush1.msra.mxu0 %v281_v14  ;;  %606 = vmatpush3.msra.mxu1 %v402_v25  ;;  %v399_v31 = vld [vmem:[%s889_s3 + $0x48] sm:$0xff]  ;;  %v414_v32 = vld [vmem:[%s889_s3 + $0xc0] sm:$0xff]  ;;  %v413_v34 = vld [vmem:[%s889_s3 + $0xb8] sm:$0xff] }
  0x16   : > { %333 = vmatprep.subr.mxu0 %v280_v16  ;;  %607 = vmatprep.subr.mxu1 %v417_v26  ;;  %v398_v33 = vld [vmem:[%s889_s3 + $0x40] sm:$0xff]  ;;  %v397_v35 = vld [vmem:[%s889_s3 + $0x38] sm:$0xff]  ;;  %v412_v36 = vld [vmem:[%s889_s3 + $0xb0] sm:$0xff] }
  0x17   : > { %334 = vmatpush1.msra.mxu0 %v279_v17  ;;  %608 = vmatpush3.msra.mxu1 %v401_v27  ;;  %v396_v37 = vld [vmem:[%s889_s3 + $0x30] sm:$0xff]  ;;  %v411_v38 = vld [vmem:[%s889_s3 + $0xa8] sm:$0xff]  ;;  %v410_v40 = vld [vmem:[%s889_s3 + $0xa0] sm:$0xff] }
  0x18   : > { %335 = vmatprep.subr.mxu0 %v278_v18  ;;  %609 = vmatprep.subr.mxu1 %v416_v28  ;;  %v395_v39 = vld [vmem:[%s889_s3 + $0x28] sm:$0xff]  ;;  %v394_v41 = vld [vmem:[%s889_s3 + $0x20] sm:$0xff]  ;;  %v409_v42 = vld [vmem:[%s889_s3 + $0x98] sm:$0xff] }
  0x19   : > { %336 = vmatpush1.msra.mxu0 %v277_v19  ;;  %610 = vmatpush3.msra.mxu1 %v400_v29  ;;  %v393_v43 = vld [vmem:[%s889_s3 + $0x18] sm:$0xff]  ;;  %v408_v44 = vld [vmem:[%s889_s3 + $0x90] sm:$0xff]  ;;  %v407_v46 = vld [vmem:[%s889_s3 + $0x88] sm:$0xff] }
  0x1a   : > { %337 = vmatprep.subr.mxu0 %v276_v20  ;;  %611 = vmatprep.subr.mxu1 %v415_v30  ;;  %v392_v45 = vld [vmem:[%s889_s3 + $0x10] sm:$0xff]  ;;  %v391_v47 = vld [vmem:[%s889_s3 + $0x8] sm:$0xff]  ;;  %v406_v48 = vld [vmem:[%s889_s3 + $0x80] sm:$0xff] }
  0x1b   : > { %338 = vmatpush1.msra.mxu0 %v275_v21  ;;  %612 = vmatpush3.msra.mxu1 %v399_v31  ;;  %v390_v49 = vld [vmem:[%s889_s3] sm:$0xff] }
  0x1c   : > { %591 = vmatmul.mubr.msk.f32.vlgmr.msra.gmra.mxu0 %vm303_vm0, %v777_v22  ;;  %613 = vmatprep.subr.mxu1 %v414_v32  ;;  %v291_v53 = vld [vmem:[%s888_s2] sm:$0x3] }
  0x1d   : > { %614 = vmatpush3.msra.mxu1 %v398_v33  ;;  %v296_v55 = vrot.slane %v291_v53, %v295_v52  ;;  %v300_v56 = vrot.slane %v291_v53, %v299_v54  ;;  %v594_v8 = vld [vmem:[%s890_s4] ss:$0 sm:$0xff] }
  0x1e   : > { %615 = vmatprep.subr.mxu1 %v413_v34  ;;  %v596_v25 = vld [vmem:[%s892_s6] ss:$0 sm:$0xff] }
  0x1f   : > { %616 = vmatpush3.msra.mxu1 %v397_v35 }
  0x20   : > { %617 = vmatprep.subr.mxu1 %v412_v36 }
  0x21   : > { %618 = vmatpush3.msra.mxu1 %v396_v37 }
  0x22   : > { %619 = vmatprep.subr.mxu1 %v411_v38 }
  0x23   : > { %620 = vmatpush3.msra.mxu1 %v395_v39 }
  0x24   : > { %621 = vmatprep.subr.mxu1 %v410_v40 }
  0x25   : > { %622 = vmatpush3.msra.mxu1 %v394_v41 }
  0x26   : > { %623 = vmatprep.subr.mxu1 %v409_v42 }
  0x27   : > { %624 = vmatpush3.msra.mxu1 %v393_v43 }
  0x28   : > { %625 = vmatprep.subr.mxu1 %v408_v44 }
  0x29   : > { %626 = vmatpush3.msra.mxu1 %v392_v45 }
  0x2a   : > { %627 = vmatprep.subr.mxu1 %v407_v46 }
  0x2b   : > { %628 = vmatpush3.msra.mxu1 %v391_v47 }
  0x2c   : > { %629 = vmatprep.subr.mxu1 %v406_v48 }
  0x2d   : > { %630 = vmatpush3.msra.mxu1 %v390_v49 }
  0xdc   : > { %v373_v57 = vpop.f32.mrf.mxu0 }
  0xdd   : > { %v374_v58 = vadd.f32 %v373_v57, %v296_v55 }
  0xde   : > { %v375_v59 = vpop.f32.mrf.mxu0 }
  0xdf   : > { %v380_v60 = vmin.f32 %v374_v58, 0.0  ;;  %v376_v61 = vadd.f32 %v375_v59, %v300_v56  ;;  %vm378_vm2 = vcmp.gt.f32.partialorder %v374_v58, 0.0 }
  0xe1   : > { %v382_v62 = vmul.f32 1.442695, %v380_v60  ;;  %v381_v63 = vmin.f32 %v376_v61, 0.0  ;;  %vm379_vm1 = vcmp.gt.f32.partialorder %v376_v61, 0.0 }
  0xe3   : > { %643 = vpow2.f32 %v382_v62  ;;  %v384_v0 = vmul.f32 1.442695, %v381_v63 }
  0xe5   : > { %645 = vpow2.f32 %v384_v0 }
  0xf0   : > { %v644_v1 = vpop.eup %643 }
  0xf1   : > { %v592_v3 = vadd.f32 -1.0, %v644_v1 }
  0xf2   : > { %v646_v2 = vpop.eup %645 }
  0xf3   : > { %v593_v4 = vadd.f32 -1.0, %v646_v2  ;;  %v388_v6 = vsel %vm378_vm2, %v374_v58, %v592_v3 }
  0xf5   : > { %v389_v5 = vsel %vm379_vm1, %v376_v61, %v593_v4 }
  0xf6   : > { %493 = vmatprep.mubr.f32.mxu1 %v389_v5 }
  0xf7   : > { %494 = vmatmul.mubr.f32.vlgmr.msra.gmra.mxu1 %v388_v6 }
 0x1b7   : > { %v631_v7 = vpop.f32.mrf.mxu1 }
 0x1b9   : > { %v632_v9 = vpop.f32.mrf.mxu1 }
 0x1ba   : > { %v633_v10 = vadd.f32 %v632_v9, %v631_v7 }
 0x1bc   : > { %v496_v11 = vadd.f32 %v633_v10, %v594_v8 }
 0x1be   : > { %v499_v12 = vadd.f32 %v496_v11, %v777_v22  ;;  %v595_v22 = vld [vmem:[%s891_s5] ss:$0 sm:$0xff] }
 0x1c0   : > { %v500_v13 = vsel %vm303_vm0, %v499_v12, 0.0 }
 0x1c1   : > { %501 = vadd.xlane.f32.xlu0 %v500_v13 }
 0x24a   : > { %v502_v14 = vpop.xlane.xlu0 %501 }
 0x24b   : > { %v504_v15 = vmul.f32 0.015625, %v502_v14 }
 0x24d   : > { %v505_v16 = vsub.f32 %v499_v12, %v504_v15 }
 0x24f   : > { %v506_v17 = vmul.f32 %v505_v16, %v505_v16 }
 0x251   : > { %v507_v18 = vsel %vm303_vm0, %v506_v17, 0.0 }
 0x252   : > { %508 = vadd.xlane.f32.xlu0 %v507_v18 }
 0x2db   : > { %v509_v19 = vpop.xlane.xlu0 %508 }
 0x2dc   : > { %v510_v20 = vmul.f32 0.015625, %v509_v19 }
 0x2de   : > { %v511_v21 = vadd.f32 1e-05, %v510_v20 }
 0x2e0   : > { %647 = vrsqrt.f32 %v511_v21 }
 0x2ed   : > { %v648_v23 = vpop.eup %647 }
 0x2ee   : > { %v513_v24 = vmul.f32 %v648_v23, %v505_v16 }
 0x2f0   : > { %v521_v26 = vmul.f32 %v595_v22, %v513_v24 }
 0x2f2   : > { %v529_v27 = vadd.f32 %v596_v25, %v521_v26 }
 0x2f4   : > { %530 = vst.msk [vmem:[%s273_s11] sm:$0xff] %vm303_vm0, %v529_v27 }
 0x2f5 PF: > { %s17_s24 = sadd.s32 1, %s655_s24  }
 0x2f6   : > { %p14_p4 = scmp.ge.s32.totalorder %s17_s24, 4  }
 0x2f8   :  { %16 = sbr.rel (!%p14_p4) target bundleno = 1 (0x1), region = 78 }

// kernel: transformer_forward.19
= control target key start
LH: loop header
LB: loop body
LE: loop exit
PB: predicated region body
PF: predicated region fallthrough
CT: control target
= control target key end

     0   :  { %s1715_s13 = smov 0   ;;  %s1943_s0 = inlined_call_operand.vmem [shape: f32[2,8,64], index: 0, kind: input, shape index: {}, may-alias: {0,1}]   ;;  %s1944_s1 = inlined_call_operand.vmem [shape: f32[2,8,64], index: 1, kind: input, shape index: {}, may-alias: {0,1}]   ;;  %s1945_s2 = inlined_call_operand.vmem [shape: f32[64,64], index: 2, kind: input, shape index: {}]   ;;  %s1946_s3 = inlined_call_operand.vmem [shape: f32[1,64], index: 3, kind: input, shape index: {}]   ;;  %s1947_s4 = inlined_call_operand.vmem [shape: f32[64,128], index: 4, kind: input, shape index: {}]   ;;  %s1948_s5 = inlined_call_operand.vmem [shape: f32[1,128], index: 5, kind: input, shape index: {}]   ;;  %s1949_s6 = inlined_call_operand.vmem [shape: f32[64,64], index: 6, kind: input, shape index: {}]   ;;  %s1950_s7 = inlined_call_operand.vmem [shape: f32[1,64], index: 7, kind: input, shape index: {}]   ;;  %s1951_s8 = inlined_call_operand.vmem [shape: f32[1,64], index: 8, kind: input, shape index: {}]   ;;  %s1952_s9 = inlined_call_operand.vmem [shape: f32[1,64], index: 9, kind: input, shape index: {}]   ;;  %s1953_s10 = inlined_call_operand.vmem [shape: f32[2,8,64], index: 10, kind: output, shape index: {}]  }
   0x1 LB: > { %s1438_s14 = sadd.s32 4294967295, %s1649_s13   ;;  %p1442_p0 = scmp.ge.s32.totalorder %s1649_s13, 1  ;;  %s1649_s13 = sphi %s1715_s13, %s20_s13  }
   0x2   : > { %p320_p1 = scmp.lt.s32.totalorder %s1649_s13, 3 }
   0x4   : > { %p321_p2 = pnand %p1442_p0, %p320_p1 }
   0x5   : > { %p1729_p3 = scmp.lt.s32.totalorder (!%p321_p2), %s1438_s14, 1  ;;  %s1654_s23 = smov (!%p321_p2), 112  }
   0x6   : > { %324 = sbr.rel (%p321_p2) target bundleno = 2081 (0x821), region = 60  ;;  %s1655_s24 = smov (!%p321_p2), 96  }
   0x7   : > { %s1656_s25 = smov (!%p321_p2), 80   ;;  %s1657_s26 = smov (!%p321_p2), 48  }
   0x8   : > { %s1658_s27 = smov (!%p321_p2), 16  }
   0xb   : > { %v470_v0 = vld [vmem:[%s1947_s4 + $0x38] sm:$0xff]  ;;  %v1651_v2 = vmov 0.0   ;;  %v469_v3 = vld [vmem:[%s1947_s4 + $0x30] sm:$0xff]  ;;  %v468_v5 = vld [vmem:[%s1947_s4 + $0x28] sm:$0xff]  ;;  %s1956_s14 = smov (!%p1729_p3, %s1438_s14), 1  ;;  %vm389_vm0 = vcmask 523264   ;;  %v629_v33 = vlaneseq }
   0xc   : > { %v381_v1 = vld [vmem:[%s1945_s2 + $0x38] sm:$0xff]  ;;  %1530 = vmatprep.subr.mxu1 %v1651_v2  ;;  %1511 = vmatprep.subr.mxu0 %v1651_v2  ;;  %v380_v4 = vld [vmem:[%s1945_s2 + $0x30] sm:$0xff]  ;;  %v379_v6 = vld [vmem:[%s1945_s2 + $0x28] sm:$0xff]  ;;  %s1767_s18 = sshll.u32 %s1956_s14, 3  ;;  %vm1652_vm1 = vmmov 0   ;;  %vm551_vm2 = vcmask 130048  }
   0xd   : > { %1531 = vmatpush3.msra.mxu1 %v470_v0  ;;  %1512 = vmatpush3.msra.mxu0 %v381_v1  ;;  %v467_v7 = vld [vmem:[%s1947_s4 + $0x20] sm:$0xff]  ;;  %v466_v9 = vld [vmem:[%s1947_s4 + $0x18] sm:$0xff]  ;;  %v465_v11 = vld [vmem:[%s1947_s4 + $0x10] sm:$0xff]  ;;  %s367_s28 = scalar_lea.vmem %s1944_s1, %s1767_s18  ;;  %s363_s15 = scalar_lea.vmem %s1943_s0, %s1767_s18  ;;  %v630_v34 = vshrl.u32 %v629_v33, 7  ;;  %v632_v35 = vand.u32 127, %v629_v33  ;;  %vm635_vm4 = vcmask 64512  }
   0xe   : > { %1532 = vmatprep.subr.mxu1 %v1651_v2  ;;  %1513 = vmatprep.subr.mxu0 %v1651_v2  ;;  %v378_v8 = vld [vmem:[%s1945_s2 + $0x20] sm:$0xff]  ;;  %v377_v10 = vld [vmem:[%s1945_s2 + $0x18] sm:$0xff]  ;;  %v376_v12 = vld [vmem:[%s1945_s2 + $0x10] sm:$0xff]  ;;  %s1653_s14 = smov 64   ;;  %vm1249_vm5 = vcmask 261120   ;;  %vm1251_vm6 = vcmask 392192   ;;  %s371_s17 = scalar_lea.vmem %s1953_s10, %s1767_s18 }
   0xf   : > { %1533 = vmatpush3.msra.mxu1 %v469_v3  ;;  %1514 = vmatpush3.msra.mxu0 %v380_v4  ;;  %v464_v13 = vld [vmem:[%s1947_s4 + $0x8] sm:$0xff]  ;;  %v463_v15 = vld [vmem:[%s1947_s4] sm:$0xff]  ;;  %vm633_vm3 = vcmp.gt.s32.totalorder %v632_v35, %v630_v34 }
  0x10   : > { %1534 = vmatprep.subr.mxu1 %v1651_v2  ;;  %1515 = vmatprep.subr.mxu0 %v1651_v2  ;;  %v375_v14 = vld [vmem:[%s1945_s2 + $0x8] sm:$0xff]  ;;  %v373_v16 = vld [vmem:[%s367_s28] sm:$0xff]  ;;  %s1659_s28 = smov 32  }
  0x11   : > { %1535 = vmatpush3.msra.mxu1 %v468_v5  ;;  %1516 = vmatpush3.msra.mxu0 %v379_v6  ;;  %v374_v17 = vld [vmem:[%s1945_s2] sm:$0xff] }
  0x12   : > { %1536 = vmatprep.subr.mxu1 %v1651_v2  ;;  %1517 = vmatprep.subr.mxu0 %v1651_v2  ;;  %v1805_v18 = vld [vmem:[%s363_s15] sm:$0xff] }
  0x13   : > { %1537 = vmatpush3.msra.mxu1 %v467_v7  ;;  %1518 = vmatpush3.msra.mxu0 %v378_v8  ;;  %v1448_v19 = vld [vmem:[%s1948_s5] ss:$0 sm:$0xff] }
  0x14   : > { %1538 = vmatprep.subr.mxu1 %v1651_v2  ;;  %1519 = vmatprep.subr.mxu0 %v1651_v2  ;;  %v1446_v21 = vld [vmem:[%s1946_s3] ss:$0 sm:$0xff] }
  0x15   : > { %1539 = vmatpush3.msra.mxu1 %v466_v9  ;;  %1520 = vmatpush3.msra.mxu0 %v377_v10 }
  0x16   : > { %1540 = vmatprep.subr.mxu1 %v1651_v2  ;;  %1521 = vmatprep.subr.mxu0 %v1651_v2 }
  0x17   : > { %1541 = vmatpush3.msra.mxu1 %v465_v11  ;;  %1522 = vmatpush3.msra.mxu0 %v376_v12 }
  0x18   : > { %1542 = vmatprep.subr.mxu1 %v1651_v2  ;;  %1523 = vmatprep.subr.mxu0 %v1651_v2 }
  0x19   : > { %1543 = vmatpush3.msra.mxu1 %v464_v13  ;;  %1524 = vmatpush3.msra.mxu0 %v375_v14 }
  0x1a   : > { %1544 = vmatprep.subr.mxu1 %v1651_v2  ;;  %1546 = vmatprep.mubr.msk.f32.mxu1 %vm1652_vm1, %v1651_v2 }
  0x1b   : > { %1545 = vmatpush3.msra.mxu1 %v463_v15  ;;  %1525 = vmatprep.subr.mxu0 %v1651_v2 }
  0x1c   : > { %1547 = vmatmul.mubr.msk.f32.vlgmr.msra.gmra.mxu1 %vm389_vm0, %v373_v16  ;;  %1526 = vmatpush3.msra.mxu0 %v374_v17 }
  0x1d   : > { %1527 = vmatprep.mubr.msk.f32.mxu0 %vm1652_vm1, %v1651_v2  ;;  %1549 = vmatprep.subr.mxu1 %v1651_v2 }
  0x1e   : > { %1528 = vmatmul.mubr.msk.f32.vlgmr.msra.gmra.mxu0 %vm389_vm0, %v1805_v18  ;;  %1551 = vmatprep.mubr.msk.f32.mxu1 %vm1652_vm1, %v1651_v2 }
  0x1f   : > { %1569 = vmatprep.subr.mxu0 %v1651_v2  ;;  %1571 = vmatprep.mubr.msk.f32.mxu0 %vm1652_vm1, %v1651_v2 }
  0xdc   : > { %v547_v20 = vpop.f32.mrf.mxu1 }
  0xdd   : > { %v1824_v22 = vadd.f32 %v1448_v19, %v547_v20 }
  0xde   : > { %v459_v23 = vpop.f32.mrf.mxu0  ;;  %v1548_v24 = vpop.f32.mrf.mxu1 }
  0xdf   : > { %v460_v25 = vadd.f32 %v1446_v21, %v459_v23  ;;  %650 = vrot.lane.b32.xlu1 %v1824_v22, %s1653_s14  ;;  %1550 = vmatpush3.xpose.msk.msra.mxu1 %vm551_vm2, %v1824_v22 }
  0xe0   : > { %v1529_v26 = vpop.f32.mrf.mxu0  ;;  %1554 = vmatprep.subr.mxu1 %v1651_v2 }
  0xe2   : > { %1552 = vmatmul.mubr.msk.f32.vlgmr.msra.gmra.mxu1 %vm551_vm2, %v460_v25 }
  0xe3   : > { %728 = vrot.lane.b32.xlu1 %v1824_v22, %s1654_s23  ;;  %1556 = vmatprep.mubr.msk.f32.mxu1 %vm1652_vm1, %v1651_v2 }
  0xe7   : > { %898 = vrot.lane.b32.xlu1 %v1824_v22, %s1655_s24 }
  0xeb   : > { %896 = vrot.lane.b32.xlu1 %v460_v25, %s1655_s24 }
  0xef   : > { %1068 = vrot.lane.b32.xlu1 %v1824_v22, %s1656_s25 }
  0xf3   : > { %1066 = vrot.lane.b32.xlu1 %v460_v25, %s1656_s25 }
 0x151   : > { %v651_v27 = vpop.permute.xlu1 %650 }
 0x152   : > { %1555 = vmatpush3.msra.mxu1 %v651_v27 }
 0x153   : > { %1559 = vmatprep.subr.mxu1 %v1651_v2 }
 0x155   : > { %v729_v28 = vpop.permute.xlu1 %728 }
 0x159   : > { %v899_v29 = vpop.permute.xlu1 %898 }
 0x15a   : > { %1570 = vmatpush3.xpose.msk.msra.mxu0 %vm551_vm2, %v899_v29 }
 0x15b   : > { %1579 = vmatprep.subr.mxu0 %v1651_v2 }
 0x15d   : > { %v897_v30 = vpop.permute.xlu1 %896 }
 0x15e   : > { %1572 = vmatmul.mubr.msk.f32.vlgmr.msra.gmra.mxu0 %vm551_vm2, %v897_v30 }
 0x15f   : > { %1581 = vmatprep.mubr.msk.f32.mxu0 %vm1652_vm1, %v1651_v2 }
 0x161   : > { %v1069_v31 = vpop.permute.xlu1 %1068 }
 0x162   : > { %1580 = vmatpush3.xpose.msk.msra.mxu0 %vm551_vm2, %v1069_v31 }
 0x163   : > { %1589 = vmatprep.subr.mxu0 %v1651_v2 }
 0x165   : > { %v1067_v32 = vpop.permute.xlu1 %1066 }
 0x166   : > { %1582 = vmatmul.mubr.msk.f32.vlgmr.msra.gmra.mxu0 %vm551_vm2, %v1067_v32 }
 0x167   : > { %1605 = vmatprep.mubr.msk.f32.mxu0 %vm1652_vm1, %v1651_v2 }
 0x1a2   : > { %v624_v36 = vpop.f32.mrf.mxu1 }
 0x1a3   : > { %v628_v37 = vmul.f32 0.25, %v624_v36 }
 0x1a4   : > { %v1553_v38 = vpop.f32.mrf.mxu1 }
 0x1a5   : > { %v634_v39 = vsel %vm633_vm3, -1e+30, %v628_v37 }
 0x1a6   : > { %v636_v40 = vsel %vm635_vm4, %v634_v39, -inf }
 0x1a7   : > { %637 = vmax.xlane.f32.xlu0 %v636_v40 }
 0x21e   : > { %v970_v41 = vpop.f32.mrf.mxu0 }
 0x21f   : > { %v974_v50 = vmul.f32 0.25, %v970_v41 }
 0x220   : > { %v1573_v42 = vpop.f32.mrf.mxu0 }
 0x221   : > { %v975_v51 = vsel %vm633_vm3, -1e+30, %v974_v50  ;;  %v1254_v50 = vld [vmem:[%s1949_s6 + $0x8] sm:$0xff] }
 0x222   : > { %v976_v52 = vsel %vm635_vm4, %v975_v51, -inf }
 0x226   : > { %v1140_v43 = vpop.f32.mrf.mxu0 }
 0x227   : > { %v1144_v3 = vmul.f32 0.25, %v1140_v43 }
 0x228   : > { %v1583_v44 = vpop.f32.mrf.mxu0 }
 0x229   : > { %v1145_v8 = vsel %vm633_vm3, -1e+30, %v1144_v3  ;;  %v1260_v44 = vld [vmem:[%s1949_s6 + $0x38] sm:$0xff] }
 0x22a   : > { %v1146_v9 = vsel %vm635_vm4, %v1145_v8, -inf  ;;  %1590 = vmatpush3.msra.mxu0 %v1260_v44 }
 0x22b   : > { %1591 = vmatprep.subr.mxu0 %v1651_v2 }
 0x230   : > { %v638_v45 = vpop.xlane.xlu0 %637 }
 0x231   : > { %v639_v46 = vsub.f32 %v634_v39, %v638_v45  ;;  %v1259_v45 = vld [vmem:[%s1949_s6 + $0x30] sm:$0xff] }
 0x232   : > { %1592 = vmatpush3.msra.mxu0 %v1259_v45 }
 0x233   : > { %v640_v47 = vmul.f32 1.442695, %v639_v46  ;;  %v1258_v46 = vld [vmem:[%s1949_s6 + $0x28] sm:$0xff]  ;;  %1593 = vmatprep.subr.mxu0 %v1651_v2 }
 0x234   : > { %1594 = vmatpush3.msra.mxu0 %v1258_v46 }
 0x235   : > { %1625 = vpow2.f32 %v640_v47  ;;  %1595 = vmatprep.subr.mxu0 %v1651_v2  ;;  %v1257_v47 = vld [vmem:[%s1949_s6 + $0x20] sm:$0xff] }
 0x236   : > { %1596 = vmatpush3.msra.mxu0 %v1257_v47 }
 0x237   : > { %1597 = vmatprep.subr.mxu0 %v1651_v2 }
 0x242   : > { %v1626_v48 = vpop.eup %1625 }
 0x243   : > { %v642_v49 = vsel %vm635_vm4, %v1626_v48, 0.0 }
 0x244   : > { %643 = vadd.xlane.f32.xlu0 %v642_v49  ;;  %v1255_v49 = vld [vmem:[%s1949_s6 + $0x10] sm:$0xff] }
 0x25a   : > { %726 = vrot.lane.b32.xlu0 %v460_v25, %s1654_s23 }
 0x279   : > { %977 = vmax.xlane.f32.xlu0 %v976_v52 }
 0x2cd   : > { %v644_v53 = vpop.xlane.xlu0 %643 }
 0x2ce   : > { %1627 = vrcp.f32 %v644_v53 }
 0x2d1   : > { %v727_v59 = vpop.permute.xlu0 %726 }
 0x2db   : > { %v1628_v54 = vpop.eup %1627 }
 0x2dc   : > { %v646_v55 = vmul.f32 %v1628_v54, %v644_v53 }
 0x2de   : > { %v647_v56 = vsub.f32 2.0, %v646_v55 }
 0x2e0   : > { %v648_v57 = vmul.f32 %v1628_v54, %v647_v56 }
 0x2e2   : > { %v649_v58 = vmul.f32 %v1626_v48, %v648_v57  ;;  %v1256_v48 = vld [vmem:[%s1949_s6 + $0x18] sm:$0xff] }
 0x2e3   : > { %1598 = vmatpush3.msra.mxu0 %v1256_v48 }
 0x2e4   : > { %1557 = vmatmul.mubr.msk.f32.vlgmr.msra.gmra.mxu1 %vm635_vm4, %v649_v58  ;;  %1599 = vmatprep.subr.mxu0 %v1651_v2 }
 0x2e5   : > { %1560 = vmatpush3.xpose.msk.msra.mxu1 %vm551_vm2, %v729_v28  ;;  %1561 = vmatprep.mubr.msk.f32.mxu1 %vm1652_vm1, %v1651_v2 }
 0x2e6   : > { %1564 = vmatprep.subr.mxu1 %v1651_v2  ;;  %1600 = vmatpush3.msra.mxu0 %v1255_v49 }
 0x2e7   : > { %1601 = vmatprep.subr.mxu0 %v1651_v2 }
 0x2e8   : > { %1562 = vmatmul.mubr.msk.f32.vlgmr.msra.gmra.mxu1 %vm551_vm2, %v727_v59  ;;  %1602 = vmatpush3.msra.mxu0 %v1254_v50 }
 0x2e9   : > { %1566 = vmatprep.mubr.msk.f32.mxu1 %vm1652_vm1, %v1651_v2  ;;  %1603 = vmatprep.subr.mxu0 %v1651_v2 }
 0x302   : > { %v978_v60 = vpop.xlane.xlu0 %977 }
 0x303   : > { %v979_v61 = vsub.f32 %v975_v51, %v978_v60  ;;  %v1253_v51 = vld [vmem:[%s1949_s6] sm:$0xff] }
 0x304   : > { %1604 = vmatpush3.msra.mxu0 %v1253_v51 }
 0x305   : > { %v980_v62 = vmul.f32 1.442695, %v979_v61 }
 0x307   : > { %1629 = vpow2.f32 %v980_v62 }
 0x314   : > { %v1630_v10 = vpop.eup %1629 }
 0x315   : > { %v982_v11 = vsel %vm635_vm4, %v1630_v10, 0.0 }
 0x3a4   : > { %v1862_v63 = vpop.f32.mrf.mxu1 }
 0x3a6   : > { %v1558_v0 = vpop.f32.mrf.mxu1 }
 0x3a7   : > { %v1462_v0 = vld [vmem:[%s1950_s7] ss:$0 sm:$0xff] }
 0x3a8   : > { %v800_v1 = vpop.f32.mrf.mxu1 }
 0x3a9   : > { %v804_v4 = vmul.f32 0.25, %v800_v1 }
 0x3aa   : > { %v1563_v5 = vpop.f32.mrf.mxu1 }
 0x3ab   : > { %v805_v6 = vsel %vm633_vm3, -1e+30, %v804_v4 }
 0x3ac   : > { %v806_v7 = vsel %vm635_vm4, %v805_v6, -inf }
 0x3ad   : > { %807 = vmax.xlane.f32.xlu1 %v806_v7 }
 0x3b1   : > { %1147 = vmax.xlane.f32.xlu1 %v1146_v9 }
 0x3b5   : > { %983 = vadd.xlane.f32.xlu1 %v982_v11 }
 0x3c6   : > { %820 = vrot.lane.b32.xlu1 %v1824_v22, %s1657_s26 }
 0x3ca   : > { %1160 = vrot.lane.b32.xlu1 %v1824_v22, %s1658_s27 }
 0x436   : > { %v808_v12 = vpop.xlane.xlu1 %807 }
 0x437   : > { %v809_v13 = vsub.f32 %v805_v6, %v808_v12 }
 0x439   : > { %v810_v14 = vmul.f32 1.442695, %v809_v13 }
 0x43a   : > { %v1148_v15 = vpop.xlane.xlu1 %1147 }
 0x43b   : > { %1631 = vpow2.f32 %v810_v14  ;;  %v1149_v16 = vsub.f32 %v1145_v8, %v1148_v15 }
 0x43d   : > { %v1150_v17 = vmul.f32 1.442695, %v1149_v16  ;;  %v1465_v16 = vld [vmem:[%s1952_s9] ss:$0 sm:$0xff] }
 0x43e   : > { %v984_v19 = vpop.xlane.xlu1 %983 }
 0x43f   : > { %1633 = vpow2.f32 %v1150_v17 }
 0x440   : > { %1635 = vrcp.f32 %v984_v19 }
 0x442   : > { %v821_v20 = vpop.permute.xlu1 %820 }
 0x443   : > { %1565 = vmatpush3.msra.mxu1 %v821_v20 }
 0x444   : > { %1574 = vmatprep.subr.mxu1 %v1651_v2 }
 0x446   : > { %v1161_v42 = vpop.permute.xlu1 %1160 }
 0x448   : > { %v1632_v21 = vpop.eup %1631 }
 0x449   : > { %v812_v23 = vsel %vm635_vm4, %v1632_v21, 0.0 }
 0x44a   : > { %813 = vadd.xlane.f32.xlu0 %v812_v23 }
 0x44c   : > { %v1634_v24 = vpop.eup %1633 }
 0x44d   : > { %v1152_v25 = vsel %vm635_vm4, %v1634_v24, 0.0  ;;  %v1636_v28 = vpop.eup %1635 }
 0x44e   : > { %1153 = vadd.xlane.f32.xlu0 %v1152_v25  ;;  %v986_v29 = vmul.f32 %v1636_v28, %v984_v19 }
 0x450   : > { %v987_v32 = vsub.f32 2.0, %v986_v29 }
 0x452   : > { %v988_v37 = vmul.f32 %v1636_v28, %v987_v32 }
 0x464   : > { %990 = vrot.lane.b32.xlu0 %v1824_v22, %s1659_s28  ;;  %v989_v22 = vmul.f32 %v1630_v10, %v988_v37 }
 0x4d3   : > { %v814_v26 = vpop.xlane.xlu0 %813 }
 0x4d4   : > { %1637 = vrcp.f32 %v814_v26 }
 0x4d7   : > { %v1154_v27 = vpop.xlane.xlu0 %1153 }
 0x4d8   : > { %1639 = vrcp.f32 %v1154_v27 }
 0x4db   : > { %v991_v40 = vpop.permute.xlu0 %990 }
 0x4e1   : > { %v1638_v30 = vpop.eup %1637 }
 0x4e2   : > { %v816_v31 = vmul.f32 %v1638_v30, %v814_v26 }
 0x4e4   : > { %v817_v33 = vsub.f32 2.0, %v816_v31 }
 0x4e5   : > { %v1640_v34 = vpop.eup %1639 }
 0x4e6   : > { %v818_v35 = vmul.f32 %v1638_v30, %v817_v33  ;;  %v1156_v36 = vmul.f32 %v1640_v34, %v1154_v27 }
 0x4e8   : > { %v819_v38 = vmul.f32 %v1632_v21, %v818_v35  ;;  %v1157_v39 = vsub.f32 2.0, %v1156_v36 }
 0x4ea   : > { %1567 = vmatmul.mubr.msk.f32.vlgmr.msra.gmra.mxu1 %vm635_vm4, %v819_v38  ;;  %v1158_v41 = vmul.f32 %v1640_v34, %v1157_v39 }
 0x4eb   : > { %1575 = vmatpush3.msra.mxu1 %v991_v40  ;;  %1576 = vmatprep.mubr.msk.f32.mxu1 %vm1652_vm1, %v1651_v2 }
 0x4ec   : > { %1584 = vmatprep.subr.mxu1 %v1651_v2  ;;  %v1159_v43 = vmul.f32 %v1634_v24, %v1158_v41 }
 0x4ee   : > { %1577 = vmatmul.mubr.msk.f32.vlgmr.msra.gmra.mxu1 %vm635_vm4, %v989_v22 }
 0x4ef   : > { %1585 = vmatpush3.msra.mxu1 %v1161_v42  ;;  %1586 = vmatprep.mubr.msk.f32.mxu1 %vm1652_vm1, %v1651_v2 }
 0x4f2   : > { %1587 = vmatmul.mubr.msk.f32.vlgmr.msra.gmra.mxu1 %vm635_vm4, %v1159_v43 }
 0x5aa   : > { %v892_v52 = vpop.f32.mrf.mxu1 }
 0x5ab   : > { %1237 = vrot.lane.b32.xlu1 %v892_v52, %s1658_s27 }
 0x5ac   : > { %v1568_v53 = vpop.f32.mrf.mxu1 }
 0x5ae   : > { %v1062_v54 = vpop.f32.mrf.mxu1 }
 0x5af   : > { %1241 = vrot.lane.b32.xlu0 %v1062_v54, %s1659_s28 }
 0x5b0   : > { %v1578_v55 = vpop.f32.mrf.mxu1 }
 0x5b2   : > { %v1232_v56 = vpop.f32.mrf.mxu1 }
 0x5b3   : > { %1245 = vrot.lane.b32.xlu1 %v1232_v56, %s1657_s26 }
 0x5b4   : > { %v1588_v57 = vpop.f32.mrf.mxu1 }
 0x61d   : > { %v1238_v58 = vpop.permute.xlu1 %1237 }
 0x61e   : > { %v1248_v59 = vsel %vm551_vm2, %v1862_v63, %v1238_v58 }
 0x621   : > { %v1242_v2 = vpop.permute.xlu0 %1241 }
 0x622   : > { %v1250_v60 = vsel %vm1249_vm5, %v1248_v59, %v1242_v2 }
 0x625   : > { %v1246_v61 = vpop.permute.xlu1 %1245 }
 0x626   : > { %v1252_v62 = vsel %vm1251_vm6, %v1250_v60, %v1246_v61 }
 0x627   : > { %1606 = vmatmul.mubr.msk.f32.vlgmr.msra.gmra.mxu0 %vm389_vm0, %v1252_v62 }
 0x6e7   : > { %v1337_v1 = vpop.f32.mrf.mxu0 }
 0x6e8   : > { %v1338_v3 = vadd.f32 %v1462_v0, %v1337_v1 }
 0x6e9   : > { %v1607_v4 = vpop.f32.mrf.mxu0 }
 0x6ea   : > { %v1341_v5 = vadd.f32 %v1338_v3, %v1805_v18  ;;  %v1464_v18 = vld [vmem:[%s1951_s8] ss:$0 sm:$0xff] }
 0x6ec   : > { %v1342_v6 = vsel %vm389_vm0, %v1341_v5, 0.0 }
 0x6ed   : > { %1343 = vadd.xlane.f32.xlu0 %v1342_v6 }
 0x776   : > { %v1344_v7 = vpop.xlane.xlu0 %1343 }
 0x777   : > { %v1346_v63 = vmul.f32 0.015625, %v1344_v7 }
 0x779   : > { %v1347_v8 = vsub.f32 %v1341_v5, %v1346_v63 }
 0x77b   : > { %v1348_v9 = vmul.f32 %v1347_v8, %v1347_v8 }
 0x77d   : > { %v1349_v10 = vsel %vm389_vm0, %v1348_v9, 0.0 }
 0x77e   : > { %1350 = vadd.xlane.f32.xlu1 %v1349_v10 }
 0x807   : > { %v1351_v11 = vpop.xlane.xlu1 %1350 }
 0x808   : > { %v1352_v12 = vmul.f32 0.015625, %v1351_v11 }
 0x80a   : > { %v1353_v13 = vadd.f32 1e-05, %v1352_v12 }
 0x80c   : > { %1641 = vrsqrt.f32 %v1353_v13 }
 0x819   : > { %v1642_v14 = vpop.eup %1641 }
 0x81a   : > { %v1355_v15 = vmul.f32 %v1642_v14, %v1347_v8 }
 0x81c   : > { %v1363_v17 = vmul.f32 %v1464_v18, %v1355_v15 }
 0x81e   : > { %v1371_v19 = vadd.f32 %v1465_v16, %v1363_v17 }
 0x820   : > { %1372 = vst.msk [vmem:[%s371_s17] sm:$0xff] %vm389_vm0, %v1371_v19 }
 0x821 PF: > { %s20_s13 = sadd.s32 1, %s1649_s13  }
 0x822   : > { %p17_p4 = scmp.ge.s32.totalorder %s20_s13, 4  }
 0x824   :  { %19 = sbr.rel (!%p17_p4) target bundleno = 1 (0x1), region = 93 }

// kernel: transformer_forward.20
= control target key start
LH: loop header
LB: loop body
LE: loop exit
PB: predicated region body
PF: predicated region fallthrough
CT: control target
= control target key end

     0   :  { %s1776_s13 = smov 0   ;;  %s2014_s0 = inlined_call_operand.vmem [shape: f32[2,8,64], index: 0, kind: input, shape index: {}]   ;;  %s2015_s1 = inlined_call_operand.vmem [shape: f32[2,16,64], index: 1, kind: input, shape index: {}]   ;;  %s2016_s2 = inlined_call_operand.vmem [shape: f32[64,64], index: 2, kind: input, shape index: {}]   ;;  %s2017_s3 = inlined_call_operand.vmem [shape: f32[1,64], index: 3, kind: input, shape index: {}]   ;;  %s2018_s4 = inlined_call_operand.vmem [shape: f32[64,128], index: 4, kind: input, shape index: {}]   ;;  %s2019_s5 = inlined_call_operand.vmem [shape: f32[1,128], index: 5, kind: input, shape index: {}]   ;;  %s2020_s6 = inlined_call_operand.vmem [shape: f32[64,64], index: 6, kind: input, shape index: {}]   ;;  %s2021_s7 = inlined_call_operand.vmem [shape: f32[1,64], index: 7, kind: input, shape index: {}]   ;;  %s2022_s8 = inlined_call_operand.vmem [shape: f32[1,64], index: 8, kind: input, shape index: {}]   ;;  %s2023_s9 = inlined_call_operand.vmem [shape: f32[1,64], index: 9, kind: input, shape index: {}]   ;;  %s2024_s10 = inlined_call_operand.vmem [shape: f32[2,8,64], index: 10, kind: output, shape index: {}]  }
   0x1 LB: > { %s1467_s14 = sadd.s32 4294967295, %s1710_s13   ;;  %p1471_p0 = scmp.ge.s32.totalorder %s1710_s13, 1  ;;  %s1710_s13 = sphi %s1776_s13, %s20_s13  }
   0x2   : > { %p321_p1 = scmp.lt.s32.totalorder %s1710_s13, 3 }
   0x4   : > { %p322_p2 = pnand %p1471_p0, %p321_p1 }
   0x5   : > { %p362_p3 = scmp.lt.s32.totalorder (!%p322_p2), %s1467_s14, 1  ;;  %s1714_s21 = smov (!%p322_p2), 64  }
   0x6   : > { %325 = sbr.rel (%p322_p2) target bundleno = 3121 (0xc31), region = 60  ;;  %s1715_s24 = smov (!%p322_p2), 112  }
   0x7   : > { %s1716_s25 = smov (!%p322_p2), 48   ;;  %s1717_s26 = smov (!%p322_p2), 96  }
   0x8   : > { %s1718_s28 = smov (!%p322_p2), 32   ;;  %s1720_s30 = smov (!%p322_p2), 16  }
   0xb   : > { %v474_v0 = vld [vmem:[%s2018_s4 + $0x38] sm:$0xff]  ;;  %v473_v1 = vld [vmem:[%s2018_s4 + $0x30] sm:$0xff]  ;;  %v1712_v2 = vmov 0.0   ;;  %v472_v5 = vld [vmem:[%s2018_s4 + $0x28] sm:$0xff]  ;;  %s2026_s14 = smov (!%p362_p3, %s1467_s14), 1  ;;  %vm393_vm0 = vcmask 523264  }
   0xc   : > { %1575 = vmatprep.subr.mxu1 %v474_v0  ;;  %1556 = vmatprep.subr.mxu0 %v1712_v2  ;;  %v385_v3 = vld [vmem:[%s2016_s2 + $0x38] sm:$0xff]  ;;  %v384_v4 = vld [vmem:[%s2016_s2 + $0x30] sm:$0xff]  ;;  %v383_v6 = vld [vmem:[%s2016_s2 + $0x28] sm:$0xff]  ;;  %s1503_s29 = sshll.u32 %s2026_s14, 4  ;;  %s1472_s27 = sshll.u32 %s2026_s14, 3  ;;  %vm1713_vm1 = vmmov 0  }
   0xd   : > { %1576 = vmatpush3.msra.mxu1 %v474_v0  ;;  %1557 = vmatpush3.msra.mxu0 %v385_v3  ;;  %v471_v7 = vld [vmem:[%s2018_s4 + $0x20] sm:$0xff]  ;;  %v470_v9 = vld [vmem:[%s2018_s4 + $0x18] sm:$0xff]  ;;  %s370_s18 = scalar_lea.vmem %s2015_s1, %s1503_s29  ;;  %v469_v11 = vld [vmem:[%s2018_s4 + $0x10] sm:$0xff]  ;;  %s365_s16 = scalar_lea.vmem %s2014_s0, %s1472_s27  ;;  %vm563_vm2 = vcmask 130048   ;;  %vm1278_vm3 = vcmask 261120   ;;  %vm1280_vm4 = vcmask 392192  }
   0xe   : > { %1577 = vmatprep.subr.mxu1 %v473_v1  ;;  %1558 = vmatprep.subr.mxu0 %v1712_v2  ;;  %v382_v8 = vld [vmem:[%s2016_s2 + $0x20] sm:$0xff]  ;;  %v381_v10 = vld [vmem:[%s2016_s2 + $0x18] sm:$0xff]  ;;  %v468_v13 = vld [vmem:[%s2018_s4 + $0x8] sm:$0xff]  ;;  %s1719_s29 = smov 80   ;;  %s374_s20 = scalar_lea.vmem %s2024_s10, %s1472_s27 }
   0xf   : > { %1578 = vmatpush3.msra.mxu1 %v473_v1  ;;  %1559 = vmatpush3.msra.mxu0 %v384_v4  ;;  %v376_v12 = vld [vmem:[%s370_s18] sm:$0xff]  ;;  %v380_v14 = vld [vmem:[%s2016_s2 + $0x10] sm:$0xff]  ;;  %v379_v16 = vld [vmem:[%s2016_s2 + $0x8] sm:$0xff] }
  0x10   : > { %1579 = vmatprep.subr.mxu1 %v472_v5  ;;  %1560 = vmatprep.subr.mxu0 %v1712_v2  ;;  %v467_v15 = vld [vmem:[%s2018_s4] sm:$0xff]  ;;  %v377_v17 = vld [vmem:[%s370_s18 + $0x8] sm:$0xff] }
  0x11   : > { %1580 = vmatpush3.msra.mxu1 %v472_v5  ;;  %1561 = vmatpush3.msra.mxu0 %v383_v6  ;;  %v378_v18 = vld [vmem:[%s2016_s2] sm:$0xff] }
  0x12   : > { %1581 = vmatprep.subr.mxu1 %v471_v7  ;;  %1562 = vmatprep.subr.mxu0 %v1712_v2  ;;  %v1853_v19 = vld [vmem:[%s365_s16] sm:$0xff] }
  0x13   : > { %1582 = vmatpush3.msra.mxu1 %v471_v7  ;;  %1563 = vmatpush3.msra.mxu0 %v382_v8  ;;  %v1478_v20 = vld [vmem:[%s2019_s5] ss:$0 sm:$0xff] }
  0x14   : > { %1583 = vmatprep.subr.mxu1 %v470_v9  ;;  %1564 = vmatprep.subr.mxu0 %v1712_v2  ;;  %v1476_v25 = vld [vmem:[%s2017_s3] ss:$0 sm:$0xff] }
  0x15   : > { %1584 = vmatpush3.msra.mxu1 %v470_v9  ;;  %1565 = vmatpush3.msra.mxu0 %v381_v10 }
  0x16   : > { %1585 = vmatprep.subr.mxu1 %v469_v11  ;;  %1566 = vmatprep.subr.mxu0 %v1712_v2 }
  0x17   : > { %1586 = vmatpush3.msra.mxu1 %v469_v11  ;;  %1591 = vmatprep.mubr.msk.f32.mxu1 %vm393_vm0, %v376_v12 }
  0x18   : > { %1587 = vmatprep.subr.mxu1 %v468_v13  ;;  %1567 = vmatpush3.msra.mxu0 %v380_v14 }
  0x19   : > { %1588 = vmatpush3.msra.mxu1 %v468_v13  ;;  %1568 = vmatprep.subr.mxu0 %v1712_v2 }
  0x1a   : > { %1589 = vmatprep.subr.mxu1 %v467_v15  ;;  %1569 = vmatpush3.msra.mxu0 %v379_v16 }
  0x1b   : > { %1590 = vmatpush3.msra.mxu1 %v467_v15  ;;  %1570 = vmatprep.subr.mxu0 %v1712_v2 }
  0x1c   : > { %1592 = vmatmul.mubr.msk.f32.vlgmr.msra.gmra.mxu1 %vm393_vm0, %v377_v17  ;;  %1571 = vmatpush3.msra.mxu0 %v378_v18 }
  0x1d   : > { %1572 = vmatprep.mubr.msk.f32.mxu0 %vm1713_vm1, %v1712_v2  ;;  %1594 = vmatprep.subr.mxu1 %v1712_v2 }
  0x1e   : > { %1573 = vmatmul.mubr.msk.f32.vlgmr.msra.gmra.mxu0 %vm393_vm0, %v1853_v19  ;;  %1598 = vmatprep.mubr.msk.f32.mxu1 %vm1713_vm1, %v1712_v2 }
  0x1f   : > { %1615 = vmatprep.subr.mxu0 %v1712_v2  ;;  %1619 = vmatprep.mubr.msk.f32.mxu0 %vm1713_vm1, %v1712_v2 }
  0xdc   : > { %v1593_v21 = vpop.f32.mrf.mxu1 }
  0xdd   : > { %v1869_v22 = vadd.f32 %v1593_v21, %v1478_v20 }
  0xde   : > { %v554_v23 = vpop.f32.mrf.mxu1  ;;  %v463_v24 = vpop.f32.mrf.mxu0 }
  0xdf   : > { %660 = vrot.lane.b32.xlu1 %v1869_v22, %s1714_s21  ;;  %1595 = vmatpush3.xpose.msk.msra.mxu1 %vm563_vm2, %v1869_v22  ;;  %v1878_v27 = vadd.f32 %v1478_v20, %v554_v23  ;;  %v1880_v28 = vadd.f32 %v1476_v25, %v463_v24 }
  0xe0   : > { %1596 = vmatprep.subr.mxu1 %v1712_v2  ;;  %v1574_v26 = vpop.f32.mrf.mxu0 }
  0xe3   : > { %658 = vrot.lane.b32.xlu1 %v1878_v27, %s1714_s21  ;;  %1597 = vmatpush3.xpose.msk.msra.mxu1 %vm563_vm2, %v1878_v27 }
  0xe4   : > { %1601 = vmatprep.subr.mxu1 %v1712_v2 }
  0xe6   : > { %1599 = vmatmul.mubr.msk.f32.vlgmr.msra.gmra.mxu1 %vm563_vm2, %v1880_v28 }
  0xe7   : > { %739 = vrot.lane.b32.xlu1 %v1878_v27, %s1715_s24  ;;  %1605 = vmatprep.mubr.msk.f32.mxu1 %vm1713_vm1, %v1712_v2 }
  0xeb   : > { %737 = vrot.lane.b32.xlu1 %v1880_v28, %s1715_s24 }
 0x151   : > { %v661_v29 = vpop.permute.xlu1 %660 }
 0x152   : > { %1602 = vmatpush3.msra.mxu1 %v661_v29 }
 0x153   : > { %1603 = vmatprep.subr.mxu1 %v1712_v2 }
 0x155   : > { %v659_v30 = vpop.permute.xlu1 %658 }
 0x156   : > { %1604 = vmatpush3.msra.mxu1 %v659_v30 }
 0x157   : > { %1608 = vmatprep.subr.mxu1 %v1712_v2 }
 0x159   : > { %v740_v47 = vpop.permute.xlu1 %739 }
 0x15d   : > { %v738_v48 = vpop.permute.xlu1 %737 }
 0x1a6   : > { %v639_v31 = vpop.f32.mrf.mxu1 }
 0x1a7   : > { %v643_v32 = vmul.f32 0.25, %v639_v31 }
 0x1a8   : > { %v1600_v33 = vpop.f32.mrf.mxu1 }
 0x1a9   : > { %v644_v34 = vsel %vm563_vm2, %v643_v32, -inf }
 0x1aa   : > { %645 = vmax.xlane.f32.xlu0 %v644_v34 }
 0x233   : > { %v646_v35 = vpop.xlane.xlu0 %645 }
 0x234   : > { %v647_v36 = vsub.f32 %v643_v32, %v646_v35 }
 0x236   : > { %v648_v37 = vmul.f32 1.442695, %v647_v36 }
 0x238   : > { %1686 = vpow2.f32 %v648_v37 }
 0x245   : > { %v1687_v38 = vpop.eup %1686 }
 0x246   : > { %v650_v39 = vsel %vm563_vm2, %v1687_v38, 0.0 }
 0x247   : > { %651 = vadd.xlane.f32.xlu0 %v650_v39 }
 0x25d   : > { %741 = vrot.lane.b32.xlu0 %v1869_v22, %s1715_s24 }
 0x2d0   : > { %v652_v40 = vpop.xlane.xlu0 %651 }
 0x2d1   : > { %1688 = vrcp.f32 %v652_v40 }
 0x2d4   : > { %v742_v46 = vpop.permute.xlu0 %741 }
 0x2de   : > { %v1689_v41 = vpop.eup %1688 }
 0x2df   : > { %v654_v42 = vmul.f32 %v1689_v41, %v652_v40 }
 0x2e1   : > { %v655_v43 = vsub.f32 2.0, %v654_v42 }
 0x2e3   : > { %v656_v44 = vmul.f32 %v1689_v41, %v655_v43 }
 0x2e5   : > { %v657_v45 = vmul.f32 %v1687_v38, %v656_v44 }
 0x2e7   : > { %1606 = vmatmul.mubr.msk.f32.vlgmr.msra.gmra.mxu1 %vm563_vm2, %v657_v45 }
 0x2e8   : > { %1609 = vmatpush3.xpose.msk.msra.mxu1 %vm563_vm2, %v742_v46  ;;  %1612 = vmatprep.mubr.msk.f32.mxu1 %vm1713_vm1, %v1712_v2 }
 0x2e9   : > { %1610 = vmatprep.subr.mxu1 %v1712_v2 }
 0x2ec   : > { %1611 = vmatpush3.xpose.msk.msra.mxu1 %vm563_vm2, %v740_v47 }
 0x2ed   : > { %1629 = vmatprep.subr.mxu1 %v1712_v2 }
 0x2ef   : > { %1613 = vmatmul.mubr.msk.f32.vlgmr.msra.gmra.mxu1 %vm563_vm2, %v738_v48 }
 0x2f0   : > { %1633 = vmatprep.mubr.msk.f32.mxu1 %vm1713_vm1, %v1712_v2 }
 0x3a7   : > { %v1907_v49 = vpop.f32.mrf.mxu1 }
 0x3a9   : > { %v1607_v50 = vpop.f32.mrf.mxu1 }
 0x3af   : > { %v815_v51 = vpop.f32.mrf.mxu1 }
 0x3b0   : > { %v819_v52 = vmul.f32 0.25, %v815_v51 }
 0x3b1   : > { %v1614_v53 = vpop.f32.mrf.mxu1 }
 0x3b2   : > { %v820_v54 = vsel %vm563_vm2, %v819_v52, -inf  ;;  %v1287_v53 = vld [vmem:[%s2020_s6 + $0x28] sm:$0xff] }
 0x3b3   : > { %821 = vmax.xlane.f32.xlu1 %v820_v54  ;;  %v1286_v54 = vld [vmem:[%s2020_s6 + $0x20] sm:$0xff] }
 0x3c4   : > { %836 = vrot.lane.b32.xlu1 %v1869_v22, %s1716_s25 }
 0x3c8   : > { %917 = vrot.lane.b32.xlu1 %v1869_v22, %s1717_s26 }
 0x3cc   : > { %915 = vrot.lane.b32.xlu1 %v1878_v27, %s1717_s26 }
 0x3d0   : > { %913 = vrot.lane.b32.xlu1 %v1880_v28, %s1717_s26 }
 0x43c   : > { %v822_v55 = vpop.xlane.xlu1 %821 }
 0x43d   : > { %v823_v56 = vsub.f32 %v819_v52, %v822_v55  ;;  %v1288_v52 = vld [vmem:[%s2020_s6 + $0x30] sm:$0xff]  ;;  %v1285_v55 = vld [vmem:[%s2020_s6 + $0x18] sm:$0xff] }
 0x43f   : > { %v824_v57 = vmul.f32 1.442695, %v823_v56  ;;  %v1284_v56 = vld [vmem:[%s2020_s6 + $0x10] sm:$0xff] }
 0x440   : > { %v837_v58 = vpop.permute.xlu1 %836 }
 0x441   : > { %1690 = vpow2.f32 %v824_v57  ;;  %1616 = vmatpush3.msra.mxu0 %v837_v58  ;;  %v1283_v57 = vld [vmem:[%s2020_s6 + $0x8] sm:$0xff]  ;;  %v1282_v58 = vld [vmem:[%s2020_s6] sm:$0xff] }
 0x442   : > { %1617 = vmatprep.subr.mxu0 %v1712_v2 }
 0x444   : > { %v918_v3 = vpop.permute.xlu1 %917 }
 0x448   : > { %v916_v6 = vpop.permute.xlu1 %915 }
 0x44c   : > { %v914_v7 = vpop.permute.xlu1 %913 }
 0x44e   : > { %v1691_v59 = vpop.eup %1690 }
 0x44f   : > { %v826_v60 = vsel %vm563_vm2, %v1691_v59, 0.0 }
 0x450   : > { %827 = vadd.xlane.f32.xlu0 %v826_v60 }
 0x466   : > { %834 = vrot.lane.b32.xlu0 %v1878_v27, %s1716_s25 }
 0x4d9   : > { %v828_v61 = vpop.xlane.xlu0 %827 }
 0x4da   : > { %1692 = vrcp.f32 %v828_v61 }
 0x4dd   : > { %v835_v62 = vpop.permute.xlu0 %834 }
 0x4de   : > { %1618 = vmatpush3.msra.mxu0 %v835_v62 }
 0x4df   : > { %1622 = vmatprep.subr.mxu0 %v1712_v2 }
 0x4e7   : > { %v1693_v63 = vpop.eup %1692 }
 0x4e8   : > { %v830_v0 = vmul.f32 %v1693_v63, %v828_v61 }
 0x4ea   : > { %v831_v1 = vsub.f32 2.0, %v830_v0 }
 0x4ec   : > { %v832_v4 = vmul.f32 %v1693_v63, %v831_v1 }
 0x4ee   : > { %v833_v5 = vmul.f32 %v1691_v59, %v832_v4 }
 0x4f0   : > { %1620 = vmatmul.mubr.msk.f32.vlgmr.msra.gmra.mxu0 %vm563_vm2, %v833_v5 }
 0x4f1   : > { %1623 = vmatpush3.xpose.msk.msra.mxu0 %vm563_vm2, %v918_v3  ;;  %1626 = vmatprep.mubr.msk.f32.mxu0 %vm1713_vm1, %v1712_v2 }
 0x4f2   : > { %1624 = vmatprep.subr.mxu0 %v1712_v2 }
 0x4f5   : > { %1625 = vmatpush3.xpose.msk.msra.mxu0 %vm563_vm2, %v916_v6 }
 0x4f6   : > { %1643 = vmatprep.subr.mxu0 %v1712_v2 }
 0x4f8   : > { %1627 = vmatmul.mubr.msk.f32.vlgmr.msra.gmra.mxu0 %vm563_vm2, %v914_v7 }
 0x4f9   : > { %1647 = vmatprep.mubr.msk.f32.mxu0 %vm1713_vm1, %v1712_v2 }
 0x5b0   : > { %v909_v8 = vpop.f32.mrf.mxu0 }
 0x5b2   : > { %v1621_v9 = vpop.f32.mrf.mxu0 }
 0x5b8   : > { %v991_v10 = vpop.f32.mrf.mxu0 }
 0x5b9   : > { %v995_v11 = vmul.f32 0.25, %v991_v10 }
 0x5ba   : > { %v1628_v12 = vpop.f32.mrf.mxu0 }
 0x5bb   : > { %v996_v13 = vsel %vm563_vm2, %v995_v11, -inf }
 0x5bc   : > { %997 = vmax.xlane.f32.xlu1 %v996_v13 }
 0x5cd   : > { %1010 = vrot.lane.b32.xlu1 %v1878_v27, %s1718_s28 }
 0x5d1   : > { %1093 = vrot.lane.b32.xlu1 %v1869_v22, %s1719_s29 }
 0x5d5   : > { %1089 = vrot.lane.b32.xlu1 %v1880_v28, %s1719_s29 }
 0x645   : > { %v998_v14 = vpop.xlane.xlu1 %997 }
 0x646   : > { %v999_v15 = vsub.f32 %v995_v11, %v998_v14 }
 0x648   : > { %v1000_v16 = vmul.f32 1.442695, %v999_v15 }
 0x649   : > { %v1011_v23 = vpop.permute.xlu1 %1010 }
 0x64a   : > { %1694 = vpow2.f32 %v1000_v16 }
 0x64d   : > { %v1094_v30 = vpop.permute.xlu1 %1093 }
 0x651   : > { %v1090_v32 = vpop.permute.xlu1 %1089 }
 0x657   : > { %v1695_v17 = vpop.eup %1694 }
 0x658   : > { %v1002_v18 = vsel %vm563_vm2, %v1695_v17, 0.0 }
 0x659   : > { %1003 = vadd.xlane.f32.xlu0 %v1002_v18  ;;  %v1500_v18 = vld [vmem:[%s2023_s9] ss:$0 sm:$0xff] }
 0x66f   : > { %1012 = vrot.lane.b32.xlu0 %v1869_v22, %s1718_s28 }
 0x673   : > { %1091 = vrot.lane.b32.xlu0 %v1878_v27, %s1719_s29 }
 0x6e2   : > { %v1004_v20 = vpop.xlane.xlu0 %1003 }
 0x6e3   : > { %1696 = vrcp.f32 %v1004_v20 }
 0x6e6   : > { %v1013_v21 = vpop.permute.xlu0 %1012 }
 0x6e7   : > { %1630 = vmatpush3.msra.mxu1 %v1013_v21 }
 0x6e8   : > { %1631 = vmatprep.subr.mxu1 %v1712_v2 }
 0x6e9   : > { %1632 = vmatpush3.msra.mxu1 %v1011_v23 }
 0x6ea   : > { %1636 = vmatprep.subr.mxu1 %v1712_v2  ;;  %v1092_v31 = vpop.permute.xlu0 %1091 }
 0x6f0   : > { %v1697_v24 = vpop.eup %1696 }
 0x6f1   : > { %v1006_v25 = vmul.f32 %v1697_v24, %v1004_v20 }
 0x6f3   : > { %v1007_v26 = vsub.f32 2.0, %v1006_v25 }
 0x6f5   : > { %v1008_v28 = vmul.f32 %v1697_v24, %v1007_v26 }
 0x6f7   : > { %v1009_v29 = vmul.f32 %v1695_v17, %v1008_v28 }
 0x6f9   : > { %1634 = vmatmul.mubr.msk.f32.vlgmr.msra.gmra.mxu1 %vm563_vm2, %v1009_v29 }
 0x6fa   : > { %1637 = vmatpush3.xpose.msk.msra.mxu1 %vm563_vm2, %v1094_v30  ;;  %1640 = vmatprep.mubr.msk.f32.mxu1 %vm1713_vm1, %v1712_v2 }
 0x6fb   : > { %1638 = vmatprep.subr.mxu1 %v1712_v2 }
 0x6fe   : > { %1639 = vmatpush3.xpose.msk.msra.mxu1 %vm563_vm2, %v1092_v31 }
 0x701   : > { %1641 = vmatmul.mubr.msk.f32.vlgmr.msra.gmra.mxu1 %vm563_vm2, %v1090_v32 }
 0x7b9   : > { %v1085_v33 = vpop.f32.mrf.mxu1 }
 0x7bb   : > { %v1635_v34 = vpop.f32.mrf.mxu1 }
 0x7c1   : > { %v1167_v35 = vpop.f32.mrf.mxu1 }
 0x7c2   : > { %v1171_v36 = vmul.f32 0.25, %v1167_v35 }
 0x7c3   : > { %v1642_v37 = vpop.f32.mrf.mxu1 }
 0x7c4   : > { %v1172_v38 = vsel %vm563_vm2, %v1171_v36, -inf }
 0x7c5   : > { %1173 = vmax.xlane.f32.xlu0 %v1172_v38 }
 0x7db   : > { %1188 = vrot.lane.b32.xlu0 %v1869_v22, %s1720_s30 }
 0x7df   : > { %1266 = vrot.lane.b32.xlu0 %v909_v8, %s1720_s30 }
 0x84e   : > { %v1174_v39 = vpop.xlane.xlu0 %1173 }
 0x84f   : > { %v1175_v40 = vsub.f32 %v1171_v36, %v1174_v39 }
 0x851   : > { %v1176_v41 = vmul.f32 1.442695, %v1175_v40 }
 0x852   : > { %v1189_v42 = vpop.permute.xlu0 %1188 }
 0x853   : > { %1698 = vpow2.f32 %v1176_v41  ;;  %1644 = vmatpush3.msra.mxu0 %v1189_v42 }
 0x854   : > { %1645 = vmatprep.subr.mxu0 %v1712_v2 }
 0x856   : > { %v1267_v61 = vpop.permute.xlu0 %1266 }
 0x857   : > { %v1277_v63 = vsel %vm563_vm2, %v1907_v49, %v1267_v61 }
 0x860   : > { %v1699_v43 = vpop.eup %1698 }
 0x861   : > { %v1178_v44 = vsel %vm563_vm2, %v1699_v43, 0.0 }
 0x862   : > { %1179 = vadd.xlane.f32.xlu1 %v1178_v44 }
 0x873   : > { %1186 = vrot.lane.b32.xlu1 %v1878_v27, %s1720_s30  ;;  %v1289_v27 = vld [vmem:[%s2020_s6 + $0x38] sm:$0xff] }
 0x877   : > { %1270 = vrot.lane.b32.xlu1 %v1085_v33, %s1718_s28 }
 0x8eb   : > { %v1180_v45 = vpop.xlane.xlu1 %1179 }
 0x8ec   : > { %1700 = vrcp.f32 %v1180_v45 }
 0x8ef   : > { %v1187_v22 = vpop.permute.xlu1 %1186 }
 0x8f0   : > { %1646 = vmatpush3.msra.mxu0 %v1187_v22 }
 0x8f1   : > { %1650 = vmatprep.subr.mxu0 %v1712_v2 }
 0x8f3   : > { %v1271_v62 = vpop.permute.xlu1 %1270 }
 0x8f4   : > { %v1279_v0 = vsel %vm1278_vm3, %v1277_v63, %v1271_v62 }
 0x8f9   : > { %v1701_v46 = vpop.eup %1700 }
 0x8fa   : > { %v1182_v47 = vmul.f32 %v1701_v46, %v1180_v45 }
 0x8fc   : > { %v1183_v48 = vsub.f32 2.0, %v1182_v47 }
 0x8fe   : > { %v1184_v50 = vmul.f32 %v1701_v46, %v1183_v48 }
 0x900   : > { %v1185_v51 = vmul.f32 %v1699_v43, %v1184_v50 }
 0x902   : > { %1648 = vmatmul.mubr.msk.f32.vlgmr.msra.gmra.mxu0 %vm563_vm2, %v1185_v51 }
 0x903   : > { %1666 = vmatprep.mubr.msk.f32.mxu0 %vm1713_vm1, %v1712_v2  ;;  %1651 = vmatpush3.msra.mxu0 %v1289_v27 }
 0x904   : > { %1652 = vmatprep.subr.mxu0 %v1712_v2 }
 0x905   : > { %1653 = vmatpush3.msra.mxu0 %v1288_v52 }
 0x906   : > { %1654 = vmatprep.subr.mxu0 %v1712_v2 }
 0x907   : > { %1655 = vmatpush3.msra.mxu0 %v1287_v53 }
 0x908   : > { %1656 = vmatprep.subr.mxu0 %v1712_v2 }
 0x909   : > { %1657 = vmatpush3.msra.mxu0 %v1286_v54 }
 0x90a   : > { %1658 = vmatprep.subr.mxu0 %v1712_v2 }
 0x90b   : > { %1659 = vmatpush3.msra.mxu0 %v1285_v55 }
 0x90c   : > { %1660 = vmatprep.subr.mxu0 %v1712_v2 }
 0x90d   : > { %1661 = vmatpush3.msra.mxu0 %v1284_v56 }
 0x90e   : > { %1662 = vmatprep.subr.mxu0 %v1712_v2 }
 0x90f   : > { %1663 = vmatpush3.msra.mxu0 %v1283_v57 }
 0x910   : > { %1664 = vmatprep.subr.mxu0 %v1712_v2  ;;  %v1497_v2 = vld [vmem:[%s2021_s7] ss:$0 sm:$0xff] }
 0x911   : > { %1665 = vmatpush3.msra.mxu0 %v1282_v58 }
 0x9c2   : > { %v1261_v59 = vpop.f32.mrf.mxu0 }
 0x9c3   : > { %1274 = vrot.lane.b32.xlu0 %v1261_v59, %s1716_s25 }
 0x9c4   : > { %v1649_v60 = vpop.f32.mrf.mxu0 }
 0xa35   : > { %v1275_v1 = vpop.permute.xlu0 %1274 }
 0xa36   : > { %v1281_v3 = vsel %vm1280_vm4, %v1279_v0, %v1275_v1 }
 0xa37   : > { %1667 = vmatmul.mubr.msk.f32.vlgmr.msra.gmra.mxu0 %vm393_vm0, %v1281_v3 }
 0xaf7   : > { %v1366_v4 = vpop.f32.mrf.mxu0 }
 0xaf8   : > { %v1367_v5 = vadd.f32 %v1497_v2, %v1366_v4 }
 0xaf9   : > { %v1668_v6 = vpop.f32.mrf.mxu0 }
 0xafa   : > { %v1370_v7 = vadd.f32 %v1367_v5, %v1853_v19  ;;  %v1499_v19 = vld [vmem:[%s2022_s8] ss:$0 sm:$0xff] }
 0xafc   : > { %v1371_v8 = vsel %vm393_vm0, %v1370_v7, 0.0 }
 0xafd   : > { %1372 = vadd.xlane.f32.xlu1 %v1371_v8 }
 0xb86   : > { %v1373_v9 = vpop.xlane.xlu1 %1372 }
 0xb87   : > { %v1375_v49 = vmul.f32 0.015625, %v1373_v9 }
 0xb89   : > { %v1376_v10 = vsub.f32 %v1370_v7, %v1375_v49 }
 0xb8b   : > { %v1377_v11 = vmul.f32 %v1376_v10, %v1376_v10 }
 0xb8d   : > { %v1378_v12 = vsel %vm393_vm0, %v1377_v11, 0.0 }
 0xb8e   : > { %1379 = vadd.xlane.f32.xlu0 %v1378_v12 }
 0xc17   : > { %v1380_v13 = vpop.xlane.xlu0 %1379 }
 0xc18   : > { %v1381_v14 = vmul.f32 0.015625, %v1380_v13 }
 0xc1a   : > { %v1382_v15 = vadd.f32 1e-05, %v1381_v14 }
 0xc1c   : > { %1702 = vrsqrt.f32 %v1382_v15 }
 0xc29   : > { %v1703_v16 = vpop.eup %1702 }
 0xc2a   : > { %v1384_v17 = vmul.f32 %v1703_v16, %v1376_v10 }
 0xc2c   : > { %v1392_v20 = vmul.f32 %v1499_v19, %v1384_v17 }
 0xc2e   : > { %v1400_v21 = vadd.f32 %v1500_v18, %v1392_v20 }
 0xc30   : > { %1401 = vst.msk [vmem:[%s374_s20] sm:$0xff] %vm393_vm0, %v1400_v21 }
 0xc31 PF: > { %s20_s13 = sadd.s32 1, %s1710_s13  }
 0xc32   : > { %p17_p4 = scmp.ge.s32.totalorder %s20_s13, 4  }
 0xc34   :  { %19 = sbr.rel (!%p17_p4) target bundleno = 1 (0x1), region = 93 }

// kernel: transformer_forward.25
= control target key start
LH: loop header
LB: loop body
LE: loop exit
PB: predicated region body
PF: predicated region fallthrough
CT: control target
= control target key end

     0   :  { %s389_s12 = smov 0   ;;  %s433_s0 = inlined_call_operand.vmem [shape: f32[16,64], index: 0, kind: input, shape index: {}]   ;;  %s434_s1 = inlined_call_operand.vmem [shape: f32[64,128], index: 1, kind: input, shape index: {}]   ;;  %s435_s2 = inlined_call_operand.vmem [shape: f32[1,128], index: 2, kind: input, shape index: {}]   ;;  %s436_s3 = inlined_call_operand.vmem [shape: f32[16,128], index: 3, kind: output, shape index: {}]  }
   0x1 LB: > { %s310_s13 = sadd.s32 4294967295, %s365_s12   ;;  %p314_p0 = scmp.ge.s32.totalorder %s365_s12, 1  ;;  %s365_s12 = sphi %s389_s12, %s13_s12  }
   0x2   : > { %p136_p1 = scmp.lt.s32.totalorder %s365_s12, 3 }
   0x4   : > { %p137_p2 = pnand %p314_p0, %p136_p1 }
   0x5   : > { %p158_p3 = scmp.lt.s32.totalorder (!%p137_p2), %s310_s13, 1 }
   0x6   : > { %140 = sbr.rel (%p137_p2) target bundleno = 224 (0xe0), region = 32 }
   0xb   : > { %v174_v0 = vld [vmem:[%s434_s1 + $0x38] sm:$0xff]  ;;  %v367_v1 = vmov 0.0   ;;  %v173_v2 = vld [vmem:[%s434_s1 + $0x30] sm:$0xff]  ;;  %vm368_vm0 = vmmov 0   ;;  %v172_v3 = vld [vmem:[%s434_s1 + $0x28] sm:$0xff]  ;;  %s438_s13 = smov (!%p158_p3, %s310_s13), 1 }
   0xc   : > { %330 = vmatprep.subr.mxu0 %v367_v1  ;;  %346 = vmatprep.mubr.msk.f32.mxu0 %vm368_vm0, %v367_v1  ;;  %v171_v4 = vld [vmem:[%s434_s1 + $0x20] sm:$0xff]  ;;  %v170_v5 = vld [vmem:[%s434_s1 + $0x18] sm:$0xff]  ;;  %s315_s24 = sshll.u32 %s438_s13, 3  ;;  %v169_v6 = vld [vmem:[%s434_s1 + $0x10] sm:$0xff]  ;;  %vm182_vm1 = vcmask 523264  }
   0xd   : > { %331 = vmatpush3.msra.mxu0 %v174_v0  ;;  %v168_v7 = vld [vmem:[%s434_s1 + $0x8] sm:$0xff]  ;;  %s161_s4 = scalar_lea.vmem %s433_s0, %s315_s24  ;;  %v167_v8 = vld [vmem:[%s434_s1] sm:$0xff]  ;;  %s165_s11 = scalar_lea.vmem %s436_s3, %s315_s24 }
   0xe   : > { %332 = vmatprep.subr.mxu0 %v367_v1  ;;  %v166_v9 = vld [vmem:[%s161_s4] sm:$0xff] }
   0xf   : > { %333 = vmatpush3.msra.mxu0 %v173_v2  ;;  %v317_v10 = vld [vmem:[%s435_s2] ss:$0 sm:$0xff] }
  0x10   : > { %334 = vmatprep.subr.mxu0 %v367_v1 }
  0x11   : > { %335 = vmatpush3.msra.mxu0 %v172_v3 }
  0x12   : > { %336 = vmatprep.subr.mxu0 %v367_v1 }
  0x13   : > { %337 = vmatpush3.msra.mxu0 %v171_v4 }
  0x14   : > { %338 = vmatprep.subr.mxu0 %v367_v1 }
  0x15   : > { %339 = vmatpush3.msra.mxu0 %v170_v5 }
  0x16   : > { %340 = vmatprep.subr.mxu0 %v367_v1 }
  0x17   : > { %341 = vmatpush3.msra.mxu0 %v169_v6 }
  0x18   : > { %342 = vmatprep.subr.mxu0 %v367_v1 }
  0x19   : > { %343 = vmatpush3.msra.mxu0 %v168_v7 }
  0x1a   : > { %344 = vmatprep.subr.mxu0 %v367_v1 }
  0x1b   : > { %345 = vmatpush3.msra.mxu0 %v167_v8 }
  0x1c   : > { %347 = vmatmul.mubr.msk.f32.vlgmr.msra.gmra.mxu0 %vm182_vm1, %v166_v9 }
  0xdc   : > { %v252_v11 = vpop.f32.mrf.mxu0 }
  0xdd   : > { %v253_v12 = vadd.f32 %v317_v10, %v252_v11 }
  0xde   : > { %v348_v13 = vpop.f32.mrf.mxu0 }
  0xdf   : > { %256 = vst [vmem:[%s165_s11] sm:$0xff] %v253_v12 }
  0xe0 PF: > { %s13_s12 = sadd.s32 1, %s365_s12  }
  0xe1   : > { %p10_p4 = scmp.ge.s32.totalorder %s13_s12, 4  }
  0xe3   :  { %12 = sbr.rel (!%p10_p4) target bundleno = 1 (0x1), region = 62 }

</bundles_post_ra>
